<compile_context>
chip_gen: v7x
topology: tpu7x:2x2x1
jax: 0.10.0
libtpu: 0.0.40
codegen_flags: <defaults>
</compile_context>

<pallas_src>
import jax
import jax.numpy as jnp
from jax.experimental import pallas as pl
from jax.experimental.pallas import tpu as pltpu

# ----------------------------- configuration (small shapes) -----------------------------
B = 2                   # batch
N_NODES = 16            # config.num_of_vertices
HIDE = 32               # hide_dim -> nhid
C_RES = HIDE            # residual_channels
C_DIL = HIDE            # dilation_channels
C_SKIP = 2 * HIDE       # skip_channels
C_END = 4 * HIDE        # end_channels
KT = 2                  # config.Kt
INPUT_WINDOW = 6        # config.input_window
OUT_WINDOW = 4          # out_dim -> output_window
BLOCKS, LAYERS = 2, 2
N_LAYERS = BLOCKS * LAYERS
BN_EPS = 1e-5

# dilation schedule (resets to 1 at each block, doubles per layer) -> [1, 2, 1, 2]
DILATIONS = []
for _b in range(BLOCKS):
    _d = 1
    for _l in range(LAYERS):
        DILATIONS.append(_d)
        _d *= 2

# time lengths through the network (after the left pad of 1): [7, 6, 4, 3, 1]
T0 = INPUT_WINDOW + 1
TIME_LENS = [T0]
for _d in DILATIONS:
    TIME_LENS.append(TIME_LENS[-1] - _d * (KT - 1))
T_FINAL = TIME_LENS[-1]
assert T_FINAL == 1  # final view/permute equivalence below relies on this (see wrapper note)

BN_ROWS = B * N_NODES   # rows per timestep in the (t, b, n) row-major layout


# ---------------------------------- Pallas kernel ----------------------------------------
def tgcn_kernel(x_ref, w0_ref, b0_ref, wtc_ref, bfg_ref, wsg_ref, bs_ref, bgc_ref,
                bd0_ref, bd1_ref, bd2_ref, bd3_ref,
                scale_ref, shift_ref, we1_ref, be1_ref, we2_ref, be2_ref, out_ref):
    bd_refs = (bd0_ref, bd1_ref, bd2_ref, bd3_ref)

    # start_conv: Conv2d(1 -> C_RES, (1,1)) on a single input channel == broadcast FMA.
    h = x_ref[...] * w0_ref[...] + b0_ref[...]                      # (T0*BN, C_RES)

    skip = None
    for i in range(N_LAYERS):
        d = DILATIONS[i]
        l_in = TIME_LENS[i]
        l_out = TIME_LENS[i + 1]
        r_out = l_out * BN_ROWS

        residual = h                                                # (l_in*BN, C_RES)

        # fused gated temporal conv: both KT taps stacked on the K axis, filter+gate
        # stacked on the N axis -> a single (r_out, 64) @ (64, 64) matmul.
        x_cat = jnp.concatenate(
            [residual[0:r_out],
             residual[d * BN_ROWS:d * BN_ROWS + r_out]], axis=1)    # (r_out, KT*C_RES)
        fg = jnp.dot(x_cat, wtc_ref[i],
                     preferred_element_type=jnp.float32) + bfg_ref[i]
        h = jnp.tanh(fg[:, :C_DIL]) * jax.nn.sigmoid(fg[:, C_DIL:])  # (r_out, C_DIL)

        # fused skip conv (1x1) + GCN channel projection: one (r_out,32)@(32,96) matmul.
        sg = jnp.dot(h, wsg_ref[i], preferred_element_type=jnp.float32)
        s = sg[:, :C_SKIP] + bs_ref[i]                              # (r_out, C_SKIP)
        hp = sg[:, C_SKIP:]                                         # (r_out, C_RES)

        # running skip accumulation (crop earliest timesteps = drop leading rows)
        skip = s if skip is None else skip[-r_out:] + s

        # graph convolution: block-diag(A_hat over every (t,b)) @ (H W) + b, one matmul.
        # TODO(synk): Layer_GCN.GraphConvolution source not provided; implemented as a
        # standard normalized-adjacency GCN (node mix + channel projection + bias).
        mixed = jnp.dot(bd_refs[i][...], hp,
                        preferred_element_type=jnp.float32) + bgc_ref[i]

        # TODO(synk): nn.Dropout applied as identity (eval-mode semantics).
        xnew = mixed + residual[(l_in - l_out) * BN_ROWS:]

        # eval-mode BatchNorm folded into a single FMA (scale/shift precomputed outside)
        h = xnew * scale_ref[i] + shift_ref[i]

    # head
    x = jnp.maximum(skip, 0.0)                                                   # relu(skip)
    x = jnp.maximum(jnp.dot(x, we1_ref[...],
                            preferred_element_type=jnp.float32) + be1_ref[...], 0.0)
    x = jnp.dot(x, we2_ref[...], preferred_element_type=jnp.float32) + be2_ref[...]
    out_ref[...] = x                                                # (T_FINAL*BN, OUT_WINDOW)


# ---------------------------------- wrapper ----------------------------------------------
def _full_spec(shape):
    nd = len(shape)
    return pl.BlockSpec(shape, lambda i, nd=nd: (0,) * nd)


def tgcn_forward(flow, params):
    """flow: (B, T, N, 1) float32 (same tensor the PyTorch forward receives)."""
    # F.pad(inputs, (1, 0, 0, 0)) in NCHW pads the time axis on the left by 1.
    xp = jnp.pad(flow, ((0, 0), (1, 0), (0, 0), (0, 0)))            # (B, T0, N, 1)
    # time-major rows (t, b, n), channels on lanes; batch folded into matmul rows.
    x2d = jnp.transpose(xp, (1, 0, 2, 3)).reshape(T0 * BN_ROWS, 1)

    args = (x2d,) + tuple(params)
    out2d = pl.pallas_call(
        tgcn_kernel,
        out_shape=jax.ShapeDtypeStruct((T_FINAL * BN_ROWS, OUT_WINDOW), jnp.float32),
        grid=(1,),
        in_specs=[_full_spec(tuple(a.shape)) for a in args],
        out_specs=_full_spec((T_FINAL * BN_ROWS, OUT_WINDOW)),
        compiler_params=pltpu.CompilerParams(dimension_semantics=("arbitrary",)),
    )(*args)

    # Kernel output rows are (t=0, b, n).  With T_FINAL == 1 the PyTorch
    # x.view(B, -1, N).permute(0, 2, 1) is exactly out[b, n, ow], so a reshape suffices.
    return out2d.reshape(B, N_NODES, OUT_WINDOW * T_FINAL)


# --------------------------- deterministic parameter init --------------------------------
def init_params(key):
    """Raw parameters mirroring the PyTorch module (eval mode)."""
    ks = iter(jax.random.split(key, 40))

    def nrm(shape, scale=0.1):
        return (scale * jax.random.normal(next(ks), shape)).astype(jnp.float32)

    w0 = nrm((C_RES,), 0.3)
    b0 = nrm((C_RES,))
    wf = nrm((N_LAYERS, KT, C_RES, C_DIL))
    bf = nrm((N_LAYERS, C_DIL))
    wg = nrm((N_LAYERS, KT, C_RES, C_DIL))
    bg = nrm((N_LAYERS, C_DIL))
    ws = nrm((N_LAYERS, C_DIL, C_SKIP))
    bs = nrm((N_LAYERS, C_SKIP))
    wgc = nrm((N_LAYERS, C_DIL, C_RES))
    bgc = nrm((N_LAYERS, C_RES))
    gam = 1.0 + nrm((N_LAYERS, C_RES))
    bet = nrm((N_LAYERS, C_RES))
    mu = nrm((N_LAYERS, C_RES))
    var = 1.0 + 0.5 * jnp.abs(nrm((N_LAYERS, C_RES)))
    we1 = nrm((C_SKIP, C_END))
    be1 = nrm((C_END,))
    we2 = nrm((C_END, OUT_WINDOW))
    be2 = nrm((OUT_WINDOW,))

    # deterministic synthetic graph -> symmetrically normalized adjacency with self-loops
    a = jax.random.uniform(next(ks), (N_NODES, N_NODES))
    a = ((a + a.T) * 0.5 > 0.55).astype(jnp.float32)
    a = a * (1.0 - jnp.eye(N_NODES, dtype=jnp.float32)) + jnp.eye(N_NODES, dtype=jnp.float32)
    dinv = jax.lax.rsqrt(a.sum(axis=1))
    a_hat = (a * dinv[:, None] * dinv[None, :]).astype(jnp.float32)

    return (w0, b0, wf, bf, wg, bg, ws, bs, wgc, bgc, a_hat,
            gam, bet, mu, var, we1, be1, we2, be2)
    # NOTE: residual_convs exist in __init__ but are never used in forward -> omitted.


def pack_params(raw):
    """One-time weight packing / fusion done in plain JAX outside the kernel."""
    (w0, b0, wf, bf, wg, bg, ws, bs, wgc, bgc, a_hat,
     gam, bet, mu, var, we1, be1, we2, be2) = raw

    # gated temporal conv: taps on the contraction axis, filter|gate on the output axis
    wtc = jnp.concatenate(
        [jnp.concatenate([wf[:, k], wg[:, k]], axis=-1) for k in range(KT)],
        axis=1)                                                   # (L, KT*C_RES, 2*C_DIL)
    bfg = jnp.concatenate([bf, bg], axis=-1)[:, None, :]          # (L, 1, 2*C_DIL)

    # skip conv + GCN channel projection share the same input -> pack on output axis
    wsg = jnp.concatenate([ws, wgc], axis=-1)                     # (L, C_DIL, C_SKIP+C_RES)
    bs2 = bs[:, None, :]                                          # (L, 1, C_SKIP)
    bgc2 = bgc[:, None, :]                                        # (L, 1, C_RES)

    # block-diagonal adjacency per layer: kron(I_{l_out*B}, A_hat) mixes nodes for every
    # (time, batch) block in a single MXU matmul inside the kernel.
    bds = tuple(jnp.kron(jnp.eye(TIME_LENS[i + 1] * B, dtype=jnp.float32), a_hat)
                for i in range(N_LAYERS))

    # eval-mode BatchNorm folded to per-layer scale/shift
    sc = gam * jax.lax.rsqrt(var + BN_EPS)
    sh = bet - mu * sc
    scale = sc[:, None, :]                                        # (L, 1, C_RES)
    shift = sh[:, None, :]                                        # (L, 1, C_RES)

    return (w0[None, :], b0[None, :], wtc, bfg, wsg, bs2, bgc2) + bds + \
           (scale, shift, we1, be1[None, :], we2, be2[None, :])


# --------------------------------------- main ---------------------------------------------
if __name__ == "__main__":
    key = jax.random.PRNGKey(0)
    k_in, k_par = jax.random.split(key)
    flow = jax.random.normal(k_in, (B, INPUT_WINDOW, N_NODES, 1), dtype=jnp.float32)
    raw = init_params(k_par)
    params = pack_params(raw)

    out = tgcn_forward(flow, params)
    out = jax.block_until_ready(out)

    assert out.shape == (B, N_NODES, OUT_WINDOW * T_FINAL), out.shape
    assert bool(jnp.all(jnp.isfinite(out)))
    print("KERNEL_OK")
</pallas_src>

<mosaic_0001>
module attributes {stable_mosaic.version = 11 : i64} {
  func.func @tgcn_kernel(%arg0: i32, %arg1: memref<224x1xf32, #tpu.memory_space<vmem>>, %arg2: memref<1x32xf32, #tpu.memory_space<vmem>>, %arg3: memref<1x32xf32, #tpu.memory_space<vmem>>, %arg4: memref<4x64x64xf32, #tpu.memory_space<vmem>>, %arg5: memref<4x1x64xf32, #tpu.memory_space<vmem>>, %arg6: memref<4x32x96xf32, #tpu.memory_space<vmem>>, %arg7: memref<4x1x64xf32, #tpu.memory_space<vmem>>, %arg8: memref<4x1x32xf32, #tpu.memory_space<vmem>>, %arg9: memref<192x192xf32, #tpu.memory_space<vmem>>, %arg10: memref<128x128xf32, #tpu.memory_space<vmem>>, %arg11: memref<96x96xf32, #tpu.memory_space<vmem>>, %arg12: memref<32x32xf32, #tpu.memory_space<vmem>>, %arg13: memref<4x1x32xf32, #tpu.memory_space<vmem>>, %arg14: memref<4x1x32xf32, #tpu.memory_space<vmem>>, %arg15: memref<64x128xf32, #tpu.memory_space<vmem>>, %arg16: memref<1x128xf32, #tpu.memory_space<vmem>>, %arg17: memref<128x4xf32, #tpu.memory_space<vmem>>, %arg18: memref<1x4xf32, #tpu.memory_space<vmem>>, %arg19: memref<32x4xf32, #tpu.memory_space<vmem>>) attributes {dimension_semantics = [#tpu.dimension_semantics<arbitrary>], iteration_bounds = array<i64: 1>, scalar_prefetch = 0 : i64, scratch_operands = 0 : i64, tpu.core_type = #tpu.core_type<tc>, window_params = [{pipeline_mode = #tpu.pipeline_mode<synchronous>, transform_indices = @transform_0, window_bounds = array<i64: 224, 1>}, {pipeline_mode = #tpu.pipeline_mode<synchronous>, transform_indices = @transform_1, window_bounds = array<i64: 1, 32>}, {pipeline_mode = #tpu.pipeline_mode<synchronous>, transform_indices = @transform_2, window_bounds = array<i64: 1, 32>}, {pipeline_mode = #tpu.pipeline_mode<synchronous>, transform_indices = @transform_3, window_bounds = array<i64: 4, 64, 64>}, {pipeline_mode = #tpu.pipeline_mode<synchronous>, transform_indices = @transform_4, window_bounds = array<i64: 4, 1, 64>}, {pipeline_mode = #tpu.pipeline_mode<synchronous>, transform_indices = @transform_5, window_bounds = array<i64: 4, 32, 96>}, {pipeline_mode = #tpu.pipeline_mode<synchronous>, transform_indices = @transform_6, window_bounds = array<i64: 4, 1, 64>}, {pipeline_mode = #tpu.pipeline_mode<synchronous>, transform_indices = @transform_7, window_bounds = array<i64: 4, 1, 32>}, {pipeline_mode = #tpu.pipeline_mode<synchronous>, transform_indices = @transform_8, window_bounds = array<i64: 192, 192>}, {pipeline_mode = #tpu.pipeline_mode<synchronous>, transform_indices = @transform_9, window_bounds = array<i64: 128, 128>}, {pipeline_mode = #tpu.pipeline_mode<synchronous>, transform_indices = @transform_10, window_bounds = array<i64: 96, 96>}, {pipeline_mode = #tpu.pipeline_mode<synchronous>, transform_indices = @transform_11, window_bounds = array<i64: 32, 32>}, {pipeline_mode = #tpu.pipeline_mode<synchronous>, transform_indices = @transform_12, window_bounds = array<i64: 4, 1, 32>}, {pipeline_mode = #tpu.pipeline_mode<synchronous>, transform_indices = @transform_13, window_bounds = array<i64: 4, 1, 32>}, {pipeline_mode = #tpu.pipeline_mode<synchronous>, transform_indices = @transform_14, window_bounds = array<i64: 64, 128>}, {pipeline_mode = #tpu.pipeline_mode<synchronous>, transform_indices = @transform_15, window_bounds = array<i64: 1, 128>}, {pipeline_mode = #tpu.pipeline_mode<synchronous>, transform_indices = @transform_16, window_bounds = array<i64: 128, 4>}, {pipeline_mode = #tpu.pipeline_mode<synchronous>, transform_indices = @transform_17, window_bounds = array<i64: 1, 4>}, {pipeline_mode = #tpu.pipeline_mode<synchronous>, transform_indices = @transform_18, window_bounds = array<i64: 32, 4>}]} {
    %c0 = arith.constant 0 : index
    %c0_0 = arith.constant 0 : index
    %0 = vector.load %arg1[%c0, %c0_0] : memref<224x1xf32, #tpu.memory_space<vmem>>, vector<224x1xf32>
    %c0_1 = arith.constant 0 : index
    %c0_2 = arith.constant 0 : index
    %1 = vector.load %arg2[%c0_1, %c0_2] : memref<1x32xf32, #tpu.memory_space<vmem>>, vector<1x32xf32>
    %2 = vector.broadcast %0 : vector<224x1xf32> to vector<224x32xf32>
    %3 = vector.broadcast %1 : vector<1x32xf32> to vector<224x32xf32>
    %4 = arith.mulf %2, %3 : vector<224x32xf32>
    %c0_3 = arith.constant 0 : index
    %c0_4 = arith.constant 0 : index
    %5 = vector.load %arg3[%c0_3, %c0_4] : memref<1x32xf32, #tpu.memory_space<vmem>>, vector<1x32xf32>
    %6 = vector.broadcast %5 : vector<1x32xf32> to vector<224x32xf32>
    %7 = arith.addf %4, %6 : vector<224x32xf32>
    %8 = vector.extract_strided_slice %7 {offsets = [0, 0], sizes = [192, 32], strides = [1, 1]} : vector<224x32xf32> to vector<192x32xf32>
    %9 = vector.extract_strided_slice %7 {offsets = [32, 0], sizes = [192, 32], strides = [1, 1]} : vector<224x32xf32> to vector<192x32xf32>
    %10 = tpu.concatenate %8, %9 in 1 : vector<192x32xf32>, vector<192x32xf32> -> vector<192x64xf32>
    %c0_5 = arith.constant 0 : index
    %c0_6 = arith.constant 0 : index
    %c0_7 = arith.constant 0 : index
    %11 = vector.load %arg4[%c0_5, %c0_6, %c0_7] : memref<4x64x64xf32, #tpu.memory_space<vmem>>, vector<1x64x64xf32>
    %12 = vector.shape_cast %11 : vector<1x64x64xf32> to vector<64x64xf32>
    %cst = arith.constant dense<0.000000e+00> : vector<192x64xf32>
    %13 = tpu.matmul %10, %12, %cst {dimension_numbers = #tpu.dot_dimension_numbers<[1], [0], [0], [1], [0, 0, 1, 1], [], []>} : vector<192x64xf32>, vector<64x64xf32>, vector<192x64xf32> -> vector<192x64xf32>
    %c0_8 = arith.constant 0 : index
    %c0_9 = arith.constant 0 : index
    %c0_10 = arith.constant 0 : index
    %14 = vector.load %arg5[%c0_8, %c0_9, %c0_10] : memref<4x1x64xf32, #tpu.memory_space<vmem>>, vector<1x1x64xf32>
    %15 = vector.shape_cast %14 : vector<1x1x64xf32> to vector<1x64xf32>
    %16 = vector.broadcast %15 : vector<1x64xf32> to vector<192x64xf32>
    %17 = arith.addf %13, %16 : vector<192x64xf32>
    %18 = vector.extract_strided_slice %17 {offsets = [0, 0], sizes = [192, 32], strides = [1, 1]} : vector<192x64xf32> to vector<192x32xf32>
    %19 = math.tanh %18 : vector<192x32xf32>
    %20 = vector.extract_strided_slice %17 {offsets = [0, 32], sizes = [192, 32], strides = [1, 1]} : vector<192x64xf32> to vector<192x32xf32>
    %21 = arith.negf %20 : vector<192x32xf32>
    %22 = math.exp %21 : vector<192x32xf32>
    %cst_11 = arith.constant 1.000000e+00 : f32
    %23 = vector.broadcast %cst_11 : f32 to vector<192x32xf32>
    %24 = arith.addf %23, %22 : vector<192x32xf32>
    %25 = arith.divf %23, %24 : vector<192x32xf32>
    %26 = arith.mulf %19, %25 : vector<192x32xf32>
    %c0_12 = arith.constant 0 : index
    %c0_13 = arith.constant 0 : index
    %c0_14 = arith.constant 0 : index
    %27 = vector.load %arg6[%c0_12, %c0_13, %c0_14] : memref<4x32x96xf32, #tpu.memory_space<vmem>>, vector<1x32x96xf32>
    %28 = vector.shape_cast %27 : vector<1x32x96xf32> to vector<32x96xf32>
    %cst_15 = arith.constant dense<0.000000e+00> : vector<192x96xf32>
    %29 = tpu.matmul %26, %28, %cst_15 {dimension_numbers = #tpu.dot_dimension_numbers<[1], [0], [0], [1], [0, 0, 1, 1], [], []>} : vector<192x32xf32>, vector<32x96xf32>, vector<192x96xf32> -> vector<192x96xf32>
    %30 = vector.extract_strided_slice %29 {offsets = [0, 0], sizes = [192, 64], strides = [1, 1]} : vector<192x96xf32> to vector<192x64xf32>
    %c0_16 = arith.constant 0 : index
    %c0_17 = arith.constant 0 : index
    %c0_18 = arith.constant 0 : index
    %31 = vector.load %arg7[%c0_16, %c0_17, %c0_18] : memref<4x1x64xf32, #tpu.memory_space<vmem>>, vector<1x1x64xf32>
    %32 = vector.shape_cast %31 : vector<1x1x64xf32> to vector<1x64xf32>
    %33 = vector.broadcast %32 : vector<1x64xf32> to vector<192x64xf32>
    %34 = arith.addf %30, %33 : vector<192x64xf32>
    %35 = vector.extract_strided_slice %29 {offsets = [0, 64], sizes = [192, 32], strides = [1, 1]} : vector<192x96xf32> to vector<192x32xf32>
    %c0_19 = arith.constant 0 : index
    %c0_20 = arith.constant 0 : index
    %36 = vector.load %arg9[%c0_19, %c0_20] : memref<192x192xf32, #tpu.memory_space<vmem>>, vector<192x192xf32>
    %cst_21 = arith.constant dense<0.000000e+00> : vector<192x32xf32>
    %37 = tpu.matmul %36, %35, %cst_21 {dimension_numbers = #tpu.dot_dimension_numbers<[1], [0], [0], [1], [0, 0, 1, 1], [], []>} : vector<192x192xf32>, vector<192x32xf32>, vector<192x32xf32> -> vector<192x32xf32>
    %c0_22 = arith.constant 0 : index
    %c0_23 = arith.constant 0 : index
    %c0_24 = arith.constant 0 : index
    %38 = vector.load %arg8[%c0_22, %c0_23, %c0_24] : memref<4x1x32xf32, #tpu.memory_space<vmem>>, vector<1x1x32xf32>
    %39 = vector.shape_cast %38 : vector<1x1x32xf32> to vector<1x32xf32>
    %40 = vector.broadcast %39 : vector<1x32xf32> to vector<192x32xf32>
    %41 = arith.addf %37, %40 : vector<192x32xf32>
    %42 = vector.extract_strided_slice %7 {offsets = [32, 0], sizes = [192, 32], strides = [1, 1]} : vector<224x32xf32> to vector<192x32xf32>
    %43 = arith.addf %41, %42 : vector<192x32xf32>
    %c0_25 = arith.constant 0 : index
    %c0_26 = arith.constant 0 : index
    %c0_27 = arith.constant 0 : index
    %44 = vector.load %arg13[%c0_25, %c0_26, %c0_27] : memref<4x1x32xf32, #tpu.memory_space<vmem>>, vector<1x1x32xf32>
    %45 = vector.shape_cast %44 : vector<1x1x32xf32> to vector<1x32xf32>
    %46 = vector.broadcast %45 : vector<1x32xf32> to vector<192x32xf32>
    %47 = arith.mulf %43, %46 : vector<192x32xf32>
    %c0_28 = arith.constant 0 : index
    %c0_29 = arith.constant 0 : index
    %c0_30 = arith.constant 0 : index
    %48 = vector.load %arg14[%c0_28, %c0_29, %c0_30] : memref<4x1x32xf32, #tpu.memory_space<vmem>>, vector<1x1x32xf32>
    %49 = vector.shape_cast %48 : vector<1x1x32xf32> to vector<1x32xf32>
    %50 = vector.broadcast %49 : vector<1x32xf32> to vector<192x32xf32>
    %51 = arith.addf %47, %50 : vector<192x32xf32>
    %52 = vector.extract_strided_slice %51 {offsets = [0, 0], sizes = [128, 32], strides = [1, 1]} : vector<192x32xf32> to vector<128x32xf32>
    %53 = vector.extract_strided_slice %51 {offsets = [64, 0], sizes = [128, 32], strides = [1, 1]} : vector<192x32xf32> to vector<128x32xf32>
    %54 = tpu.concatenate %52, %53 in 1 : vector<128x32xf32>, vector<128x32xf32> -> vector<128x64xf32>
    %c1 = arith.constant 1 : index
    %c0_31 = arith.constant 0 : index
    %c0_32 = arith.constant 0 : index
    %55 = vector.load %arg4[%c1, %c0_31, %c0_32] : memref<4x64x64xf32, #tpu.memory_space<vmem>>, vector<1x64x64xf32>
    %56 = vector.shape_cast %55 : vector<1x64x64xf32> to vector<64x64xf32>
    %cst_33 = arith.constant dense<0.000000e+00> : vector<128x64xf32>
    %57 = tpu.matmul %54, %56, %cst_33 {dimension_numbers = #tpu.dot_dimension_numbers<[1], [0], [0], [1], [0, 0, 1, 1], [], []>} : vector<128x64xf32>, vector<64x64xf32>, vector<128x64xf32> -> vector<128x64xf32>
    %c1_34 = arith.constant 1 : index
    %c0_35 = arith.constant 0 : index
    %c0_36 = arith.constant 0 : index
    %58 = vector.load %arg5[%c1_34, %c0_35, %c0_36] : memref<4x1x64xf32, #tpu.memory_space<vmem>>, vector<1x1x64xf32>
    %59 = vector.shape_cast %58 : vector<1x1x64xf32> to vector<1x64xf32>
    %60 = vector.broadcast %59 : vector<1x64xf32> to vector<128x64xf32>
    %61 = arith.addf %57, %60 : vector<128x64xf32>
    %62 = vector.extract_strided_slice %61 {offsets = [0, 0], sizes = [128, 32], strides = [1, 1]} : vector<128x64xf32> to vector<128x32xf32>
    %63 = math.tanh %62 : vector<128x32xf32>
    %64 = vector.extract_strided_slice %61 {offsets = [0, 32], sizes = [128, 32], strides = [1, 1]} : vector<128x64xf32> to vector<128x32xf32>
    %65 = arith.negf %64 : vector<128x32xf32>
    %66 = math.exp %65 : vector<128x32xf32>
    %cst_37 = arith.constant 1.000000e+00 : f32
    %67 = vector.broadcast %cst_37 : f32 to vector<128x32xf32>
    %68 = arith.addf %67, %66 : vector<128x32xf32>
    %69 = arith.divf %67, %68 : vector<128x32xf32>
    %70 = arith.mulf %63, %69 : vector<128x32xf32>
    %c1_38 = arith.constant 1 : index
    %c0_39 = arith.constant 0 : index
    %c0_40 = arith.constant 0 : index
    %71 = vector.load %arg6[%c1_38, %c0_39, %c0_40] : memref<4x32x96xf32, #tpu.memory_space<vmem>>, vector<1x32x96xf32>
    %72 = vector.shape_cast %71 : vector<1x32x96xf32> to vector<32x96xf32>
    %cst_41 = arith.constant dense<0.000000e+00> : vector<128x96xf32>
    %73 = tpu.matmul %70, %72, %cst_41 {dimension_numbers = #tpu.dot_dimension_numbers<[1], [0], [0], [1], [0, 0, 1, 1], [], []>} : vector<128x32xf32>, vector<32x96xf32>, vector<128x96xf32> -> vector<128x96xf32>
    %74 = vector.extract_strided_slice %73 {offsets = [0, 0], sizes = [128, 64], strides = [1, 1]} : vector<128x96xf32> to vector<128x64xf32>
    %c1_42 = arith.constant 1 : index
    %c0_43 = arith.constant 0 : index
    %c0_44 = arith.constant 0 : index
    %75 = vector.load %arg7[%c1_42, %c0_43, %c0_44] : memref<4x1x64xf32, #tpu.memory_space<vmem>>, vector<1x1x64xf32>
    %76 = vector.shape_cast %75 : vector<1x1x64xf32> to vector<1x64xf32>
    %77 = vector.broadcast %76 : vector<1x64xf32> to vector<128x64xf32>
    %78 = arith.addf %74, %77 : vector<128x64xf32>
    %79 = vector.extract_strided_slice %73 {offsets = [0, 64], sizes = [128, 32], strides = [1, 1]} : vector<128x96xf32> to vector<128x32xf32>
    %80 = vector.extract_strided_slice %34 {offsets = [64, 0], sizes = [128, 64], strides = [1, 1]} : vector<192x64xf32> to vector<128x64xf32>
    %81 = arith.addf %80, %78 : vector<128x64xf32>
    %c0_45 = arith.constant 0 : index
    %c0_46 = arith.constant 0 : index
    %82 = vector.load %arg10[%c0_45, %c0_46] : memref<128x128xf32, #tpu.memory_space<vmem>>, vector<128x128xf32>
    %cst_47 = arith.constant dense<0.000000e+00> : vector<128x32xf32>
    %83 = tpu.matmul %82, %79, %cst_47 {dimension_numbers = #tpu.dot_dimension_numbers<[1], [0], [0], [1], [0, 0, 1, 1], [], []>} : vector<128x128xf32>, vector<128x32xf32>, vector<128x32xf32> -> vector<128x32xf32>
    %c1_48 = arith.constant 1 : index
    %c0_49 = arith.constant 0 : index
    %c0_50 = arith.constant 0 : index
    %84 = vector.load %arg8[%c1_48, %c0_49, %c0_50] : memref<4x1x32xf32, #tpu.memory_space<vmem>>, vector<1x1x32xf32>
    %85 = vector.shape_cast %84 : vector<1x1x32xf32> to vector<1x32xf32>
    %86 = vector.broadcast %85 : vector<1x32xf32> to vector<128x32xf32>
    %87 = arith.addf %83, %86 : vector<128x32xf32>
    %88 = vector.extract_strided_slice %51 {offsets = [64, 0], sizes = [128, 32], strides = [1, 1]} : vector<192x32xf32> to vector<128x32xf32>
    %89 = arith.addf %87, %88 : vector<128x32xf32>
    %c1_51 = arith.constant 1 : index
    %c0_52 = arith.constant 0 : index
    %c0_53 = arith.constant 0 : index
    %90 = vector.load %arg13[%c1_51, %c0_52, %c0_53] : memref<4x1x32xf32, #tpu.memory_space<vmem>>, vector<1x1x32xf32>
    %91 = vector.shape_cast %90 : vector<1x1x32xf32> to vector<1x32xf32>
    %92 = vector.broadcast %91 : vector<1x32xf32> to vector<128x32xf32>
    %93 = arith.mulf %89, %92 : vector<128x32xf32>
    %c1_54 = arith.constant 1 : index
    %c0_55 = arith.constant 0 : index
    %c0_56 = arith.constant 0 : index
    %94 = vector.load %arg14[%c1_54, %c0_55, %c0_56] : memref<4x1x32xf32, #tpu.memory_space<vmem>>, vector<1x1x32xf32>
    %95 = vector.shape_cast %94 : vector<1x1x32xf32> to vector<1x32xf32>
    %96 = vector.broadcast %95 : vector<1x32xf32> to vector<128x32xf32>
    %97 = arith.addf %93, %96 : vector<128x32xf32>
    %98 = vector.extract_strided_slice %97 {offsets = [0, 0], sizes = [96, 32], strides = [1, 1]} : vector<128x32xf32> to vector<96x32xf32>
    %99 = vector.extract_strided_slice %97 {offsets = [32, 0], sizes = [96, 32], strides = [1, 1]} : vector<128x32xf32> to vector<96x32xf32>
    %100 = tpu.concatenate %98, %99 in 1 : vector<96x32xf32>, vector<96x32xf32> -> vector<96x64xf32>
    %c2 = arith.constant 2 : index
    %c0_57 = arith.constant 0 : index
    %c0_58 = arith.constant 0 : index
    %101 = vector.load %arg4[%c2, %c0_57, %c0_58] : memref<4x64x64xf32, #tpu.memory_space<vmem>>, vector<1x64x64xf32>
    %102 = vector.shape_cast %101 : vector<1x64x64xf32> to vector<64x64xf32>
    %cst_59 = arith.constant dense<0.000000e+00> : vector<96x64xf32>
    %103 = tpu.matmul %100, %102, %cst_59 {dimension_numbers = #tpu.dot_dimension_numbers<[1], [0], [0], [1], [0, 0, 1, 1], [], []>} : vector<96x64xf32>, vector<64x64xf32>, vector<96x64xf32> -> vector<96x64xf32>
    %c2_60 = arith.constant 2 : index
    %c0_61 = arith.constant 0 : index
    %c0_62 = arith.constant 0 : index
    %104 = vector.load %arg5[%c2_60, %c0_61, %c0_62] : memref<4x1x64xf32, #tpu.memory_space<vmem>>, vector<1x1x64xf32>
    %105 = vector.shape_cast %104 : vector<1x1x64xf32> to vector<1x64xf32>
    %106 = vector.broadcast %105 : vector<1x64xf32> to vector<96x64xf32>
    %107 = arith.addf %103, %106 : vector<96x64xf32>
    %108 = vector.extract_strided_slice %107 {offsets = [0, 0], sizes = [96, 32], strides = [1, 1]} : vector<96x64xf32> to vector<96x32xf32>
    %109 = math.tanh %108 : vector<96x32xf32>
    %110 = vector.extract_strided_slice %107 {offsets = [0, 32], sizes = [96, 32], strides = [1, 1]} : vector<96x64xf32> to vector<96x32xf32>
    %111 = arith.negf %110 : vector<96x32xf32>
    %112 = math.exp %111 : vector<96x32xf32>
    %cst_63 = arith.constant 1.000000e+00 : f32
    %113 = vector.broadcast %cst_63 : f32 to vector<96x32xf32>
    %114 = arith.addf %113, %112 : vector<96x32xf32>
    %115 = arith.divf %113, %114 : vector<96x32xf32>
    %116 = arith.mulf %109, %115 : vector<96x32xf32>
    %c2_64 = arith.constant 2 : index
    %c0_65 = arith.constant 0 : index
    %c0_66 = arith.constant 0 : index
    %117 = vector.load %arg6[%c2_64, %c0_65, %c0_66] : memref<4x32x96xf32, #tpu.memory_space<vmem>>, vector<1x32x96xf32>
    %118 = vector.shape_cast %117 : vector<1x32x96xf32> to vector<32x96xf32>
    %cst_67 = arith.constant dense<0.000000e+00> : vector<96x96xf32>
    %119 = tpu.matmul %116, %118, %cst_67 {dimension_numbers = #tpu.dot_dimension_numbers<[1], [0], [0], [1], [0, 0, 1, 1], [], []>} : vector<96x32xf32>, vector<32x96xf32>, vector<96x96xf32> -> vector<96x96xf32>
    %120 = vector.extract_strided_slice %119 {offsets = [0, 0], sizes = [96, 64], strides = [1, 1]} : vector<96x96xf32> to vector<96x64xf32>
    %c2_68 = arith.constant 2 : index
    %c0_69 = arith.constant 0 : index
    %c0_70 = arith.constant 0 : index
    %121 = vector.load %arg7[%c2_68, %c0_69, %c0_70] : memref<4x1x64xf32, #tpu.memory_space<vmem>>, vector<1x1x64xf32>
    %122 = vector.shape_cast %121 : vector<1x1x64xf32> to vector<1x64xf32>
    %123 = vector.broadcast %122 : vector<1x64xf32> to vector<96x64xf32>
    %124 = arith.addf %120, %123 : vector<96x64xf32>
    %125 = vector.extract_strided_slice %119 {offsets = [0, 64], sizes = [96, 32], strides = [1, 1]} : vector<96x96xf32> to vector<96x32xf32>
    %126 = vector.extract_strided_slice %81 {offsets = [32, 0], sizes = [96, 64], strides = [1, 1]} : vector<128x64xf32> to vector<96x64xf32>
    %127 = arith.addf %126, %124 : vector<96x64xf32>
    %c0_71 = arith.constant 0 : index
    %c0_72 = arith.constant 0 : index
    %128 = vector.load %arg11[%c0_71, %c0_72] : memref<96x96xf32, #tpu.memory_space<vmem>>, vector<96x96xf32>
    %cst_73 = arith.constant dense<0.000000e+00> : vector<96x32xf32>
    %129 = tpu.matmul %128, %125, %cst_73 {dimension_numbers = #tpu.dot_dimension_numbers<[1], [0], [0], [1], [0, 0, 1, 1], [], []>} : vector<96x96xf32>, vector<96x32xf32>, vector<96x32xf32> -> vector<96x32xf32>
    %c2_74 = arith.constant 2 : index
    %c0_75 = arith.constant 0 : index
    %c0_76 = arith.constant 0 : index
    %130 = vector.load %arg8[%c2_74, %c0_75, %c0_76] : memref<4x1x32xf32, #tpu.memory_space<vmem>>, vector<1x1x32xf32>
    %131 = vector.shape_cast %130 : vector<1x1x32xf32> to vector<1x32xf32>
    %132 = vector.broadcast %131 : vector<1x32xf32> to vector<96x32xf32>
    %133 = arith.addf %129, %132 : vector<96x32xf32>
    %134 = vector.extract_strided_slice %97 {offsets = [32, 0], sizes = [96, 32], strides = [1, 1]} : vector<128x32xf32> to vector<96x32xf32>
    %135 = arith.addf %133, %134 : vector<96x32xf32>
    %c2_77 = arith.constant 2 : index
    %c0_78 = arith.constant 0 : index
    %c0_79 = arith.constant 0 : index
    %136 = vector.load %arg13[%c2_77, %c0_78, %c0_79] : memref<4x1x32xf32, #tpu.memory_space<vmem>>, vector<1x1x32xf32>
    %137 = vector.shape_cast %136 : vector<1x1x32xf32> to vector<1x32xf32>
    %138 = vector.broadcast %137 : vector<1x32xf32> to vector<96x32xf32>
    %139 = arith.mulf %135, %138 : vector<96x32xf32>
    %c2_80 = arith.constant 2 : index
    %c0_81 = arith.constant 0 : index
    %c0_82 = arith.constant 0 : index
    %140 = vector.load %arg14[%c2_80, %c0_81, %c0_82] : memref<4x1x32xf32, #tpu.memory_space<vmem>>, vector<1x1x32xf32>
    %141 = vector.shape_cast %140 : vector<1x1x32xf32> to vector<1x32xf32>
    %142 = vector.broadcast %141 : vector<1x32xf32> to vector<96x32xf32>
    %143 = arith.addf %139, %142 : vector<96x32xf32>
    %144 = vector.extract_strided_slice %143 {offsets = [0, 0], sizes = [32, 32], strides = [1, 1]} : vector<96x32xf32> to vector<32x32xf32>
    %145 = vector.extract_strided_slice %143 {offsets = [64, 0], sizes = [32, 32], strides = [1, 1]} : vector<96x32xf32> to vector<32x32xf32>
    %146 = tpu.concatenate %144, %145 in 1 : vector<32x32xf32>, vector<32x32xf32> -> vector<32x64xf32>
    %c3 = arith.constant 3 : index
    %c0_83 = arith.constant 0 : index
    %c0_84 = arith.constant 0 : index
    %147 = vector.load %arg4[%c3, %c0_83, %c0_84] : memref<4x64x64xf32, #tpu.memory_space<vmem>>, vector<1x64x64xf32>
    %148 = vector.shape_cast %147 : vector<1x64x64xf32> to vector<64x64xf32>
    %cst_85 = arith.constant dense<0.000000e+00> : vector<32x64xf32>
    %149 = tpu.matmul %146, %148, %cst_85 {dimension_numbers = #tpu.dot_dimension_numbers<[1], [0], [0], [1], [0, 0, 1, 1], [], []>} : vector<32x64xf32>, vector<64x64xf32>, vector<32x64xf32> -> vector<32x64xf32>
    %c3_86 = arith.constant 3 : index
    %c0_87 = arith.constant 0 : index
    %c0_88 = arith.constant 0 : index
    %150 = vector.load %arg5[%c3_86, %c0_87, %c0_88] : memref<4x1x64xf32, #tpu.memory_space<vmem>>, vector<1x1x64xf32>
    %151 = vector.shape_cast %150 : vector<1x1x64xf32> to vector<1x64xf32>
    %152 = vector.broadcast %151 : vector<1x64xf32> to vector<32x64xf32>
    %153 = arith.addf %149, %152 : vector<32x64xf32>
    %154 = vector.extract_strided_slice %153 {offsets = [0, 0], sizes = [32, 32], strides = [1, 1]} : vector<32x64xf32> to vector<32x32xf32>
    %155 = math.tanh %154 : vector<32x32xf32>
    %156 = vector.extract_strided_slice %153 {offsets = [0, 32], sizes = [32, 32], strides = [1, 1]} : vector<32x64xf32> to vector<32x32xf32>
    %157 = arith.negf %156 : vector<32x32xf32>
    %158 = math.exp %157 : vector<32x32xf32>
    %cst_89 = arith.constant 1.000000e+00 : f32
    %159 = vector.broadcast %cst_89 : f32 to vector<32x32xf32>
    %160 = arith.addf %159, %158 : vector<32x32xf32>
    %161 = arith.divf %159, %160 : vector<32x32xf32>
    %162 = arith.mulf %155, %161 : vector<32x32xf32>
    %c3_90 = arith.constant 3 : index
    %c0_91 = arith.constant 0 : index
    %c0_92 = arith.constant 0 : index
    %163 = vector.load %arg6[%c3_90, %c0_91, %c0_92] : memref<4x32x96xf32, #tpu.memory_space<vmem>>, vector<1x32x96xf32>
    %164 = vector.shape_cast %163 : vector<1x32x96xf32> to vector<32x96xf32>
    %cst_93 = arith.constant dense<0.000000e+00> : vector<32x96xf32>
    %165 = tpu.matmul %162, %164, %cst_93 {dimension_numbers = #tpu.dot_dimension_numbers<[1], [0], [0], [1], [0, 0, 1, 1], [], []>} : vector<32x32xf32>, vector<32x96xf32>, vector<32x96xf32> -> vector<32x96xf32>
    %166 = vector.extract_strided_slice %165 {offsets = [0, 0], sizes = [32, 64], strides = [1, 1]} : vector<32x96xf32> to vector<32x64xf32>
    %c3_94 = arith.constant 3 : index
    %c0_95 = arith.constant 0 : index
    %c0_96 = arith.constant 0 : index
    %167 = vector.load %arg7[%c3_94, %c0_95, %c0_96] : memref<4x1x64xf32, #tpu.memory_space<vmem>>, vector<1x1x64xf32>
    %168 = vector.shape_cast %167 : vector<1x1x64xf32> to vector<1x64xf32>
    %169 = vector.broadcast %168 : vector<1x64xf32> to vector<32x64xf32>
    %170 = arith.addf %166, %169 : vector<32x64xf32>
    %171 = vector.extract_strided_slice %127 {offsets = [64, 0], sizes = [32, 64], strides = [1, 1]} : vector<96x64xf32> to vector<32x64xf32>
    %172 = arith.addf %171, %170 : vector<32x64xf32>
    %cst_97 = arith.constant 0.000000e+00 : f32
    %173 = vector.broadcast %cst_97 : f32 to vector<32x64xf32>
    %174 = arith.maximumf %172, %173 : vector<32x64xf32>
    %c0_98 = arith.constant 0 : index
    %c0_99 = arith.constant 0 : index
    %175 = vector.load %arg15[%c0_98, %c0_99] : memref<64x128xf32, #tpu.memory_space<vmem>>, vector<64x128xf32>
    %cst_100 = arith.constant dense<0.000000e+00> : vector<32x128xf32>
    %176 = tpu.matmul %174, %175, %cst_100 {dimension_numbers = #tpu.dot_dimension_numbers<[1], [0], [0], [1], [0, 0, 1, 1], [], []>} : vector<32x64xf32>, vector<64x128xf32>, vector<32x128xf32> -> vector<32x128xf32>
    %c0_101 = arith.constant 0 : index
    %c0_102 = arith.constant 0 : index
    %177 = vector.load %arg16[%c0_101, %c0_102] : memref<1x128xf32, #tpu.memory_space<vmem>>, vector<1x128xf32>
    %178 = vector.broadcast %177 : vector<1x128xf32> to vector<32x128xf32>
    %179 = arith.addf %176, %178 : vector<32x128xf32>
    %cst_103 = arith.constant 0.000000e+00 : f32
    %180 = vector.broadcast %cst_103 : f32 to vector<32x128xf32>
    %181 = arith.maximumf %179, %180 : vector<32x128xf32>
    %c0_104 = arith.constant 0 : index
    %c0_105 = arith.constant 0 : index
    %182 = vector.load %arg17[%c0_104, %c0_105] : memref<128x4xf32, #tpu.memory_space<vmem>>, vector<128x4xf32>
    %cst_106 = arith.constant dense<0.000000e+00> : vector<32x4xf32>
    %183 = tpu.matmul %181, %182, %cst_106 {dimension_numbers = #tpu.dot_dimension_numbers<[1], [0], [0], [1], [0, 0, 1, 1], [], []>} : vector<32x128xf32>, vector<128x4xf32>, vector<32x4xf32> -> vector<32x4xf32>
    %c0_107 = arith.constant 0 : index
    %c0_108 = arith.constant 0 : index
    %184 = vector.load %arg18[%c0_107, %c0_108] : memref<1x4xf32, #tpu.memory_space<vmem>>, vector<1x4xf32>
    %185 = vector.broadcast %184 : vector<1x4xf32> to vector<32x4xf32>
    %186 = arith.addf %183, %185 : vector<32x4xf32>
    %c0_109 = arith.constant 0 : index
    %c0_110 = arith.constant 0 : index
    %187 = vector.load %arg19[%c0_109, %c0_110] : memref<32x4xf32, #tpu.memory_space<vmem>>, vector<32x4xf32>
    tpu.vector_store %arg19[%c0_109, %c0_110], %186 {strides = array<i32>} : memref<32x4xf32, #tpu.memory_space<vmem>>, vector<32x4xf32>,
    return
  }
  func.func @transform_0(%arg0: i32) -> (i32, i32) {
    %c0_i32 = arith.constant 0 : i32
    %c0_i32_0 = arith.constant 0 : i32
    %c0_i32_1 = arith.constant 0 : i32
    return %c0_i32, %c0_i32_0 : i32, i32
  }
  func.func @transform_1(%arg0: i32) -> (i32, i32) {
    %c0_i32 = arith.constant 0 : i32
    %c0_i32_0 = arith.constant 0 : i32
    %c0_i32_1 = arith.constant 0 : i32
    return %c0_i32, %c0_i32_0 : i32, i32
  }
  func.func @transform_2(%arg0: i32) -> (i32, i32) {
    %c0_i32 = arith.constant 0 : i32
    %c0_i32_0 = arith.constant 0 : i32
    %c0_i32_1 = arith.constant 0 : i32
    return %c0_i32, %c0_i32_0 : i32, i32
  }
  func.func @transform_3(%arg0: i32) -> (i32, i32, i32) {
    %c0_i32 = arith.constant 0 : i32
    %c0_i32_0 = arith.constant 0 : i32
    %c0_i32_1 = arith.constant 0 : i32
    %c0_i32_2 = arith.constant 0 : i32
    return %c0_i32, %c0_i32_0, %c0_i32_1 : i32, i32, i32
  }
  func.func @transform_4(%arg0: i32) -> (i32, i32, i32) {
    %c0_i32 = arith.constant 0 : i32
    %c0_i32_0 = arith.constant 0 : i32
    %c0_i32_1 = arith.constant 0 : i32
    %c0_i32_2 = arith.constant 0 : i32
    return %c0_i32, %c0_i32_0, %c0_i32_1 : i32, i32, i32
  }
  func.func @transform_5(%arg0: i32) -> (i32, i32, i32) {
    %c0_i32 = arith.constant 0 : i32
    %c0_i32_0 = arith.constant 0 : i32
    %c0_i32_1 = arith.constant 0 : i32
    %c0_i32_2 = arith.constant 0 : i32
    return %c0_i32, %c0_i32_0, %c0_i32_1 : i32, i32, i32
  }
  func.func @transform_6(%arg0: i32) -> (i32, i32, i32) {
    %c0_i32 = arith.constant 0 : i32
    %c0_i32_0 = arith.constant 0 : i32
    %c0_i32_1 = arith.constant 0 : i32
    %c0_i32_2 = arith.constant 0 : i32
    return %c0_i32, %c0_i32_0, %c0_i32_1 : i32, i32, i32
  }
  func.func @transform_7(%arg0: i32) -> (i32, i32, i32) {
    %c0_i32 = arith.constant 0 : i32
    %c0_i32_0 = arith.constant 0 : i32
    %c0_i32_1 = arith.constant 0 : i32
    %c0_i32_2 = arith.constant 0 : i32
    return %c0_i32, %c0_i32_0, %c0_i32_1 : i32, i32, i32
  }
  func.func @transform_8(%arg0: i32) -> (i32, i32) {
    %c0_i32 = arith.constant 0 : i32
    %c0_i32_0 = arith.constant 0 : i32
    %c0_i32_1 = arith.constant 0 : i32
    return %c0_i32, %c0_i32_0 : i32, i32
  }
  func.func @transform_9(%arg0: i32) -> (i32, i32) {
    %c0_i32 = arith.constant 0 : i32
    %c0_i32_0 = arith.constant 0 : i32
    %c0_i32_1 = arith.constant 0 : i32
    return %c0_i32, %c0_i32_0 : i32, i32
  }
  func.func @transform_10(%arg0: i32) -> (i32, i32) {
    %c0_i32 = arith.constant 0 : i32
    %c0_i32_0 = arith.constant 0 : i32
    %c0_i32_1 = arith.constant 0 : i32
    return %c0_i32, %c0_i32_0 : i32, i32
  }
  func.func @transform_11(%arg0: i32) -> (i32, i32) {
    %c0_i32 = arith.constant 0 : i32
    %c0_i32_0 = arith.constant 0 : i32
    %c0_i32_1 = arith.constant 0 : i32
    return %c0_i32, %c0_i32_0 : i32, i32
  }
  func.func @transform_12(%arg0: i32) -> (i32, i32, i32) {
    %c0_i32 = arith.constant 0 : i32
    %c0_i32_0 = arith.constant 0 : i32
    %c0_i32_1 = arith.constant 0 : i32
    %c0_i32_2 = arith.constant 0 : i32
    return %c0_i32, %c0_i32_0, %c0_i32_1 : i32, i32, i32
  }
  func.func @transform_13(%arg0: i32) -> (i32, i32, i32) {
    %c0_i32 = arith.constant 0 : i32
    %c0_i32_0 = arith.constant 0 : i32
    %c0_i32_1 = arith.constant 0 : i32
    %c0_i32_2 = arith.constant 0 : i32
    return %c0_i32, %c0_i32_0, %c0_i32_1 : i32, i32, i32
  }
  func.func @transform_14(%arg0: i32) -> (i32, i32) {
    %c0_i32 = arith.constant 0 : i32
    %c0_i32_0 = arith.constant 0 : i32
    %c0_i32_1 = arith.constant 0 : i32
    return %c0_i32, %c0_i32_0 : i32, i32
  }
  func.func @transform_15(%arg0: i32) -> (i32, i32) {
    %c0_i32 = arith.constant 0 : i32
    %c0_i32_0 = arith.constant 0 : i32
    %c0_i32_1 = arith.constant 0 : i32
    return %c0_i32, %c0_i32_0 : i32, i32
  }
  func.func @transform_16(%arg0: i32) -> (i32, i32) {
    %c0_i32 = arith.constant 0 : i32
    %c0_i32_0 = arith.constant 0 : i32
    %c0_i32_1 = arith.constant 0 : i32
    return %c0_i32, %c0_i32_0 : i32, i32
  }
  func.func @transform_17(%arg0: i32) -> (i32, i32) {
    %c0_i32 = arith.constant 0 : i32
    %c0_i32_0 = arith.constant 0 : i32
    %c0_i32_1 = arith.constant 0 : i32
    return %c0_i32, %c0_i32_0 : i32, i32
  }
  func.func @transform_18(%arg0: i32) -> (i32, i32) {
    %c0_i32 = arith.constant 0 : i32
    %c0_i32_0 = arith.constant 0 : i32
    %c0_i32_1 = arith.constant 0 : i32
    return %c0_i32, %c0_i32_0 : i32, i32
  }
}

</mosaic_0001>

<bundles_post_ra>
// kernel: tpu_custom_call.1
= control target key start
LH: loop header
LB: loop body
LE: loop exit
PB: predicated region body
PF: predicated region fallthrough
CT: control target
= control target key end

     0   :  { %s7828_s0 = inlined_call_operand.vmem [shape: f32[224,1], index: 0, kind: input, shape index: {}]   ;;  %s7829_s1 = inlined_call_operand.hbm [shape: f32[1,32], index: 1, kind: input, shape index: {}]   ;;  %s7830_s2 = inlined_call_operand.hbm [shape: f32[1,32], index: 2, kind: input, shape index: {}]   ;;  %s7831_s3 = inlined_call_operand.hbm [shape: f32[4,64,64], index: 3, kind: input, shape index: {}]   ;;  %s7832_s4 = inlined_call_operand.vmem [shape: f32[4,1,64], index: 4, kind: input, shape index: {}]   ;;  %s7833_s5 = inlined_call_operand.hbm [shape: f32[4,32,96], index: 5, kind: input, shape index: {}]   ;;  %s7834_s6 = inlined_call_operand.hbm [shape: f32[4,1,64], index: 6, kind: input, shape index: {}]   ;;  %s7835_s7 = inlined_call_operand.hbm [shape: f32[4,1,32], index: 7, kind: input, shape index: {}]   ;;  %s7836_s8 = inlined_call_operand.vmem [shape: f32[192,192], index: 8, kind: input, shape index: {}]   ;;  %s7837_s9 = inlined_call_operand.hbm [shape: f32[128,128], index: 9, kind: input, shape index: {}]   ;;  %s7838_s10 = inlined_call_operand.hbm [shape: f32[96,96], index: 10, kind: input, shape index: {}]   ;;  %s7839_s11 = inlined_call_operand.hbm [shape: f32[32,32], index: 11, kind: input, shape index: {}]   ;;  %s7840_s12 = inlined_call_operand.vmem [shape: f32[4,1,32], index: 12, kind: input, shape index: {}]   ;;  %s7841_s13 = inlined_call_operand.vmem [shape: f32[4,1,32], index: 13, kind: input, shape index: {}]   ;;  %s7842_s14 = inlined_call_operand.hbm [shape: f32[64,128], index: 14, kind: input, shape index: {}]   ;;  %s7843_s15 = inlined_call_operand.vmem [shape: f32[1,128], index: 15, kind: input, shape index: {}]   ;;  %s7844_s16 = inlined_call_operand.vmem [shape: f32[128,4], index: 16, kind: input, shape index: {}]   ;;  %s7845_s17 = inlined_call_operand.vmem [shape: f32[1,4], index: 17, kind: input, shape index: {}]   ;;  %s7846_s18 = inlined_call_operand.vmem [shape: f32[32,4], index: 18, kind: output, shape index: {}]  }
   0x1   :  { %7852 = sst [smem:[#allocation24_spill]] %s7828_s0 }
   0x2   :  { %7853 = sst [smem:[#allocation25_spill]] %s7829_s1 }
   0x3   :  { %7854 = sst [smem:[#allocation26_spill]] %s7830_s2 }
   0x4   :  { %7855 = sst [smem:[#allocation27_spill]] %s7846_s18 }
   0x5   :  { %23 = vsyncpa [#allocation3], 0 }
   0x6   :  { %24 = vsyncpa [#allocation5], 0 }
   0x7   :  { %25 = vsyncpa [#allocation8], 0 }
   0x8   :  { %26 = vsyncpa [#allocation11], 0 }
   0x9   :  { %27 = vsyncpa [#allocation14], 0 }
   0xa   :  { %28 = vsyncpa [#allocation17], 0  ;;  %s6112_s27 = smov [#allocation4]   ;;  %s7856_s0 = sld [smem:[#allocation26_spill]] }
   0xb   :  { %s47_s28 = sshll.u32 %s6112_s27, 4  ;;  %s48_s28 = int_to_ptr.vmem [resolvable:$true] %s47_s28 }
  0x10   :  { %s5880_s19 = scalar_lea.hbm %s7856_s0, 16 }
  0x11   :  { %p5881_p0 = scmp.ne.s32.totalorder %s7856_s0, %s5880_s19  ;;  %p5884_p1 = scmp.lt.u32.totalorder %s5880_s19, %s7856_s0 }
  0x13   :  { %p5886_p2 = pnand %p5884_p1, %p5881_p0 }
  0x15   :  { %5889 = shalt.err (!%p5886_p2)
}
  0x16   :  { %s5890_s2 = scalar_lea.vmem %s48_s28, 16  ;;  %s5894_s23 = scalar_lea.vmem %s48_s28, 32 }
  0x17   :  { %p5891_p3 = scmp.ne.s32.totalorder %s48_s28, %s5890_s2  ;;  %p5895_p4 = scmp.lt.s32.totalorder %s48_s28, %s48_s28 }
  0x18   :  { %p5896_p5 = scmp.lt.s32.totalorder %s5894_s23, %s5890_s2 }
  0x1a   :  { %p5897_p6 = por %p5896_p5, %p5895_p4 }
  0x1c   :  { %p5898_p7 = pnand %p5897_p6, %p5891_p3 }
  0x1e   :  { %5901 = shalt.err (!%p5898_p7)
}
  0x1f   :  { %50 = dma.hbm_to_vmem [thread:$0]  %s7856_s0, 16, %s48_s28, [#allocation5]  }
  0x20   :  { %s6113_s26 = smov [#allocation7]   ;;  %s5902_s19 = scalar_lea.hbm %s7833_s5, 2048 }
  0x21   :  { %s70_s27 = sshll.u32 %s6113_s26, 4  ;;  %p5903_p8 = scmp.ne.s32.totalorder %s7833_s5, %s5902_s19  ;;  %s71_s27 = int_to_ptr.vmem [resolvable:$true] %s70_s27 }
  0x22   :  { %p5906_p9 = scmp.lt.u32.totalorder %s5902_s19, %s7833_s5 }
  0x24   :  { %p5908_p10 = pnand %p5906_p9, %p5903_p8 }
  0x26   :  { %5911 = shalt.err (!%p5908_p10)
}
  0x27   :  { %s5912_s2 = scalar_lea.vmem %s71_s27, 2048  ;;  %p5917_p12 = scmp.lt.s32.totalorder %s71_s27, %s71_s27 }
  0x28   :  { %p5913_p11 = scmp.ne.s32.totalorder %s71_s27, %s5912_s2  ;;  %p5918_p13 = scmp.lt.s32.totalorder %s5912_s2, %s5912_s2 }
  0x2a   :  { %p5919_p0 = por %p5918_p13, %p5917_p12 }
  0x2c   :  { %p5920_p1 = pnand %p5919_p0, %p5913_p11 }
  0x2e   :  { %5923 = shalt.err (!%p5920_p1)
}
  0x2f   :  { %s6114_s28 = smov 128   ;;  %s6115_s0 = smov 8  }
  0x30   :  { %76 = dma.hbm_to_vmem [thread:$0]  %s7833_s5, 2048, %s71_s27, [#allocation8], %s6114_s28, %s6114_s28, %s6115_s0  }
  0x31   :  { %s6116_s25 = smov [#allocation10]   ;;  %s6117_s29 = smov [#allocation13]  }
  0x32   :  { %s94_s26 = sshll.u32 %s6116_s25, 4  ;;  %s120_s30 = sshll.u32 %s6117_s29, 4  ;;  %s95_s26 = int_to_ptr.vmem [resolvable:$true] %s94_s26  ;;  %s6253_s30 = int_to_ptr.vmem [resolvable:$true] %s120_s30 }
  0x33   :  { %s5924_s20 = scalar_lea.hbm %s7835_s7, 64 }
  0x34   :  { %p5925_p2 = scmp.ne.s32.totalorder %s7835_s7, %s5924_s20  ;;  %p5928_p3 = scmp.lt.u32.totalorder %s5924_s20, %s7835_s7 }
  0x36   :  { %p5930_p4 = pnand %p5928_p3, %p5925_p2 }
  0x38   :  { %5933 = shalt.err (!%p5930_p4)
}
  0x39   :  { %s5934_s5 = scalar_lea.vmem %s95_s26, 64  ;;  %p5939_p6 = scmp.lt.s32.totalorder %s95_s26, %s95_s26 }
  0x3a   :  { %p5935_p5 = scmp.ne.s32.totalorder %s95_s26, %s5934_s5  ;;  %p5940_p7 = scmp.lt.s32.totalorder %s5934_s5, %s5934_s5 }
  0x3c   :  { %p5941_p8 = por %p5940_p7, %p5939_p6 }
  0x3e   :  { %p5942_p9 = pnand %p5941_p8, %p5935_p5 }
  0x40   :  { %5945 = shalt.err (!%p5942_p9)
}
  0x41   :  { %s7851_s27 = smov 16   ;;  %s6119_s23 = smov 1  }
  0x42   :  { %100 = dma.hbm_to_vmem [thread:$0]  %s7835_s7, 64, %s95_s26, [#allocation11], %s7851_s27, %s7851_s27, %s6119_s23  }
  0x43   :  { %s5946_s19 = scalar_lea.hbm %s7838_s10, 1536 }
  0x44   :  { %p5947_p10 = scmp.ne.s32.totalorder %s7838_s10, %s5946_s19  ;;  %p5950_p11 = scmp.lt.u32.totalorder %s5946_s19, %s7838_s10 }
  0x46   :  { %p5952_p12 = pnand %p5950_p11, %p5947_p10 }
  0x48   :  { %5955 = shalt.err (!%p5952_p12)
}
  0x49   :  { %s5956_s2 = scalar_lea.vmem %s6253_s30, 1536  ;;  %p5961_p0 = scmp.lt.s32.totalorder %s6253_s30, %s6253_s30 }
  0x4a   :  { %p5957_p13 = scmp.ne.s32.totalorder %s6253_s30, %s5956_s2  ;;  %p5962_p1 = scmp.lt.s32.totalorder %s5956_s2, %s5956_s2 }
  0x4c   :  { %p5963_p2 = por %p5962_p1, %p5961_p0 }
  0x4e   :  { %p5964_p3 = pnand %p5963_p2, %p5957_p13 }
  0x50   :  { %5967 = shalt.err (!%p5964_p3)
}
  0x51   :  { %126 = dma.hbm_to_vmem [thread:$0]  %s7838_s10, 1536, %s6253_s30, [#allocation14], %s6114_s28, %s6114_s28, %s6115_s0  }
  0x52   :  { %s6120_s5 = smov [#allocation2]   ;;  %s6121_s25 = smov [#allocation6]  }
  0x53   :  { %s37_s24 = sshll.u32 %s6120_s5, 4  ;;  %s56_s18 = sshll.u32 %s6121_s25, 4  ;;  %s38_s24 = int_to_ptr.vmem [resolvable:$true] %s37_s24  ;;  %s6290_s18 = int_to_ptr.vmem [resolvable:$true] %s56_s18 }
  0x54   :  { %s7857_s1 = sld [smem:[#allocation25_spill]] }
  0x5a   :  { %s5968_s20 = scalar_lea.hbm %s7857_s1, 16 }
  0x5b   :  { %p5969_p4 = scmp.ne.s32.totalorder %s7857_s1, %s5968_s20  ;;  %p5972_p5 = scmp.lt.u32.totalorder %s5968_s20, %s7857_s1 }
  0x5d   :  { %p5974_p6 = pnand %p5972_p5, %p5969_p4 }
  0x5f   :  { %5977 = shalt.err (!%p5974_p6)
}
  0x60   :  { %s5978_s10 = scalar_lea.vmem %s38_s24, 16  ;;  %s5982_s30 = scalar_lea.vmem %s38_s24, 32 }
  0x61   :  { %p5979_p7 = scmp.ne.s32.totalorder %s38_s24, %s5978_s10  ;;  %p5983_p8 = scmp.lt.s32.totalorder %s38_s24, %s38_s24 }
  0x62   :  { %p5984_p9 = scmp.lt.s32.totalorder %s5982_s30, %s5978_s10 }
  0x64   :  { %p5985_p10 = por %p5984_p9, %p5983_p8 }
  0x66   :  { %p5986_p11 = pnand %p5985_p10, %p5979_p7 }
  0x68   :  { %5989 = shalt.err (!%p5986_p11)
}
  0x69   :  { %40 = dma.hbm_to_vmem [thread:$0]  %s7857_s1, 16, %s38_s24, [#allocation3]  }
  0x6a   :  { %s5990_s29 = scalar_lea.hbm %s7831_s3, 4096 }
  0x6b   :  { %p5991_p12 = scmp.ne.s32.totalorder %s7831_s3, %s5990_s29  ;;  %p5994_p13 = scmp.lt.u32.totalorder %s5990_s29, %s7831_s3 }
  0x6d   :  { %p5996_p0 = pnand %p5994_p13, %p5991_p12 }
  0x6f   :  { %5999 = shalt.err (!%p5996_p0)
}
  0x70   :  { %s6000_s22 = scalar_lea.vmem %s6290_s18, 4096  ;;  %p6005_p2 = scmp.lt.s32.totalorder %s6290_s18, %s6290_s18 }
  0x71   :  { %p6001_p1 = scmp.ne.s32.totalorder %s6290_s18, %s6000_s22  ;;  %p6006_p3 = scmp.lt.s32.totalorder %s6000_s22, %s6000_s22 }
  0x73   :  { %p6007_p4 = por %p6006_p3, %p6005_p2 }
  0x75   :  { %p6008_p5 = pnand %p6007_p4, %p6001_p1 }
  0x77   :  { %6011 = shalt.err (!%p6008_p5)
}
  0x78   :  { %62 = dma.hbm_to_vmem [thread:$0]  %s7831_s3, 4096, %s6290_s18, [#allocation5], %s6114_s28, %s6114_s28, %s6115_s0  }
  0x79   :  { %s6122_s2 = smov [#allocation9]   ;;  %s6123_s30 = smov [#allocation12]  }
  0x7a   :  { %s82_s10 = sshll.u32 %s6122_s2, 4  ;;  %s108_s7 = sshll.u32 %s6123_s30, 4  ;;  %s83_s10 = int_to_ptr.vmem [resolvable:$true] %s82_s10  ;;  %s6324_s7 = int_to_ptr.vmem [resolvable:$true] %s108_s7 }
  0x7b   :  { %s6012_s25 = scalar_lea.hbm %s7834_s6, 64 }
  0x7c   :  { %p6013_p6 = scmp.ne.s32.totalorder %s7834_s6, %s6012_s25  ;;  %p6016_p7 = scmp.lt.u32.totalorder %s6012_s25, %s7834_s6 }
  0x7e   :  { %p6018_p8 = pnand %p6016_p7, %p6013_p6 }
  0x80   :  { %6021 = shalt.err (!%p6018_p8)
}
  0x81   :  { %s6022_s3 = scalar_lea.vmem %s83_s10, 64  ;;  %p6027_p10 = scmp.lt.s32.totalorder %s83_s10, %s83_s10 }
  0x82   :  { %p6023_p9 = scmp.ne.s32.totalorder %s83_s10, %s6022_s3  ;;  %p6028_p11 = scmp.lt.s32.totalorder %s6022_s3, %s6022_s3 }
  0x84   :  { %p6029_p12 = por %p6028_p11, %p6027_p10 }
  0x86   :  { %p6030_p13 = pnand %p6029_p12, %p6023_p9 }
  0x88   :  { %6033 = shalt.err (!%p6030_p13)
}
  0x89   :  { %s7858_s18 = smov 16   ;;  %s6034_s2 = scalar_lea.hbm %s7837_s9, 2048 }
  0x8a   :  { %88 = dma.hbm_to_vmem [thread:$0]  %s7834_s6, 64, %s83_s10, [#allocation8], %s7858_s18, %s7858_s18, %s6119_s23  }
  0x8b   :  { %p6035_p0 = scmp.ne.s32.totalorder %s7837_s9, %s6034_s2  ;;  %p6038_p1 = scmp.lt.u32.totalorder %s6034_s2, %s7837_s9 }
  0x8d   :  { %p6040_p2 = pnand %p6038_p1, %p6035_p0 }
  0x8f   :  { %6043 = shalt.err (!%p6040_p2)
}
  0x90   :  { %s6044_s29 = scalar_lea.vmem %s6324_s7, 2048  ;;  %p6049_p4 = scmp.lt.s32.totalorder %s6324_s7, %s6324_s7 }
  0x91   :  { %p6045_p3 = scmp.ne.s32.totalorder %s6324_s7, %s6044_s29  ;;  %p6050_p5 = scmp.lt.s32.totalorder %s6044_s29, %s6044_s29 }
  0x93   :  { %p6051_p6 = por %p6050_p5, %p6049_p4 }
  0x95   :  { %p6052_p7 = pnand %p6051_p6, %p6045_p3 }
  0x97   :  { %6055 = shalt.err (!%p6052_p7)
}
  0x98   :  { %114 = dma.hbm_to_vmem [thread:$0]  %s7837_s9, 2048, %s6324_s7, [#allocation11], %s6114_s28, %s6114_s28, %s6115_s0  }
  0x99   :  { %s6124_s10 = smov [#allocation15]   ;;  %s6125_s19 = smov [#allocation16]  }
  0x9a   :  { %s132_s27 = sshll.u32 %s6124_s10, 4  ;;  %s148_s20 = sshll.u32 %s6125_s19, 4  ;;  %s133_s27 = int_to_ptr.vmem [resolvable:$true] %s132_s27  ;;  %s6361_s20 = int_to_ptr.vmem [resolvable:$true] %s148_s20 }
  0x9b   :  { %s6056_s21 = scalar_lea.hbm %s7839_s11, 512 }
  0x9c   :  { %p6057_p8 = scmp.ne.s32.totalorder %s7839_s11, %s6056_s21  ;;  %p6060_p9 = scmp.lt.u32.totalorder %s6056_s21, %s7839_s11 }
  0x9e   :  { %p6062_p10 = pnand %p6060_p9, %p6057_p8 }
  0xa0   :  { %6065 = shalt.err (!%p6062_p10)
}
  0xa1   :  { %s6066_s9 = scalar_lea.vmem %s133_s27, 512  ;;  %p6071_p12 = scmp.lt.s32.totalorder %s133_s27, %s133_s27 }
  0xa2   :  { %p6067_p11 = scmp.ne.s32.totalorder %s133_s27, %s6066_s9  ;;  %p6072_p13 = scmp.lt.s32.totalorder %s6066_s9, %s6066_s9 }
  0xa4   :  { %p6073_p0 = por %p6072_p13, %p6071_p12 }
  0xa6   :  { %p6074_p1 = pnand %p6073_p0, %p6067_p11 }
  0xa8   :  { %6077 = shalt.err (!%p6074_p1)
}
  0xa9   :  { %138 = dma.hbm_to_vmem [thread:$0]  %s7839_s11, 512, %s133_s27, [#allocation14], %s6114_s28, %s6114_s28, %s6115_s0  }
  0xaa   :  { %s6078_s25 = scalar_lea.hbm %s7842_s14, 1024 }
  0xab   :  { %p6079_p2 = scmp.ne.s32.totalorder %s7842_s14, %s6078_s25  ;;  %p6082_p3 = scmp.lt.u32.totalorder %s6078_s25, %s7842_s14 }
  0xad   :  { %p6084_p4 = pnand %p6082_p3, %p6079_p2 }
  0xaf   :  { %6087 = shalt.err (!%p6084_p4)
}
  0xb0   :  { %s6088_s19 = scalar_lea.vmem %s6361_s20, 1024  ;;  %p6093_p6 = scmp.lt.s32.totalorder %s6361_s20, %s6361_s20 }
  0xb1   :  { %p6089_p5 = scmp.ne.s32.totalorder %s6361_s20, %s6088_s19  ;;  %p6094_p7 = scmp.lt.s32.totalorder %s6088_s19, %s6088_s19 }
  0xb3   :  { %p6095_p8 = por %p6094_p7, %p6093_p6 }
  0xb5   :  { %p6096_p9 = pnand %p6095_p8, %p6089_p5 }
  0xb7   :  { %6099 = shalt.err (!%p6096_p9)
}
  0xb8   :  { %154 = dma.hbm_to_vmem [thread:$0]  %s7842_s14, 1024, %s6361_s20, [#allocation17], %s6114_s28, %s6114_s28, %s6115_s0  }
  0xb9   :  { %6100 = dma.done.wait [#allocation3], 16  }
  0xba   :  { %6101 = vsyncadd [#allocation3], 4294967280 }
  0xbb   :  { %6102 = dma.done.wait [#allocation5], 4112  }
  0xbc   :  { %6103 = vsyncadd [#allocation5], 4294963184 }
  0xbd   :  { %6104 = dma.done.wait [#allocation8], 2112  }
  0xbe   :  { %6105 = vsyncadd [#allocation8], 4294965184 }
  0xbf   :  { %6106 = dma.done.wait [#allocation11], 2112  }
  0xc0   :  { %6107 = vsyncadd [#allocation11], 4294965184 }
  0xc1   :  { %6108 = dma.done.wait [#allocation14], 2048  }
  0xc2   :  { %6109 = vsyncadd [#allocation14], 4294965248 }
  0xc3   :  { %6110 = dma.done.wait [#allocation17], 1024  }
  0xc4   :  { %6111 = vsyncadd [#allocation17], 4294966272  ;;  %v6126_v0 = vmov 0   ;;  %s7859_s21 = sld [smem:[#allocation24_spill]]  ;;  %v550_v29 = vld [vmem:[#allocation6] sm:$0xff]  ;;  %v551_v30 = vld [vmem:[#allocation6 + $0x8] sm:$0xff] }
  0xc5   :  { %5413 = vset.pattern.permute.xlu1 %v6126_v0  ;;  %5412 = vset.pattern.permute.xlu0 %v6126_v0  ;;  %v552_v31 = vld [vmem:[#allocation6 + $0x10] sm:$0xff]  ;;  %v5149_v32 = vpack.c.bf16 %v551_v30, %v550_v29  ;;  %v553_v33 = vld [vmem:[#allocation6 + $0x18] sm:$0xff]  ;;  %v554_v35 = vld [vmem:[#allocation6 + $0x20] sm:$0xff]  ;;  %vm525_vm0 = vcmask 261120   ;;  %vm565_vm1 = vcmask 523264   ;;  %s6128_s30 = smov 96  }
  0xc6   :  { %v5153_v34 = vpack.c.bf16 %v553_v33, %v552_v31  ;;  %v555_v36 = vld [vmem:[#allocation6 + $0x28] sm:$0xff]  ;;  %v556_v38 = vld [vmem:[#allocation6 + $0x30] sm:$0xff]  ;;  %v557_v39 = vld [vmem:[#allocation6 + $0x38] sm:$0xff]  ;;  %s6130_s26 = smov 64   ;;  %vm3502_vm2 = vcmask 785408   ;;  %vm4228_vm3 = vcmask 31744  }
  0xc7   :  { %5150 = vmatprep.subr.bf16.mxu0 %v5149_v32  ;;  %5385 = vmatprep.subr.bf16.mxu1 %v5149_v32  ;;  %v5157_v37 = vpack.c.bf16 %v555_v36, %v554_v35  ;;  %v5161_v40 = vpack.c.bf16 %v557_v39, %v556_v38  ;;  %v6482_v41 = vld [vmem:[#allocation2] ss:$0 sm:$0xff]  ;;  %v6484_v42 = vld [vmem:[#allocation4] ss:$0 sm:$0xff]  ;;  %s7860_s18 = sld [smem:[#allocation27_spill]] }
  0xc8   :  { %5152 = vmatpush3.bf16.msra.mxu0 %v5149_v32  ;;  %5389 = vmatpush3.bf16.msra.mxu1 %v5149_v32 }
  0xc9   :  { %5154 = vmatprep.subr.bf16.mxu0 %v5153_v34  ;;  %5386 = vmatprep.subr.bf16.mxu1 %v5153_v34 }
  0xca   :  { %v197_v1 = vld [vmem:[%s7859_s21 + $0x30] sm:$0xff]  ;;  %v195_v2 = vld [vmem:[%s7859_s21 + $0x20] sm:$0xff]  ;;  %v198_v3 = vld [vmem:[%s7859_s21 + $0x38] sm:$0xff] }
  0xcb   :  { %252 = vperm.xlu1 %5413, %v197_v1   ;;  %242 = vperm.xlu0 %5412, %v195_v2   ;;  %v196_v4 = vld [vmem:[%s7859_s21 + $0x28] sm:$0xff]  ;;  %v199_v6 = vld [vmem:[%s7859_s21 + $0x40] sm:$0xff]  ;;  %v202_v7 = vld [vmem:[%s7859_s21 + $0x58] sm:$0xff] }
  0xcc   :  { %v200_v5 = vld [vmem:[%s7859_s21 + $0x48] sm:$0xff]  ;;  %v201_v8 = vld [vmem:[%s7859_s21 + $0x50] sm:$0xff]  ;;  %v203_v10 = vld [vmem:[%s7859_s21 + $0x60] sm:$0xff]  ;;  %5156 = vmatpush3.bf16.msra.mxu0 %v5153_v34  ;;  %5390 = vmatpush3.bf16.msra.mxu1 %v5153_v34 }
  0xcd   :  { %v204_v9 = vld [vmem:[%s7859_s21 + $0x68] sm:$0xff]  ;;  %v206_v11 = vld [vmem:[%s7859_s21 + $0x78] sm:$0xff]  ;;  %v205_v12 = vld [vmem:[%s7859_s21 + $0x70] sm:$0xff]  ;;  %5158 = vmatprep.subr.bf16.mxu0 %v5157_v37  ;;  %5387 = vmatprep.subr.bf16.mxu1 %v5157_v37 }
  0xce   :  { %v208_v13 = vld [vmem:[%s7859_s21 + $0x88] sm:$0xff]  ;;  %v207_v14 = vld [vmem:[%s7859_s21 + $0x80] sm:$0xff]  ;;  %v210_v15 = vld [vmem:[%s7859_s21 + $0x98] sm:$0xff] }
  0xcf   :  { %257 = vperm.xlu1 %5413, %v198_v3   ;;  %247 = vperm.xlu0 %5412, %v196_v4   ;;  %v209_v16 = vld [vmem:[%s7859_s21 + $0x90] sm:$0xff]  ;;  %v212_v17 = vld [vmem:[%s7859_s21 + $0xa8] sm:$0xff]  ;;  %v211_v18 = vld [vmem:[%s7859_s21 + $0xa0] sm:$0xff] }
  0xd0   :  { %v214_v19 = vld [vmem:[%s7859_s21 + $0xb8] sm:$0xff]  ;;  %v213_v20 = vld [vmem:[%s7859_s21 + $0xb0] sm:$0xff]  ;;  %v216_v21 = vld [vmem:[%s7859_s21 + $0xc8] sm:$0xff]  ;;  %5160 = vmatpush3.bf16.msra.mxu0 %v5157_v37  ;;  %5391 = vmatpush3.bf16.msra.mxu1 %v5157_v37 }
  0xd1   :  { %v215_v22 = vld [vmem:[%s7859_s21 + $0xc0] sm:$0xff]  ;;  %v218_v23 = vld [vmem:[%s7859_s21 + $0xd8] sm:$0xff]  ;;  %v217_v24 = vld [vmem:[%s7859_s21 + $0xd0] sm:$0xff]  ;;  %5162 = vmatprep.subr.bf16.mxu0 %v5161_v40  ;;  %5388 = vmatprep.subr.bf16.mxu1 %v5161_v40 }
  0xd2   :  { %v192_v25 = vld [vmem:[%s7859_s21 + $0x8] sm:$0xff]  ;;  %v191_v26 = vld [vmem:[%s7859_s21] sm:$0xff]  ;;  %v194_v27 = vld [vmem:[%s7859_s21 + $0x18] sm:$0xff] }
  0xd3   :  { %267 = vperm.xlu1 %5413, %v200_v5   ;;  %262 = vperm.xlu0 %5412, %v199_v6   ;;  %v193_v28 = vld [vmem:[%s7859_s21 + $0x10] sm:$0xff]  ;;  %s6127_s21 = smov 32  }
  0xd4   :  { %5164 = vmatpush3.bf16.msra.mxu0 %v5161_v40  ;;  %5392 = vmatpush3.bf16.msra.mxu1 %v5161_v40 }
  0xd7   :  { %277 = vperm.xlu1 %5413, %v202_v7   ;;  %272 = vperm.xlu0 %5412, %v201_v8  }
  0xdb   :  { %287 = vperm.xlu1 %5413, %v204_v9   ;;  %282 = vperm.xlu0 %5412, %v203_v10  }
  0xdf   :  { %297 = vperm.xlu1 %5413, %v206_v11   ;;  %292 = vperm.xlu0 %5412, %v205_v12  }
  0xe3   :  { %307 = vperm.xlu1 %5413, %v208_v13   ;;  %302 = vperm.xlu0 %5412, %v207_v14  }
  0xe7   :  { %317 = vperm.xlu1 %5413, %v210_v15   ;;  %312 = vperm.xlu0 %5412, %v209_v16  }
  0xeb   :  { %327 = vperm.xlu1 %5413, %v212_v17   ;;  %322 = vperm.xlu0 %5412, %v211_v18  }
  0xef   :  { %337 = vperm.xlu1 %5413, %v214_v19   ;;  %332 = vperm.xlu0 %5412, %v213_v20  }
  0xf3   :  { %347 = vperm.xlu1 %5413, %v216_v21   ;;  %342 = vperm.xlu0 %5412, %v215_v22  }
  0xf7   :  { %357 = vperm.xlu1 %5413, %v218_v23   ;;  %352 = vperm.xlu0 %5412, %v217_v24  }
  0xfb   :  { %227 = vperm.xlu1 %5413, %v192_v25   ;;  %222 = vperm.xlu0 %5412, %v191_v26  }
  0xff   :  { %237 = vperm.xlu1 %5413, %v194_v27   ;;  %232 = vperm.xlu0 %5412, %v193_v28  }
 0x14a   :  { %v253_v43 = vpop.permute.xlu1 %252  ;;  %v243_v44 = vpop.permute.xlu0 %242 }
 0x14b   :  { %v372_v45 = vmul.f32 %v6482_v41, %v253_v43  ;;  %v370_v46 = vmul.f32 %v6482_v41, %v243_v44 }
 0x14d   :  { %v6489_v47 = vadd.f32 %v6484_v42, %v370_v46  ;;  %v6492_v50 = vadd.f32 %v6484_v42, %v372_v45 }
 0x14e   :  { %v258_v48 = vpop.permute.xlu1 %257  ;;  %v248_v49 = vpop.permute.xlu0 %247 }
 0x14f   :  { %v371_v51 = vmul.f32 %v6482_v41, %v248_v49  ;;  %453 = vrot.lane.b32.xlu0 %v6489_v47, %s6127_s21  ;;  %v373_v52 = vmul.f32 %v6482_v41, %v258_v48 }
 0x151   :  { %v6499_v53 = vadd.f32 %v6484_v42, %v371_v51  ;;  %v6507_v57 = vadd.f32 %v6484_v42, %v373_v52 }
 0x152   :  { %v268_v54 = vpop.permute.xlu1 %267  ;;  %v263_v55 = vpop.permute.xlu0 %262 }
 0x153   :  { %v374_v56 = vmul.f32 %v6482_v41, %v263_v55  ;;  %455 = vrot.lane.b32.xlu1 %v6499_v53, %s6127_s21  ;;  %457 = vrot.lane.b32.xlu0 %v6492_v50, %s6127_s21  ;;  %v375_v58 = vmul.f32 %v6482_v41, %v268_v54 }
 0x155   :  { %v6511_v59 = vadd.f32 %v6484_v42, %v374_v56  ;;  %v6519_v63 = vadd.f32 %v6484_v42, %v375_v58 }
 0x156   :  { %v278_v60 = vpop.permute.xlu1 %277  ;;  %v273_v61 = vpop.permute.xlu0 %272 }
 0x157   :  { %v376_v62 = vmul.f32 %v6482_v41, %v273_v61  ;;  %459 = vrot.lane.b32.xlu1 %v6507_v57, %s6127_s21  ;;  %461 = vrot.lane.b32.xlu0 %v6511_v59, %s6127_s21  ;;  %v377_v0 = vmul.f32 %v6482_v41, %v278_v60 }
 0x159   :  { %v6523_v1 = vadd.f32 %v6484_v42, %v376_v62  ;;  %v6531_v5 = vadd.f32 %v6484_v42, %v377_v0 }
 0x15a   :  { %v288_v2 = vpop.permute.xlu1 %287  ;;  %v283_v3 = vpop.permute.xlu0 %282 }
 0x15b   :  { %v378_v4 = vmul.f32 %v6482_v41, %v283_v3  ;;  %463 = vrot.lane.b32.xlu1 %v6519_v63, %s6127_s21  ;;  %465 = vrot.lane.b32.xlu0 %v6523_v1, %s6127_s21  ;;  %v379_v6 = vmul.f32 %v6482_v41, %v288_v2 }
 0x15d   :  { %v6535_v7 = vadd.f32 %v6484_v42, %v378_v4  ;;  %v6543_v11 = vadd.f32 %v6484_v42, %v379_v6 }
 0x15e   :  { %v298_v8 = vpop.permute.xlu1 %297  ;;  %v293_v9 = vpop.permute.xlu0 %292 }
 0x15f   :  { %v380_v10 = vmul.f32 %v6482_v41, %v293_v9  ;;  %467 = vrot.lane.b32.xlu1 %v6531_v5, %s6127_s21  ;;  %469 = vrot.lane.b32.xlu0 %v6535_v7, %s6127_s21  ;;  %v381_v12 = vmul.f32 %v6482_v41, %v298_v8 }
 0x161   :  { %v6547_v13 = vadd.f32 %v6484_v42, %v380_v10  ;;  %v6555_v17 = vadd.f32 %v6484_v42, %v381_v12 }
 0x162   :  { %v308_v14 = vpop.permute.xlu1 %307  ;;  %v303_v15 = vpop.permute.xlu0 %302 }
 0x163   :  { %v382_v16 = vmul.f32 %v6482_v41, %v303_v15  ;;  %471 = vrot.lane.b32.xlu1 %v6543_v11, %s6127_s21  ;;  %473 = vrot.lane.b32.xlu0 %v6547_v13, %s6127_s21  ;;  %v383_v18 = vmul.f32 %v6482_v41, %v308_v14 }
 0x165   :  { %v6559_v19 = vadd.f32 %v6484_v42, %v382_v16  ;;  %v6567_v23 = vadd.f32 %v6484_v42, %v383_v18 }
 0x166   :  { %v318_v20 = vpop.permute.xlu1 %317  ;;  %v313_v21 = vpop.permute.xlu0 %312 }
 0x167   :  { %v384_v22 = vmul.f32 %v6482_v41, %v313_v21  ;;  %475 = vrot.lane.b32.xlu1 %v6555_v17, %s6127_s21  ;;  %477 = vrot.lane.b32.xlu0 %v6559_v19, %s6127_s21  ;;  %v385_v24 = vmul.f32 %v6482_v41, %v318_v20 }
 0x169   :  { %v6571_v25 = vadd.f32 %v6484_v42, %v384_v22  ;;  %v6579_v29 = vadd.f32 %v6484_v42, %v385_v24 }
 0x16a   :  { %v328_v26 = vpop.permute.xlu1 %327  ;;  %v323_v27 = vpop.permute.xlu0 %322 }
 0x16b   :  { %v386_v28 = vmul.f32 %v6482_v41, %v323_v27  ;;  %479 = vrot.lane.b32.xlu1 %v6567_v23, %s6127_s21  ;;  %481 = vrot.lane.b32.xlu0 %v6571_v25, %s6127_s21  ;;  %v387_v30 = vmul.f32 %v6482_v41, %v328_v26 }
 0x16d   :  { %v6583_v31 = vadd.f32 %v6484_v42, %v386_v28  ;;  %v6591_v35 = vadd.f32 %v6484_v42, %v387_v30 }
 0x16e   :  { %v338_v32 = vpop.permute.xlu1 %337  ;;  %v333_v33 = vpop.permute.xlu0 %332 }
 0x16f   :  { %v388_v34 = vmul.f32 %v6482_v41, %v333_v33  ;;  %483 = vrot.lane.b32.xlu1 %v6579_v29, %s6127_s21  ;;  %485 = vrot.lane.b32.xlu0 %v6583_v31, %s6127_s21  ;;  %v389_v36 = vmul.f32 %v6482_v41, %v338_v32 }
 0x171   :  { %v6595_v37 = vadd.f32 %v6484_v42, %v388_v34  ;;  %v6603_v43 = vadd.f32 %v6484_v42, %v389_v36 }
 0x172   :  { %v348_v38 = vpop.permute.xlu1 %347  ;;  %v343_v39 = vpop.permute.xlu0 %342 }
 0x173   :  { %v390_v40 = vmul.f32 %v6482_v41, %v343_v39  ;;  %487 = vrot.lane.b32.xlu1 %v6591_v35, %s6127_s21  ;;  %489 = vrot.lane.b32.xlu0 %v6595_v37, %s6127_s21  ;;  %v391_v44 = vmul.f32 %v6482_v41, %v348_v38 }
 0x175   :  { %v6607_v45 = vadd.f32 %v6484_v42, %v390_v40  ;;  %v6615_v51 = vadd.f32 %v6484_v42, %v391_v44 }
 0x176   :  { %v358_v46 = vpop.permute.xlu1 %357  ;;  %v353_v48 = vpop.permute.xlu0 %352 }
 0x177   :  { %v392_v49 = vmul.f32 %v6482_v41, %v353_v48  ;;  %491 = vrot.lane.b32.xlu1 %v6603_v43, %s6127_s21  ;;  %493 = vrot.lane.b32.xlu0 %v6607_v45, %s6127_s21  ;;  %v393_v52 = vmul.f32 %v6482_v41, %v358_v46 }
 0x179   :  { %v6619_v54 = vadd.f32 %v6484_v42, %v392_v49  ;;  %v6628_v61 = vadd.f32 %v6484_v42, %v393_v52 }
 0x17a   :  { %v228_v55 = vpop.permute.xlu1 %227  ;;  %v223_v56 = vpop.permute.xlu0 %222 }
 0x17b   :  { %v367_v58 = vmul.f32 %v6482_v41, %v228_v55  ;;  %v366_v60 = vmul.f32 %v6482_v41, %v223_v56  ;;  %495 = vrot.lane.b32.xlu1 %v6615_v51, %s6127_s21  ;;  %497 = vrot.lane.b32.xlu0 %v6619_v54, %s6127_s21 }
 0x17d   :  { %v402_v62 = vadd.f32 %v6484_v42, %v367_v58  ;;  %v401_v0 = vadd.f32 %v6484_v42, %v366_v60 }
 0x17e   :  { %v238_v2 = vpop.permute.xlu1 %237  ;;  %v233_v3 = vpop.permute.xlu0 %232 }
 0x17f   :  { %v369_v4 = vmul.f32 %v6482_v41, %v238_v2  ;;  %v368_v6 = vmul.f32 %v6482_v41, %v233_v3  ;;  %499 = vrot.lane.b32.xlu1 %v6628_v61, %s6127_s21 }
 0x181   :  { %v404_v8 = vadd.f32 %v6484_v42, %v369_v4  ;;  %v403_v9 = vadd.f32 %v6484_v42, %v368_v6 }
 0x1c1   :  { %v454_v10 = vpop.permute.xlu0 %453 }
 0x1c2   :  { %v526_v12 = vsel %vm525_vm0, %v401_v0, %v454_v10 }
 0x1c3   :  { %4743 = vmatprep.mubr.msk.f32.mxu0 %vm565_vm1, %v526_v12 }
 0x1c5   :  { %v456_v14 = vpop.permute.xlu1 %455  ;;  %v458_v15 = vpop.permute.xlu0 %457 }
 0x1c6   :  { %v527_v16 = vsel %vm525_vm0, %v402_v62, %v456_v14  ;;  %v528_v41 = vsel %vm525_vm0, %v403_v9, %v458_v15 }
 0x1c7   :  { %4744 = vmatmul.mubr.msk.f32.vlgmr.msra.gmra.mrb[0].mxu0 %vm565_vm1, %v527_v16 }
 0x1c8   :  { %4746 = vmatprep.mubr.msk.f32.mxu0 %vm565_vm1, %v528_v41 }
 0x1c9   :  { %v460_v18 = vpop.permute.xlu1 %459  ;;  %v462_v20 = vpop.permute.xlu0 %461 }
 0x1ca   :  { %v529_v42 = vsel %vm525_vm0, %v404_v8, %v460_v18  ;;  %v530_v21 = vsel %vm525_vm0, %v6489_v47, %v462_v20 }
 0x1cb   :  { %4747 = vmatmul.mubr.msk.f32.gmra.mrb[2].mxu0 %vm565_vm1, %v529_v42  ;;  %v1111_v42 = vld [vmem:[#allocation7] sm:$0xff] }
 0x1cc   :  { %4749 = vmatprep.mubr.msk.f32.mxu0 %vm565_vm1, %v530_v21  ;;  %v1112_v21 = vld [vmem:[#allocation7 + $0x8] sm:$0xff] }
 0x1cd   :  { %v464_v22 = vpop.permute.xlu1 %463  ;;  %v466_v24 = vpop.permute.xlu0 %465 }
 0x1ce   :  { %v531_v26 = vsel %vm525_vm0, %v6499_v53, %v464_v22  ;;  %v532_v27 = vsel %vm525_vm0, %v6492_v50, %v466_v24  ;;  %v5165_v22 = vpack.c.bf16 %v1112_v21, %v1111_v42  ;;  %v6709_v24 = vld [vmem:[%s7832_s4] ss:$0 sm:$0xff] }
 0x1cf   :  { %4750 = vmatmul.mubr.msk.f32.gmra.mrb[4].mxu0 %vm565_vm1, %v531_v26 }
 0x1d0   :  { %4752 = vmatprep.mubr.msk.f32.mxu0 %vm565_vm1, %v532_v27  ;;  %5166 = vmatprep.subr.bf16.mxu1 %v5165_v22 }
 0x1d1   :  { %v468_v28 = vpop.permute.xlu1 %467  ;;  %v470_v30 = vpop.permute.xlu0 %469 }
 0x1d2   :  { %v533_v32 = vsel %vm525_vm0, %v6507_v57, %v468_v28  ;;  %v534_v33 = vsel %vm525_vm0, %v6511_v59, %v470_v30 }
 0x1d3   :  { %4753 = vmatmul.mubr.msk.f32.gmra.mrb[6].mxu0 %vm565_vm1, %v533_v32 }
 0x1d4   :  { %4755 = vmatprep.mubr.msk.f32.mxu0 %vm565_vm1, %v534_v33 }
 0x1d5   :  { %v472_v34 = vpop.permute.xlu1 %471  ;;  %v474_v36 = vpop.permute.xlu0 %473 }
 0x1d6   :  { %v535_v38 = vsel %vm525_vm0, %v6519_v63, %v472_v34  ;;  %v536_v39 = vsel %vm525_vm0, %v6523_v1, %v474_v36 }
 0x1d7   :  { %4756 = vmatmul.mubr.msk.f32.gmra.mrb[8].mxu0 %vm565_vm1, %v535_v38 }
 0x1d8   :  { %4758 = vmatprep.mubr.msk.f32.mxu0 %vm565_vm1, %v536_v39 }
 0x1d9   :  { %v476_v40 = vpop.permute.xlu1 %475  ;;  %v478_v44 = vpop.permute.xlu0 %477 }
 0x1da   :  { %v537_v46 = vsel %vm525_vm0, %v6531_v5, %v476_v40  ;;  %v538_v48 = vsel %vm525_vm0, %v6535_v7, %v478_v44 }
 0x1db   :  { %4759 = vmatmul.mubr.msk.f32.gmra.mrb[10].mxu0 %vm565_vm1, %v537_v46 }
 0x1dc   :  { %4761 = vmatprep.mubr.msk.f32.mxu0 %vm565_vm1, %v538_v48 }
 0x1dd   :  { %v480_v49 = vpop.permute.xlu1 %479  ;;  %v482_v52 = vpop.permute.xlu0 %481 }
 0x1de   :  { %v539_v55 = vsel %vm525_vm0, %v6543_v11, %v480_v49  ;;  %v540_v56 = vsel %vm525_vm0, %v6547_v13, %v482_v52 }
 0x1df   :  { %4762 = vmatmul.mubr.msk.f32.gmra.mrb[12].mxu0 %vm565_vm1, %v539_v55 }
 0x1e0   :  { %4764 = vmatprep.mubr.msk.f32.mxu0 %vm565_vm1, %v540_v56 }
 0x1e1   :  { %v484_v58 = vpop.permute.xlu1 %483  ;;  %v486_v60 = vpop.permute.xlu0 %485 }
 0x1e2   :  { %v541_v62 = vsel %vm525_vm0, %v6555_v17, %v484_v58  ;;  %v542_v0 = vsel %vm525_vm0, %v6559_v19, %v486_v60 }
 0x1e3   :  { %4765 = vmatmul.mubr.msk.f32.gmra.mrb[14].mxu0 %vm565_vm1, %v541_v62 }
 0x1e4   :  { %4767 = vmatprep.mubr.msk.f32.mxu0 %vm565_vm1, %v542_v0 }
 0x1e5   :  { %v488_v2 = vpop.permute.xlu1 %487  ;;  %v490_v3 = vpop.permute.xlu0 %489 }
 0x1e6   :  { %v543_v4 = vsel %vm525_vm0, %v6567_v23, %v488_v2  ;;  %v544_v6 = vsel %vm525_vm0, %v6571_v25, %v490_v3 }
 0x1e7   :  { %4768 = vmatmul.mubr.msk.f32.gmra.mrb[16].mxu0 %vm565_vm1, %v543_v4 }
 0x1e8   :  { %4770 = vmatprep.mubr.msk.f32.mxu0 %vm565_vm1, %v544_v6 }
 0x1e9   :  { %v492_v8 = vpop.permute.xlu1 %491  ;;  %v494_v9 = vpop.permute.xlu0 %493 }
 0x1ea   :  { %v545_v10 = vsel %vm525_vm0, %v6579_v29, %v492_v8  ;;  %v546_v12 = vsel %vm525_vm0, %v6583_v31, %v494_v9 }
 0x1eb   :  { %4771 = vmatmul.mubr.msk.f32.gmra.mrb[18].mxu0 %vm565_vm1, %v545_v10  ;;  %4773 = vmatprep.mubr.msk.f32.mxu1 %vm565_vm1, %v546_v12  ;;  %v1113_v10 = vld [vmem:[#allocation7 + $0x10] sm:$0xff]  ;;  %v1114_v12 = vld [vmem:[#allocation7 + $0x18] sm:$0xff] }
 0x1ed   :  { %v496_v14 = vpop.permute.xlu1 %495  ;;  %v498_v15 = vpop.permute.xlu0 %497 }
 0x1ee   :  { %v547_v16 = vsel %vm525_vm0, %v6591_v35, %v496_v14  ;;  %v548_v41 = vsel %vm525_vm0, %v6595_v37, %v498_v15 }
 0x1ef   :  { %4774 = vmatmul.mubr.msk.f32.vlgmr.msra.gmra.mrb[0].mxu1 %vm565_vm1, %v547_v16 }
 0x1f0   :  { %4776 = vmatprep.mubr.msk.f32.mxu1 %vm565_vm1, %v548_v41  ;;  %5168 = vmatpush3.bf16.msra.mxu1 %v5165_v22  ;;  %v5169_v41 = vpack.c.bf16 %v1114_v12, %v1113_v10 }
 0x1f1   :  { %v500_v18 = vpop.permute.xlu1 %499 }
 0x1f2   :  { %v549_v20 = vsel %vm525_vm0, %v6603_v43, %v500_v18  ;;  %5170 = vmatprep.subr.bf16.mxu1 %v5169_v41 }
 0x1f3   :  { %4777 = vmatmul.mubr.msk.f32.gmra.mrb[2].mxu1 %vm565_vm1, %v549_v20 }
 0x1f4   :  { %5172 = vmatpush3.bf16.msra.mxu1 %v5169_v41 }
 0x29a   :  { %v4745_v26 = vpop.f32.mrb[0].mxu0 }
 0x29b   :  { %v6712_v27 = vadd.f32 %v4745_v26, %v6709_v24  ;;  %v704_v28 = vpop.f32.mrb[1].mxu0 }
 0x29c   :  { %v6715_v30 = vadd.f32 %v6709_v24, %v704_v28 }
 0x29d   :  { %v4271_v32 = vmul.f32 -1.442695, %v6712_v27 }
 0x29e   :  { %v4270_v33 = vmul.f32 -1.442695, %v6715_v30  ;;  %v4748_v34 = vpop.f32.mrb[2].mxu0 }
 0x29f   :  { %5544 = vpow2.f32 %v4271_v32  ;;  %v6720_v36 = vadd.f32 %v4748_v34, %v6709_v24  ;;  %v714_v38 = vpop.f32.mrb[3].mxu0 }
 0x2a0   :  { %5546 = vpow2.f32 %v4270_v33  ;;  %v6723_v39 = vadd.f32 %v6709_v24, %v714_v38 }
 0x2a1   :  { %v4273_v40 = vmul.f32 -1.442695, %v6720_v36 }
 0x2a2   :  { %v4272_v44 = vmul.f32 -1.442695, %v6723_v39  ;;  %v4751_v46 = vpop.f32.mrb[4].mxu0 }
 0x2a3   :  { %5548 = vpow2.f32 %v4273_v40  ;;  %v6728_v48 = vadd.f32 %v4751_v46, %v6709_v24  ;;  %v724_v49 = vpop.f32.mrb[5].mxu0 }
 0x2a4   :  { %5550 = vpow2.f32 %v4272_v44  ;;  %v6731_v52 = vadd.f32 %v6709_v24, %v724_v49 }
 0x2a5   :  { %v4275_v55 = vmul.f32 -1.442695, %v6728_v48 }
 0x2a6   :  { %v4274_v56 = vmul.f32 -1.442695, %v6731_v52  ;;  %v4754_v58 = vpop.f32.mrb[6].mxu0 }
 0x2a7   :  { %5552 = vpow2.f32 %v4275_v55  ;;  %v6736_v60 = vadd.f32 %v4754_v58, %v6709_v24  ;;  %v734_v62 = vpop.f32.mrb[7].mxu0 }
 0x2a8   :  { %5554 = vpow2.f32 %v4274_v56  ;;  %v6739_v0 = vadd.f32 %v6709_v24, %v734_v62 }
 0x2a9   :  { %v5545_v2 = vpop.eup %5544  ;;  %v4277_v3 = vmul.f32 -1.442695, %v6736_v60 }
 0x2aa   :  { %v5547_v4 = vpop.eup %5546  ;;  %v920_v6 = vadd.f32 1.0, %v5545_v2  ;;  %v4276_v8 = vmul.f32 -1.442695, %v6739_v0  ;;  %v4757_v9 = vpop.f32.mrb[8].mxu0 }
 0x2ab   :  { %v919_v14 = vadd.f32 1.0, %v5547_v4  ;;  %5556 = vpow2.f32 %v4277_v3  ;;  %v6744_v15 = vadd.f32 %v4757_v9, %v6709_v24  ;;  %v744_v16 = vpop.f32.mrb[9].mxu0 }
 0x2ac   :  { %5558 = vrcp.f32 %v920_v6  ;;  %v6748_v22 = vadd.f32 %v6709_v24, %v744_v16 }
 0x2ad   :  { %v5549_v18 = vpop.eup %5548  ;;  %5560 = vrcp.f32 %v919_v14  ;;  %v4279_v21 = vmul.f32 -1.442695, %v6744_v15 }
 0x2ae   :  { %v5551_v20 = vpop.eup %5550  ;;  %v922_v42 = vadd.f32 1.0, %v5549_v18  ;;  %5562 = vpow2.f32 %v4276_v8  ;;  %v4760_v26 = vpop.f32.mrb[10].mxu0  ;;  %v4278_v44 = vmul.f32 -1.442695, %v6748_v22 }
 0x2af   :  { %v921_v28 = vadd.f32 1.0, %v5551_v20  ;;  %v754_v32 = vpop.f32.mrb[11].mxu0  ;;  %v6751_v34 = vadd.f32 %v4760_v26, %v6709_v24 }
 0x2b0   :  { %5564 = vrcp.f32 %v922_v42  ;;  %v6755_v56 = vadd.f32 %v6709_v24, %v754_v32 }
 0x2b1   :  { %v5553_v33 = vpop.eup %5552  ;;  %5566 = vrcp.f32 %v921_v28  ;;  %v4281_v62 = vmul.f32 -1.442695, %v6751_v34 }
 0x2b2   :  { %v5555_v38 = vpop.eup %5554  ;;  %v924_v40 = vadd.f32 1.0, %v5553_v33  ;;  %5568 = vpow2.f32 %v4279_v21  ;;  %v4763_v46 = vpop.f32.mrb[12].mxu0  ;;  %v4280_v12 = vmul.f32 -1.442695, %v6755_v56 }
 0x2b3   :  { %v923_v49 = vadd.f32 1.0, %v5555_v38  ;;  %v764_v55 = vpop.f32.mrb[13].mxu0  ;;  %v6759_v4 = vadd.f32 %v4763_v46, %v6709_v24 }
 0x2b4   :  { %5570 = vrcp.f32 %v924_v40  ;;  %v6765_v16 = vadd.f32 %v6709_v24, %v764_v55 }
 0x2b5   :  { %v5557_v58 = vpop.eup %5556  ;;  %5572 = vrcp.f32 %v923_v49  ;;  %v4283_v18 = vmul.f32 -1.442695, %v6759_v4 }
 0x2b6   :  { %v5559_v2 = vpop.eup %5558  ;;  %v926_v3 = vadd.f32 1.0, %v5557_v58  ;;  %5574 = vpow2.f32 %v4278_v44  ;;  %v4766_v6 = vpop.f32.mrb[14].mxu0  ;;  %v4282_v33 = vmul.f32 -1.442695, %v6765_v16 }
 0x2b7   :  { %v5561_v8 = vpop.eup %5560  ;;  %1017 = vrot.lane.b32.xlu1 %v5559_v2, %s6128_s30  ;;  %v774_v9 = vpop.f32.mrb[15].mxu0  ;;  %v6770_v28 = vadd.f32 %v4766_v6, %v6709_v24 }
 0x2b8   :  { %v5563_v10 = vpop.eup %5562  ;;  %5576 = vrcp.f32 %v926_v3  ;;  %1015 = vrot.lane.b32.xlu0 %v5561_v8, %s6128_s30  ;;  %v6775_v46 = vadd.f32 %v6709_v24, %v774_v9 }
 0x2b9   :  { %v925_v14 = vadd.f32 1.0, %v5563_v10  ;;  %5578 = vpow2.f32 %v4281_v62  ;;  %v4285_v58 = vmul.f32 -1.442695, %v6770_v28 }
 0x2ba   :  { %v5565_v41 = vpop.eup %5564  ;;  %v4769_v20 = vpop.f32.mrb[16].mxu0  ;;  %v4284_v9 = vmul.f32 -1.442695, %v6775_v46 }
 0x2bb   :  { %v5567_v42 = vpop.eup %5566  ;;  %5580 = vrcp.f32 %v925_v14  ;;  %1021 = vrot.lane.b32.xlu1 %v5565_v41, %s6128_s30  ;;  %v784_v21 = vpop.f32.mrb[17].mxu0  ;;  %v6781_v3 = vadd.f32 %v4769_v20, %v6709_v24 }
 0x2bc   :  { %v5569_v26 = vpop.eup %5568  ;;  %5582 = vpow2.f32 %v4280_v12  ;;  %1019 = vrot.lane.b32.xlu0 %v5567_v42, %s6128_s30  ;;  %v6786_v41 = vadd.f32 %v6709_v24, %v784_v21 }
 0x2bd   :  { %v928_v32 = vadd.f32 1.0, %v5569_v26  ;;  %5584 = vpow2.f32 %v4283_v18  ;;  %v4287_v42 = vmul.f32 -1.442695, %v6781_v3 }
 0x2be   :  { %v5571_v38 = vpop.eup %5570  ;;  %v4772_v40 = vpop.f32.mrb[18].mxu0 }
 0x2bf   :  { %v5573_v44 = vpop.eup %5572  ;;  %5586 = vrcp.f32 %v928_v32  ;;  %1025 = vrot.lane.b32.xlu1 %v5571_v38, %s6128_s30  ;;  %v794_v49 = vpop.f32.mrb[19].mxu0  ;;  %v6791_v38 = vadd.f32 %v4772_v40, %v6709_v24 }
 0x2c0   :  { %v5575_v55 = vpop.eup %5574  ;;  %1023 = vrot.lane.b32.xlu0 %v5573_v44, %s6128_s30  ;;  %5588 = vpow2.f32 %v4282_v33 }
 0x2c1   :  { %v927_v62 = vadd.f32 1.0, %v5575_v55  ;;  %v4289_v40 = vmul.f32 -1.442695, %v6791_v38 }
 0x2c2   :  { %v5577_v2 = vpop.eup %5576  ;;  %v4775_v6 = vpop.f32.mrb[0].mxu1 }
 0x2c3   :  { %v5579_v8 = vpop.eup %5578  ;;  %5590 = vrcp.f32 %v927_v62  ;;  %1029 = vrot.lane.b32.xlu1 %v5577_v2, %s6128_s30  ;;  %v804_v10 = vpop.f32.mrb[1].mxu1  ;;  %v6799_v2 = vadd.f32 %v6709_v24, %v794_v49 }
 0x2c4   :  { %v930_v12 = vadd.f32 1.0, %v5579_v8  ;;  %5592 = vpow2.f32 %v4285_v58  ;;  %v4286_v58 = vmul.f32 -1.442695, %v6786_v41  ;;  %v6808_v49 = vadd.f32 %v6709_v24, %v804_v10 }
 0x2c5   :  { %v5581_v14 = vpop.eup %5580 }
 0x2c6   :  { %v5583_v18 = vpop.eup %5582  ;;  %5594 = vrcp.f32 %v930_v12  ;;  %1027 = vrot.lane.b32.xlu0 %v5581_v14, %s6128_s30  ;;  %v4778_v20 = vpop.f32.mrb[2].mxu1  ;;  %v6803_v14 = vadd.f32 %v4775_v6, %v6709_v24 }
 0x2c7   :  { %v929_v26 = vadd.f32 1.0, %v5583_v18  ;;  %5596 = vpow2.f32 %v4284_v9  ;;  %v814_v32 = vpop.f32.mrb[3].mxu1  ;;  %v5585_v33 = vpop.eup %5584 }
 0x2c8   :  { %v6794_v44 = vadd.f32 %v6709_v24, %v814_v32  ;;  %v932_v21 = vadd.f32 1.0, %v5585_v33 }
 0x2c9   :  { %v5587_v55 = vpop.eup %5586  ;;  %5598 = vrcp.f32 %v929_v26 }
 0x2ca   :  { %5600 = vpow2.f32 %v4287_v42  ;;  %1033 = vrot.lane.b32.xlu1 %v5587_v55, %s6128_s30  ;;  %v5589_v62 = vpop.eup %5588  ;;  %v4288_v42 = vmul.f32 -1.442695, %v6799_v2  ;;  %v4291_v55 = vmul.f32 -1.442695, %v6803_v14 }
 0x2cb   :  { %5602 = vrcp.f32 %v932_v21  ;;  %v931_v8 = vadd.f32 1.0, %v5589_v62 }
 0x2cc   :  { %5604 = vpow2.f32 %v4286_v58  ;;  %v6813_v58 = vadd.f32 %v4778_v20, %v6709_v24 }
 0x2cd   :  { %v5591_v9 = vpop.eup %5590  ;;  %5606 = vrcp.f32 %v931_v8 }
 0x2ce   :  { %v5593_v12 = vpop.eup %5592  ;;  %1031 = vrot.lane.b32.xlu0 %v5591_v9, %s6128_s30  ;;  %5608 = vpow2.f32 %v4289_v40  ;;  %v4290_v40 = vmul.f32 -1.442695, %v6808_v49 }
 0x2cf   :  { %v934_v18 = vadd.f32 1.0, %v5593_v12 }
 0x2d0   :  { %v5595_v26 = vpop.eup %5594 }
 0x2d1   :  { %v5597_v32 = vpop.eup %5596  ;;  %5610 = vrcp.f32 %v934_v18  ;;  %1037 = vrot.lane.b32.xlu1 %v5595_v26, %s6128_s30  ;;  %v4293_v18 = vmul.f32 -1.442695, %v6813_v58  ;;  %v4292_v26 = vmul.f32 -1.442695, %v6794_v44 }
 0x2d2   :  { %v933_v33 = vadd.f32 1.0, %v5597_v32  ;;  %5612 = vpow2.f32 %v4288_v42 }
 0x2d3   :  { %v5599_v21 = vpop.eup %5598 }
 0x2d4   :  { %v5601_v6 = vpop.eup %5600  ;;  %5614 = vrcp.f32 %v933_v33  ;;  %1035 = vrot.lane.b32.xlu0 %v5599_v21, %s6128_s30 }
 0x2d5   :  { %v5603_v62 = vpop.eup %5602  ;;  %v936_v8 = vadd.f32 1.0, %v5601_v6  ;;  %5616 = vpow2.f32 %v4291_v55 }
 0x2d6   :  { %1041 = vrot.lane.b32.xlu1 %v5603_v62, %s6128_s30  ;;  %v5605_v10 = vpop.eup %5604 }
 0x2d7   :  { %5618 = vrcp.f32 %v936_v8  ;;  %v5607_v9 = vpop.eup %5606  ;;  %v935_v12 = vadd.f32 1.0, %v5605_v10 }
 0x2d8   :  { %5620 = vpow2.f32 %v4290_v40  ;;  %1039 = vrot.lane.b32.xlu0 %v5607_v9, %s6128_s30  ;;  %v5609_v24 = vpop.eup %5608 }
 0x2d9   :  { %5622 = vrcp.f32 %v935_v12  ;;  %v938_v42 = vadd.f32 1.0, %v5609_v24 }
 0x2da   :  { %5624 = vpow2.f32 %v4293_v18 }
 0x2db   :  { %v5611_v20 = vpop.eup %5610  ;;  %5626 = vrcp.f32 %v938_v42 }
 0x2dc   :  { %1045 = vrot.lane.b32.xlu1 %v5611_v20, %s6128_s30  ;;  %v5613_v32 = vpop.eup %5612  ;;  %5628 = vpow2.f32 %v4292_v26 }
 0x2dd   :  { %v937_v55 = vadd.f32 1.0, %v5613_v32 }
 0x2de   :  { %v5615_v33 = vpop.eup %5614 }
 0x2df   :  { %1043 = vrot.lane.b32.xlu0 %v5615_v33, %s6128_s30  ;;  %v5617_v21 = vpop.eup %5616  ;;  %5630 = vrcp.f32 %v937_v55 }
 0x2e0   :  { %v940_v62 = vadd.f32 1.0, %v5617_v21 }
 0x2e1   :  { %v5619_v6 = vpop.eup %5618 }
 0x2e2   :  { %1049 = vrot.lane.b32.xlu1 %v5619_v6, %s6128_s30  ;;  %v5621_v8 = vpop.eup %5620  ;;  %5632 = vrcp.f32 %v940_v62 }
 0x2e3   :  { %v5623_v40 = vpop.eup %5622  ;;  %v939_v10 = vadd.f32 1.0, %v5621_v8 }
 0x2e4   :  { %1047 = vrot.lane.b32.xlu0 %v5623_v40, %s6128_s30  ;;  %v5625_v9 = vpop.eup %5624 }
 0x2e5   :  { %5634 = vrcp.f32 %v939_v10  ;;  %v5627_v12 = vpop.eup %5626  ;;  %v942_v18 = vadd.f32 1.0, %v5625_v9 }
 0x2e6   :  { %1053 = vrot.lane.b32.xlu1 %v5627_v12, %s6128_s30  ;;  %v5629_v24 = vpop.eup %5628 }
 0x2e7   :  { %5636 = vrcp.f32 %v942_v18  ;;  %v941_v42 = vadd.f32 1.0, %v5629_v24 }
 0x2e9   :  { %v5631_v20 = vpop.eup %5630  ;;  %5638 = vrcp.f32 %v941_v42 }
 0x2ea   :  { %1051 = vrot.lane.b32.xlu0 %v5631_v20, %s6128_s30  ;;  %5640 = vtanh.f32 %v6715_v30 }
 0x2eb   :  { %5642 = vtanh.f32 %v6712_v27 }
 0x2ec   :  { %v5633_v26 = vpop.eup %5632  ;;  %5644 = vtanh.f32 %v6723_v39 }
 0x2ed   :  { %1057 = vrot.lane.b32.xlu1 %v5633_v26, %s6128_s30  ;;  %5646 = vtanh.f32 %v6720_v36 }
 0x2ee   :  { %5648 = vtanh.f32 %v6731_v52 }
 0x2ef   :  { %v5635_v32 = vpop.eup %5634  ;;  %5650 = vtanh.f32 %v6728_v48 }
 0x2f0   :  { %1055 = vrot.lane.b32.xlu0 %v5635_v32, %s6128_s30  ;;  %5652 = vtanh.f32 %v6739_v0 }
 0x2f1   :  { %v5637_v33 = vpop.eup %5636  ;;  %5654 = vtanh.f32 %v6736_v60 }
 0x2f2   :  { %1061 = vrot.lane.b32.xlu1 %v5637_v33, %s6128_s30  ;;  %5656 = vtanh.f32 %v6748_v22 }
 0x2f3   :  { %v5639_v55 = vpop.eup %5638  ;;  %5658 = vtanh.f32 %v6744_v15 }
 0x2f4   :  { %1059 = vrot.lane.b32.xlu0 %v5639_v55, %s6128_s30  ;;  %v5641_v6 = vpop.eup %5640  ;;  %5660 = vtanh.f32 %v6755_v56 }
 0x2f5   :  { %v5643_v8 = vpop.eup %5642  ;;  %5662 = vtanh.f32 %v6751_v34 }
 0x2f6   :  { %v5645_v30 = vpop.eup %5644  ;;  %5664 = vtanh.f32 %v6765_v16 }
 0x2f7   :  { %v5647_v36 = vpop.eup %5646  ;;  %5666 = vtanh.f32 %v6759_v4 }
 0x2f8   :  { %v5649_v12 = vpop.eup %5648  ;;  %5668 = vtanh.f32 %v6775_v46 }
 0x2f9   :  { %v5651_v24 = vpop.eup %5650  ;;  %5670 = vtanh.f32 %v6770_v28 }
 0x2fa   :  { %v5653_v0 = vpop.eup %5652  ;;  %5672 = vtanh.f32 %v6786_v41 }
 0x2fb   :  { %v5655_v32 = vpop.eup %5654  ;;  %5674 = vtanh.f32 %v6781_v3 }
 0x2fc   :  { %v5657_v22 = vpop.eup %5656  ;;  %5676 = vtanh.f32 %v6799_v2 }
 0x2fd   :  { %5678 = vtanh.f32 %v6791_v38 }
 0x2fe   :  { %5680 = vtanh.f32 %v6808_v49 }
 0x2ff   :  { %5682 = vtanh.f32 %v6803_v14 }
 0x300   :  { %5684 = vtanh.f32 %v6794_v44 }
 0x301   :  { %5686 = vtanh.f32 %v6813_v58 }
 0x329   :  { %v1018_v21 = vpop.permute.xlu1 %1017 }
 0x32a   :  { %v1016_v62 = vpop.permute.xlu0 %1015  ;;  %v1088_v10 = vmul.f32 %v5643_v8, %v1018_v21 }
 0x32b   :  { %v1087_v40 = vmul.f32 %v5641_v6, %v1016_v62  ;;  %v5659_v62 = vpop.eup %5658 }
 0x32c   :  { %v5661_v56 = vpop.eup %5660 }
 0x32d   :  { %v1022_v9 = vpop.permute.xlu1 %1021  ;;  %4787 = vmatprep.mubr.msk.f32.mxu1 %vm525_vm0, %v1087_v40 }
 0x32e   :  { %4788 = vmatmul.mubr.msk.f32.vlgmr.msra.gmra.mrb[4].mxu1 %vm525_vm0, %v1088_v10  ;;  %v1020_v27 = vpop.permute.xlu0 %1019  ;;  %v1090_v48 = vmul.f32 %v5647_v36, %v1022_v9  ;;  %v5663_v9 = vpop.eup %5662 }
 0x32f   :  { %v1089_v39 = vmul.f32 %v5645_v30, %v1020_v27  ;;  %v5665_v4 = vpop.eup %5664 }
 0x330   :  { %v5667_v36 = vpop.eup %5666 }
 0x331   :  { %v1026_v52 = vpop.permute.xlu1 %1025  ;;  %4790 = vmatprep.mubr.msk.f32.mxu1 %vm525_vm0, %v1089_v39  ;;  %v5669_v46 = vpop.eup %5668 }
 0x332   :  { %4791 = vmatmul.mubr.msk.f32.gmra.mrb[6].mxu1 %vm525_vm0, %v1090_v48  ;;  %v1024_v18 = vpop.permute.xlu0 %1023  ;;  %v1092_v42 = vmul.f32 %v5651_v24, %v1026_v52 }
 0x333   :  { %v1091_v20 = vmul.f32 %v5649_v12, %v1024_v18  ;;  %v5671_v12 = vpop.eup %5670 }
 0x334   :  { %v5673_v3 = vpop.eup %5672 }
 0x335   :  { %4793 = vmatprep.mubr.msk.f32.mxu1 %vm525_vm0, %v1091_v20  ;;  %v1030_v60 = vpop.permute.xlu1 %1029 }
 0x336   :  { %4794 = vmatmul.mubr.msk.f32.gmra.mrb[8].mxu1 %vm525_vm0, %v1092_v42  ;;  %v1094_v55 = vmul.f32 %v5655_v32, %v1030_v60  ;;  %v5675_v42 = vpop.eup %5674 }
 0x337   :  { %v5677_v38 = vpop.eup %5676 }
 0x338   :  { %v1028_v26 = vpop.permute.xlu0 %1027  ;;  %v5679_v32 = vpop.eup %5678 }
 0x339   :  { %v1093_v33 = vmul.f32 %v5653_v0, %v1028_v26  ;;  %v5681_v14 = vpop.eup %5680 }
 0x33b   :  { %4796 = vmatprep.mubr.msk.f32.mxu1 %vm525_vm0, %v1093_v33 }
 0x33c   :  { %4797 = vmatmul.mubr.msk.f32.gmra.mrb[10].mxu1 %vm525_vm0, %v1094_v55  ;;  %v1034_v21 = vpop.permute.xlu1 %1033 }
 0x33d   :  { %v1096_v8 = vmul.f32 %v5659_v62, %v1034_v21 }
 0x340   :  { %v1032_v6 = vpop.permute.xlu0 %1031 }
 0x341   :  { %v1095_v15 = vmul.f32 %v5657_v22, %v1032_v6  ;;  %v5683_v22 = vpop.eup %5682 }
 0x343   :  { %4799 = vmatprep.mubr.msk.f32.mxu1 %vm525_vm0, %v1095_v15  ;;  %v1038_v40 = vpop.permute.xlu1 %1037 }
 0x344   :  { %4800 = vmatmul.mubr.msk.f32.gmra.mrb[12].mxu1 %vm525_vm0, %v1096_v8  ;;  %v1098_v30 = vmul.f32 %v5663_v9, %v1038_v40  ;;  %v5685_v8 = vpop.eup %5684 }
 0x345   :  { %v5687_v40 = vpop.eup %5686 }
 0x346   :  { %v1036_v10 = vpop.permute.xlu0 %1035 }
 0x347   :  { %v1097_v34 = vmul.f32 %v5661_v56, %v1036_v10  ;;  %v6129_v10 = vmov 0.0|0.0  }
 0x348   :  { %v1042_v16 = vpop.permute.xlu1 %1041  ;;  %5173 = vmatprep.subr.bf16.mxu1 %v6129_v10 }
 0x349   :  { %4802 = vmatprep.mubr.msk.f32.mxu1 %vm525_vm0, %v1097_v34  ;;  %v1100_v48 = vmul.f32 %v5667_v36, %v1042_v16 }
 0x34a   :  { %4803 = vmatmul.mubr.msk.f32.gmra.mrb[14].mxu1 %vm525_vm0, %v1098_v30  ;;  %v1040_v27 = vpop.permute.xlu0 %1039 }
 0x34b   :  { %v1099_v39 = vmul.f32 %v5665_v4, %v1040_v27 }
 0x34d   :  { %4805 = vmatprep.mubr.msk.f32.mxu1 %vm525_vm0, %v1099_v39 }
 0x34e   :  { %4806 = vmatmul.mubr.msk.f32.gmra.mrb[16].mxu1 %vm525_vm0, %v1100_v48  ;;  %v1046_v28 = vpop.permute.xlu1 %1045 }
 0x34f   :  { %v1102_v24 = vmul.f32 %v5671_v12, %v1046_v28 }
 0x351   :  { %v1044_v52 = vpop.permute.xlu0 %1043 }
 0x352   :  { %v1101_v18 = vmul.f32 %v5669_v46, %v1044_v52 }
 0x354   :  { %4808 = vmatprep.mubr.msk.f32.mxu1 %vm525_vm0, %v1101_v18  ;;  %v1050_v41 = vpop.permute.xlu1 %1049 }
 0x355   :  { %4809 = vmatmul.mubr.msk.f32.gmra.mrb[18].mxu1 %vm525_vm0, %v1102_v24  ;;  %v1104_v0 = vmul.f32 %v5675_v42, %v1050_v41 }
 0x356   :  { %v1048_v20 = vpop.permute.xlu0 %1047 }
 0x357   :  { %v1103_v60 = vmul.f32 %v5673_v3, %v1048_v20 }
 0x358   :  { %v1054_v2 = vpop.permute.xlu1 %1053 }
 0x359   :  { %4811 = vmatprep.mubr.msk.f32.mxu1 %vm525_vm0, %v1103_v60  ;;  %v1106_v55 = vmul.f32 %v5679_v32, %v1054_v2 }
 0x35a   :  { %4812 = vmatmul.mubr.msk.f32.gmra.mrb[20].mxu1 %vm525_vm0, %v1104_v0 }
 0x35c   :  { %v1052_v26 = vpop.permute.xlu0 %1051 }
 0x35d   :  { %v1105_v33 = vmul.f32 %v5677_v38, %v1052_v26 }
 0x35f   :  { %4814 = vmatprep.mubr.msk.f32.mxu1 %vm525_vm0, %v1105_v33  ;;  %v1058_v49 = vpop.permute.xlu1 %1057 }
 0x360   :  { %4815 = vmatmul.mubr.msk.f32.gmra.mrb[22].mxu1 %vm525_vm0, %v1106_v55  ;;  %v1108_v62 = vmul.f32 %v5683_v22, %v1058_v49 }
 0x362   :  { %v1056_v21 = vpop.permute.xlu0 %1055 }
 0x363   :  { %v1107_v6 = vmul.f32 %v5681_v14, %v1056_v21 }
 0x364   :  { %v1062_v15 = vpop.permute.xlu1 %1061 }
 0x365   :  { %4817 = vmatprep.mubr.msk.f32.mxu1 %vm525_vm0, %v1107_v6  ;;  %v1110_v58 = vmul.f32 %v5687_v40, %v1062_v15 }
 0x366   :  { %4818 = vmatmul.mubr.msk.f32.gmra.mrb[24].mxu1 %vm525_vm0, %v1108_v62  ;;  %v1060_v44 = vpop.permute.xlu0 %1059  ;;  %v1384_v62 = vld [vmem:[%s7836_s8 + $0x8] sm:$0xff] }
 0x367   :  { %v1109_v56 = vmul.f32 %v5685_v8, %v1060_v44 }
 0x369   :  { %4820 = vmatprep.mubr.msk.f32.mxu1 %vm525_vm0, %v1109_v56 }
 0x36a   :  { %4821 = vmatmul.mubr.msk.f32.gmra.mrb[26].mxu1 %vm525_vm0, %v1110_v58 }
 0x36b   :  { %4320 = vmatprep.mubr.msk.f32.mxu1 %vm565_vm1, %v1384_v62 }
 0x401   :  { %v4789_v9 = vpop.f32.mrb[4].mxu1 }
 0x402   :  { %v1253_v34 = vpop.f32.mrb[5].mxu1 }
 0x403   :  { %v5414_v30 = vpack.i.bf16 %v4789_v9, %v1253_v34 }
 0x405   :  { %5415 = vrot.lane.b32.xlu0 %v5414_v30, %s6130_s26  ;;  %v4792_v16 = vpop.f32.mrb[6].mxu1 }
 0x406   :  { %v1263_v4 = vpop.f32.mrb[7].mxu1 }
 0x407   :  { %v5419_v27 = vpack.i.bf16 %v4792_v16, %v1263_v4 }
 0x409   :  { %5420 = vrot.lane.b32.xlu1 %v5419_v27, %s6130_s26  ;;  %v4795_v36 = vpop.f32.mrb[8].mxu1 }
 0x40a   :  { %v1273_v39 = vpop.f32.mrb[9].mxu1 }
 0x40b   :  { %v5424_v48 = vpack.i.bf16 %v4795_v36, %v1273_v39 }
 0x40d   :  { %5425 = vrot.lane.b32.xlu0 %v5424_v48, %s6130_s26 }
 0x40f   :  { %v4798_v28 = vpop.f32.mrb[10].mxu1 }
 0x410   :  { %v1283_v46 = vpop.f32.mrb[11].mxu1 }
 0x411   :  { %v5429_v52 = vpack.i.bf16 %v4798_v28, %v1283_v46 }
 0x413   :  { %5430 = vrot.lane.b32.xlu1 %v5429_v52, %s6130_s26 }
 0x417   :  { %v4801_v12 = vpop.f32.mrb[12].mxu1 }
 0x418   :  { %v1293_v18 = vpop.f32.mrb[13].mxu1 }
 0x419   :  { %v5434_v24 = vpack.i.bf16 %v4801_v12, %v1293_v18 }
 0x41b   :  { %5435 = vrot.lane.b32.xlu0 %v5434_v24, %s6130_s26 }
 0x41d   :  { %v4804_v41 = vpop.f32.mrb[14].mxu1 }
 0x41e   :  { %v1303_v3 = vpop.f32.mrb[15].mxu1 }
 0x41f   :  { %v5439_v20 = vpack.i.bf16 %v4804_v41, %v1303_v3 }
 0x421   :  { %5440 = vrot.lane.b32.xlu1 %v5439_v20, %s6130_s26  ;;  %v4807_v42 = vpop.f32.mrb[16].mxu1 }
 0x422   :  { %v1313_v60 = vpop.f32.mrb[17].mxu1 }
 0x423   :  { %v5444_v0 = vpack.i.bf16 %v4807_v42, %v1313_v60 }
 0x425   :  { %5445 = vrot.lane.b32.xlu0 %v5444_v0, %s6130_s26 }
 0x428   :  { %v4810_v2 = vpop.f32.mrb[18].mxu1 }
 0x429   :  { %v1323_v38 = vpop.f32.mrb[19].mxu1 }
 0x42a   :  { %v5449_v26 = vpack.i.bf16 %v4810_v2, %v1323_v38 }
 0x42c   :  { %5450 = vrot.lane.b32.xlu1 %v5449_v26, %s6130_s26 }
 0x42d   :  { %v4813_v32 = vpop.f32.mrb[20].mxu1 }
 0x42e   :  { %v1333_v33 = vpop.f32.mrb[21].mxu1 }
 0x42f   :  { %v5454_v55 = vpack.i.bf16 %v4813_v32, %v1333_v33 }
 0x431   :  { %5455 = vrot.lane.b32.xlu0 %v5454_v55, %s6130_s26 }
 0x433   :  { %v4816_v49 = vpop.f32.mrb[22].mxu1 }
 0x434   :  { %v1343_v14 = vpop.f32.mrb[23].mxu1 }
 0x435   :  { %v5459_v21 = vpack.i.bf16 %v4816_v49, %v1343_v14 }
 0x437   :  { %5460 = vrot.lane.b32.xlu1 %v5459_v21, %s6130_s26 }
 0x439   :  { %v6890_v22 = vpop.f32.mrb[24].mxu1 }
 0x43a   :  { %v6892_v6 = vpop.f32.mrb[25].mxu1 }
 0x43b   :  { %v5464_v15 = vpack.i.bf16 %v6890_v22, %v6892_v6 }
 0x43d   :  { %5465 = vrot.lane.b32.xlu0 %v5464_v15, %s6130_s26  ;;  %v6901_v8 = vpop.f32.mrb[26].mxu1 }
 0x43e   :  { %v6903_v44 = vpop.f32.mrb[27].mxu1 }
 0x43f   :  { %v5469_v40 = vpack.i.bf16 %v6901_v8, %v6903_v44 }
 0x441   :  { %5470 = vrot.lane.b32.xlu1 %v5469_v40, %s6130_s26 }
 0x477   :  { %v5416_v56 = vpop.permute.xlu0 %5415 }
 0x478   :  { %v5418_v58 = vunpack.i.h.bf16 %v5416_v56  ;;  %v5417_v9 = vunpack.i.l.bf16 %v5416_v56 }
 0x47a   :  { %v5174_v34 = vpack.c.bf16 %v5418_v58, %v5417_v9 }
 0x47b   :  { %v5421_v30 = vpop.permute.xlu1 %5420 }
 0x47c   :  { %v5423_v16 = vunpack.i.h.bf16 %v5421_v30  ;;  %v5422_v4 = vunpack.i.l.bf16 %v5421_v30  ;;  %5175 = vmatpush1.bf16.msra.mxu1 %v5174_v34 }
 0x47d   :  { %5176 = vmatprep.subr.bf16.mxu1 %v6129_v10 }
 0x47e   :  { %v5177_v27 = vpack.c.bf16 %v5423_v16, %v5422_v4 }
 0x47f   :  { %v5426_v36 = vpop.permute.xlu0 %5425 }
 0x480   :  { %v5428_v39 = vunpack.i.h.bf16 %v5426_v36  ;;  %v5427_v48 = vunpack.i.l.bf16 %v5426_v36  ;;  %5178 = vmatpush1.bf16.msra.mxu1 %v5177_v27 }
 0x481   :  { %5179 = vmatprep.subr.bf16.mxu1 %v6129_v10 }
 0x482   :  { %v5180_v28 = vpack.c.bf16 %v5428_v39, %v5427_v48 }
 0x484   :  { %5181 = vmatpush1.bf16.msra.mxu1 %v5180_v28 }
 0x485   :  { %v5431_v46 = vpop.permute.xlu1 %5430  ;;  %5182 = vmatprep.subr.bf16.mxu1 %v6129_v10 }
 0x486   :  { %v5433_v52 = vunpack.i.h.bf16 %v5431_v46  ;;  %v5432_v12 = vunpack.i.l.bf16 %v5431_v46 }
 0x488   :  { %v5183_v18 = vpack.c.bf16 %v5433_v52, %v5432_v12  ;;  %v1383_v52 = vld [vmem:[%s7836_s8] sm:$0xff]  ;;  %v1386_v12 = vld [vmem:[%s7836_s8 + $0x18] sm:$0xff] }
 0x48a   :  { %5184 = vmatpush1.bf16.msra.mxu1 %v5183_v18  ;;  %v1385_v18 = vld [vmem:[%s7836_s8 + $0x10] sm:$0xff] }
 0x48b   :  { %5185 = vmatprep.subr.bf16.mxu1 %v6129_v10 }
 0x48d   :  { %v5436_v24 = vpop.permute.xlu0 %5435 }
 0x48e   :  { %v5438_v41 = vunpack.i.h.bf16 %v5436_v24  ;;  %v5437_v3 = vunpack.i.l.bf16 %v5436_v24  ;;  %v1387_v24 = vld [vmem:[%s7836_s8 + $0x20] sm:$0xff] }
 0x490   :  { %v5186_v20 = vpack.c.bf16 %v5438_v41, %v5437_v3  ;;  %v1390_v41 = vld [vmem:[%s7836_s8 + $0x38] sm:$0xff]  ;;  %v1389_v3 = vld [vmem:[%s7836_s8 + $0x30] sm:$0xff] }
 0x492   :  { %5187 = vmatpush1.bf16.msra.mxu1 %v5186_v20  ;;  %v1392_v20 = vld [vmem:[%s7836_s8 + $0x48] sm:$0xff] }
 0x493   :  { %v5441_v42 = vpop.permute.xlu1 %5440  ;;  %5188 = vmatprep.subr.bf16.mxu1 %v6129_v10 }
 0x494   :  { %v5443_v60 = vunpack.i.h.bf16 %v5441_v42  ;;  %v5442_v0 = vunpack.i.l.bf16 %v5441_v42  ;;  %v1391_v42 = vld [vmem:[%s7836_s8 + $0x40] sm:$0xff] }
 0x496   :  { %v5189_v2 = vpack.c.bf16 %v5443_v60, %v5442_v0  ;;  %v1394_v60 = vld [vmem:[%s7836_s8 + $0x58] sm:$0xff]  ;;  %v1393_v0 = vld [vmem:[%s7836_s8 + $0x50] sm:$0xff] }
 0x497   :  { %v5446_v38 = vpop.permute.xlu0 %5445 }
 0x498   :  { %5190 = vmatpush1.bf16.msra.mxu1 %v5189_v2  ;;  %v5448_v26 = vunpack.i.h.bf16 %v5446_v38  ;;  %v5447_v32 = vunpack.i.l.bf16 %v5446_v38  ;;  %v1396_v2 = vld [vmem:[%s7836_s8 + $0x68] sm:$0xff]  ;;  %v1395_v38 = vld [vmem:[%s7836_s8 + $0x60] sm:$0xff] }
 0x499   :  { %5191 = vmatprep.subr.bf16.mxu1 %v6129_v10 }
 0x49a   :  { %v5192_v33 = vpack.c.bf16 %v5448_v26, %v5447_v32  ;;  %v1398_v26 = vld [vmem:[%s7836_s8 + $0x78] sm:$0xff]  ;;  %v1397_v32 = vld [vmem:[%s7836_s8 + $0x70] sm:$0xff] }
 0x49c   :  { %5193 = vmatpush1.bf16.msra.mxu1 %v5192_v33  ;;  %v1400_v33 = vld [vmem:[%s7836_s8 + $0x88] sm:$0xff] }
 0x49d   :  { %5194 = vmatprep.subr.bf16.mxu1 %v6129_v10 }
 0x49e   :  { %v5451_v55 = vpop.permute.xlu1 %5450 }
 0x49f   :  { %v5453_v49 = vunpack.i.h.bf16 %v5451_v55  ;;  %v5452_v14 = vunpack.i.l.bf16 %v5451_v55  ;;  %v1399_v55 = vld [vmem:[%s7836_s8 + $0x80] sm:$0xff] }
 0x4a1   :  { %v5195_v21 = vpack.c.bf16 %v5453_v49, %v5452_v14  ;;  %v1402_v49 = vld [vmem:[%s7836_s8 + $0x98] sm:$0xff]  ;;  %v1401_v14 = vld [vmem:[%s7836_s8 + $0x90] sm:$0xff] }
 0x4a3   :  { %5196 = vmatpush1.bf16.msra.mxu1 %v5195_v21  ;;  %v5456_v62 = vpop.permute.xlu0 %5455  ;;  %v1404_v21 = vld [vmem:[%s7836_s8 + $0xa8] sm:$0xff] }
 0x4a4   :  { %5197 = vmatprep.subr.bf16.mxu1 %v6129_v10  ;;  %v5458_v15 = vunpack.i.h.bf16 %v5456_v62  ;;  %v5457_v40 = vunpack.i.l.bf16 %v5456_v62  ;;  %v1403_v62 = vld [vmem:[%s7836_s8 + $0xa0] sm:$0xff] }
 0x4a6   :  { %v5198_v56 = vpack.c.bf16 %v5458_v15, %v5457_v40  ;;  %v1406_v15 = vld [vmem:[%s7836_s8 + $0xb8] sm:$0xff]  ;;  %v1405_v40 = vld [vmem:[%s7836_s8 + $0xb0] sm:$0xff] }
 0x4a8   :  { %5199 = vmatpush1.bf16.msra.mxu1 %v5198_v56  ;;  %v1408_v56 = vld [vmem:[%s7836_s8 + $0xc8] sm:$0xff] }
 0x4a9   :  { %v5461_v58 = vpop.permute.xlu1 %5460  ;;  %5200 = vmatprep.subr.bf16.mxu1 %v6129_v10 }
 0x4aa   :  { %v5463_v9 = vunpack.i.h.bf16 %v5461_v58  ;;  %v5462_v34 = vunpack.i.l.bf16 %v5461_v58  ;;  %v1407_v58 = vld [vmem:[%s7836_s8 + $0xc0] sm:$0xff] }
 0x4ac   :  { %v5201_v30 = vpack.c.bf16 %v5463_v9, %v5462_v34  ;;  %v1410_v9 = vld [vmem:[%s7836_s8 + $0xd8] sm:$0xff]  ;;  %v1409_v34 = vld [vmem:[%s7836_s8 + $0xd0] sm:$0xff] }
 0x4ae   :  { %5202 = vmatpush1.bf16.msra.mxu1 %v5201_v30  ;;  %v1412_v30 = vld [vmem:[%s7836_s8 + $0xe8] sm:$0xff] }
 0x4af   :  { %v5466_v16 = vpop.permute.xlu0 %5465  ;;  %5203 = vmatprep.subr.bf16.mxu1 %v6129_v10 }
 0x4b0   :  { %v5468_v4 = vunpack.i.h.bf16 %v5466_v16  ;;  %v5467_v27 = vunpack.i.l.bf16 %v5466_v16  ;;  %v1411_v16 = vld [vmem:[%s7836_s8 + $0xe0] sm:$0xff] }
 0x4b2   :  { %v5204_v36 = vpack.c.bf16 %v5468_v4, %v5467_v27  ;;  %v1414_v4 = vld [vmem:[%s7836_s8 + $0xf8] sm:$0xff]  ;;  %v1413_v27 = vld [vmem:[%s7836_s8 + $0xf0] sm:$0xff] }
 0x4b3   :  { %v5471_v39 = vpop.permute.xlu1 %5470 }
 0x4b4   :  { %5205 = vmatpush1.bf16.msra.mxu1 %v5204_v36  ;;  %v5473_v48 = vunpack.i.h.bf16 %v5471_v39  ;;  %v5472_v28 = vunpack.i.l.bf16 %v5471_v39  ;;  %v1416_v36 = vld [vmem:[%s7836_s8 + $0x108] sm:$0xff]  ;;  %v1415_v39 = vld [vmem:[%s7836_s8 + $0x100] sm:$0xff] }
 0x4b5   :  { %5206 = vmatprep.subr.bf16.mxu1 %v6129_v10  ;;  %v1388_v10 = vld [vmem:[%s7836_s8 + $0x28] sm:$0xff] }
 0x4b6   :  { %v5207_v46 = vpack.c.bf16 %v5473_v48, %v5472_v28  ;;  %v1418_v48 = vld [vmem:[%s7836_s8 + $0x118] sm:$0xff]  ;;  %v1417_v28 = vld [vmem:[%s7836_s8 + $0x110] sm:$0xff] }
 0x4b8   :  { %5208 = vmatpush1.bf16.msra.mxu1 %v5207_v46  ;;  %v1420_v46 = vld [vmem:[%s7836_s8 + $0x128] sm:$0xff] }
 0x4bb   :  { %1671 = vmatmul.mubr.f32.vlgmr.msra.gmra.mrb[28].mxu1 %v1383_v52  ;;  %v1419_v52 = vld [vmem:[%s7836_s8 + $0x120] sm:$0xff] }
 0x4bc   :  { %4321 = vmatprep.mubr.msk.f32.mxu1 %vm565_vm1, %v1386_v12  ;;  %v1422_v12 = vld [vmem:[%s7836_s8 + $0x138] sm:$0xff] }
 0x4bf   :  { %1676 = vmatmul.mubr.f32.gmra.mrb[30].mxu1 %v1385_v18  ;;  %v1421_v18 = vld [vmem:[%s7836_s8 + $0x130] sm:$0xff] }
 0x4c0   :  { %4322 = vmatprep.mubr.msk.f32.mxu1 %vm565_vm1, %v1388_v10  ;;  %v1424_v10 = vld [vmem:[%s7836_s8 + $0x148] sm:$0xff] }
 0x4c3   :  { %1681 = vmatmul.mubr.f32.gmra.mrb[32].mxu1 %v1387_v24  ;;  %v1423_v24 = vld [vmem:[%s7836_s8 + $0x140] sm:$0xff] }
 0x4c4   :  { %4323 = vmatprep.mubr.msk.f32.mxu1 %vm565_vm1, %v1390_v41  ;;  %v1426_v41 = vld [vmem:[%s7836_s8 + $0x158] sm:$0xff] }
 0x4c7   :  { %1686 = vmatmul.mubr.f32.gmra.mrb[34].mxu1 %v1389_v3  ;;  %v1425_v3 = vld [vmem:[%s7836_s8 + $0x150] sm:$0xff] }
 0x4c8   :  { %4324 = vmatprep.mubr.msk.f32.mxu1 %vm565_vm1, %v1392_v20  ;;  %v1428_v20 = vld [vmem:[%s7836_s8 + $0x168] sm:$0xff] }
 0x4cb   :  { %1691 = vmatmul.mubr.f32.gmra.mrb[36].mxu1 %v1391_v42  ;;  %v1427_v42 = vld [vmem:[%s7836_s8 + $0x160] sm:$0xff] }
 0x4cc   :  { %4325 = vmatprep.mubr.msk.f32.mxu1 %vm565_vm1, %v1394_v60  ;;  %v1430_v60 = vld [vmem:[%s7836_s8 + $0x178] sm:$0xff] }
 0x4cf   :  { %1696 = vmatmul.mubr.f32.gmra.mrb[38].mxu1 %v1393_v0  ;;  %v1429_v0 = vld [vmem:[%s7836_s8 + $0x170] sm:$0xff] }
 0x4d0   :  { %4326 = vmatprep.mubr.msk.f32.mxu1 %vm565_vm1, %v1396_v2  ;;  %v1958_v2 = vld [vmem:[#allocation6 + $0x40] sm:$0xff] }
 0x4d3   :  { %1701 = vmatmul.mubr.f32.gmra.mrb[40].mxu1 %v1395_v38  ;;  %v1959_v38 = vld [vmem:[#allocation6 + $0x48] sm:$0xff] }
 0x4d4   :  { %4327 = vmatprep.mubr.msk.f32.mxu1 %vm565_vm1, %v1398_v26  ;;  %v1960_v26 = vld [vmem:[#allocation6 + $0x50] sm:$0xff] }
 0x4d7   :  { %1706 = vmatmul.mubr.f32.gmra.mrb[42].mxu1 %v1397_v32  ;;  %v5209_v32 = vpack.c.bf16 %v1959_v38, %v1958_v2 }
 0x4d8   :  { %4328 = vmatprep.mubr.msk.f32.mxu1 %vm565_vm1, %v1400_v33  ;;  %v1961_v33 = vld [vmem:[#allocation6 + $0x58] sm:$0xff] }
 0x4d9   :  { %5210 = vmatprep.subr.bf16.mxu0 %v5209_v32 }
 0x4da   :  { %5212 = vmatpush3.bf16.msra.mxu0 %v5209_v32 }
 0x4db   :  { %1711 = vmatmul.mubr.f32.gmra.mrb[44].mxu1 %v1399_v55  ;;  %v5213_v55 = vpack.c.bf16 %v1961_v33, %v1960_v26  ;;  %v7113_v26 = vld [vmem:[%s7841_s13] ss:$0 sm:$0xff] }
 0x4dc   :  { %4329 = vmatprep.mubr.msk.f32.mxu1 %vm565_vm1, %v1402_v49  ;;  %v1962_v49 = vld [vmem:[#allocation6 + $0x60] sm:$0xff] }
 0x4dd   :  { %5214 = vmatprep.subr.bf16.mxu0 %v5213_v55 }
 0x4de   :  { %5216 = vmatpush3.bf16.msra.mxu0 %v5213_v55 }
 0x4df   :  { %1716 = vmatmul.mubr.f32.gmra.mrb[46].mxu1 %v1401_v14  ;;  %v1963_v14 = vld [vmem:[#allocation6 + $0x68] sm:$0xff] }
 0x4e0   :  { %4330 = vmatprep.mubr.msk.f32.mxu1 %vm565_vm1, %v1404_v21  ;;  %v5217_v21 = vpack.c.bf16 %v1963_v14, %v1962_v49 }
 0x4e2   :  { %5218 = vmatprep.subr.bf16.mxu0 %v5217_v21 }
 0x4e3   :  { %1721 = vmatmul.mubr.f32.gmra.mrb[48].mxu1 %v1403_v62  ;;  %5220 = vmatpush3.bf16.msra.mxu0 %v5217_v21 }
 0x4e4   :  { %4331 = vmatprep.mubr.msk.f32.mxu1 %vm565_vm1, %v1406_v15 }
 0x4e7   :  { %1726 = vmatmul.mubr.f32.gmra.mrb[50].mxu1 %v1405_v40 }
 0x4e8   :  { %4332 = vmatprep.mubr.msk.f32.mxu1 %vm565_vm1, %v1408_v56 }
 0x4eb   :  { %1731 = vmatmul.mubr.f32.gmra.mrb[52].mxu1 %v1407_v58 }
 0x4ec   :  { %4333 = vmatprep.mubr.msk.f32.mxu1 %vm565_vm1, %v1410_v9 }
 0x4ef   :  { %1736 = vmatmul.mubr.f32.gmra.mrb[54].mxu1 %v1409_v34 }
 0x4f0   :  { %4334 = vmatprep.mubr.msk.f32.mxu1 %vm565_vm1, %v1412_v30 }
 0x4f3   :  { %1741 = vmatmul.mubr.f32.gmra.mrb[56].mxu1 %v1411_v16 }
 0x4f4   :  { %4335 = vmatprep.mubr.msk.f32.mxu1 %vm565_vm1, %v1414_v4 }
 0x4f7   :  { %1746 = vmatmul.mubr.f32.gmra.mrb[58].mxu1 %v1413_v27 }
 0x4f8   :  { %4336 = vmatprep.mubr.msk.f32.mxu1 %vm565_vm1, %v1416_v36 }
 0x4fb   :  { %1751 = vmatmul.mubr.f32.gmra.mrb[60].mxu1 %v1415_v39 }
 0x4fc   :  { %4337 = vmatprep.mubr.msk.f32.mxu1 %vm565_vm1, %v1418_v48 }
 0x4ff   :  { %1756 = vmatmul.mubr.f32.gmra.mrb[62].mxu1 %v1417_v28  ;;  %v1964_v28 = vld [vmem:[#allocation6 + $0x70] sm:$0xff] }
 0x500   :  { %4338 = vmatprep.mubr.msk.f32.mxu1 %vm565_vm1, %v1420_v46  ;;  %v1965_v46 = vld [vmem:[#allocation6 + $0x78] sm:$0xff] }
 0x503   :  { %1761 = vmatmul.mubr.f32.gmra.mrb[64].mxu1 %v1419_v52 }
 0x504   :  { %4339 = vmatprep.mubr.msk.f32.mxu1 %vm565_vm1, %v1422_v12  ;;  %v5221_v12 = vpack.c.bf16 %v1965_v46, %v1964_v28 }
 0x506   :  { %5222 = vmatprep.subr.bf16.mxu0 %v5221_v12 }
 0x507   :  { %1766 = vmatmul.mubr.f32.gmra.mrb[66].mxu1 %v1421_v18  ;;  %5224 = vmatpush3.bf16.msra.mxu0 %v5221_v12 }
 0x508   :  { %4340 = vmatprep.mubr.msk.f32.mxu1 %vm565_vm1, %v1424_v10  ;;  %v7099_v10 = vld [vmem:[#allocation10] ss:$0 sm:$0xff] }
 0x50b   :  { %1771 = vmatmul.mubr.f32.gmra.mrb[68].mxu1 %v1423_v24 }
 0x50c   :  { %4341 = vmatprep.mubr.msk.f32.mxu1 %vm565_vm1, %v1426_v41 }
 0x50f   :  { %1776 = vmatmul.mubr.f32.gmra.mrb[70].mxu1 %v1425_v3 }
 0x510   :  { %4342 = vmatprep.mubr.msk.f32.mxu1 %vm565_vm1, %v1428_v20 }
 0x513   :  { %1781 = vmatmul.mubr.f32.gmra.mrb[72].mxu1 %v1427_v42  ;;  %v7106_v42 = vld [vmem:[%s7840_s12] ss:$0 sm:$0xff] }
 0x514   :  { %4343 = vmatprep.mubr.msk.f32.mxu1 %vm565_vm1, %v1430_v60 }
 0x517   :  { %1786 = vmatmul.mubr.f32.gmra.mrb[74].mxu1 %v1429_v0 }
 0x58e   :  { %v7083_v62 = vpop.f32.mrb[28].mxu1 }
 0x58f   :  { %v1674_v15 = vpop.f32.mrb[29].mxu1 }
 0x592   :  { %v7085_v40 = vpop.f32.mrb[30].mxu1 }
 0x593   :  { %v1679_v56 = vpop.f32.mrb[31].mxu1 }
 0x596   :  { %v7087_v58 = vpop.f32.mrb[32].mxu1 }
 0x597   :  { %v1684_v9 = vpop.f32.mrb[33].mxu1 }
 0x59a   :  { %v7089_v34 = vpop.f32.mrb[34].mxu1 }
 0x59b   :  { %v1689_v30 = vpop.f32.mrb[35].mxu1 }
 0x59e   :  { %v7091_v16 = vpop.f32.mrb[36].mxu1 }
 0x59f   :  { %v1694_v4 = vpop.f32.mrb[37].mxu1 }
 0x5a2   :  { %v7093_v27 = vpop.f32.mrb[38].mxu1 }
 0x5a3   :  { %v1699_v36 = vpop.f32.mrb[39].mxu1 }
 0x5a6   :  { %v7095_v39 = vpop.f32.mrb[40].mxu1 }
 0x5a7   :  { %v1704_v48 = vpop.f32.mrb[41].mxu1 }
 0x5aa   :  { %v7097_v52 = vpop.f32.mrb[42].mxu1 }
 0x5ab   :  { %v1709_v18 = vpop.f32.mrb[43].mxu1 }
 0x5ae   :  { %v1712_v24 = vpop.f32.mrb[44].mxu1 }
 0x5af   :  { %v1713_v41 = vadd.f32 %v7099_v10, %v1712_v24  ;;  %v1714_v3 = vpop.f32.mrb[45].mxu1 }
 0x5b1   :  { %v1799_v20 = vadd.f32 %v1713_v41, %v6535_v7 }
 0x5b2   :  { %v1717_v60 = vpop.f32.mrb[46].mxu1 }
 0x5b3   :  { %v1830_v0 = vmul.f32 %v7106_v42, %v1799_v20  ;;  %v1718_v2 = vadd.f32 %v7099_v10, %v1717_v60  ;;  %v1719_v38 = vpop.f32.mrb[47].mxu1 }
 0x5b5   :  { %v1800_v32 = vadd.f32 %v1718_v2, %v6543_v11  ;;  %v7117_v7 = vadd.f32 %v7113_v26, %v1830_v0 }
 0x5b6   :  { %v1722_v33 = vpop.f32.mrb[48].mxu1 }
 0x5b7   :  { %v1831_v55 = vmul.f32 %v7106_v42, %v1800_v32  ;;  %v1723_v49 = vadd.f32 %v7099_v10, %v1722_v33  ;;  %v1724_v14 = vpop.f32.mrb[49].mxu1  ;;  %1893 = vrot.lane.b32.xlu0 %v7117_v7, %s6127_s21 }
 0x5b9   :  { %v1801_v21 = vadd.f32 %v1723_v49, %v6547_v13  ;;  %v7125_v15 = vadd.f32 %v7113_v26, %v1831_v55 }
 0x5ba   :  { %v1727_v56 = vpop.f32.mrb[50].mxu1 }
 0x5bb   :  { %v1832_v11 = vmul.f32 %v7106_v42, %v1801_v21  ;;  %v1728_v9 = vadd.f32 %v7099_v10, %v1727_v56  ;;  %v1729_v30 = vpop.f32.mrb[51].mxu1  ;;  %1895 = vrot.lane.b32.xlu1 %v7125_v15, %s6127_s21 }
 0x5bd   :  { %v1802_v4 = vadd.f32 %v1728_v9, %v6555_v17  ;;  %v7133_v36 = vadd.f32 %v7113_v26, %v1832_v11 }
 0x5be   :  { %v1732_v48 = vpop.f32.mrb[52].mxu1 }
 0x5bf   :  { %v1833_v13 = vmul.f32 %v7106_v42, %v1802_v4  ;;  %v1733_v28 = vadd.f32 %v7099_v10, %v1732_v48  ;;  %v1734_v46 = vpop.f32.mrb[53].mxu1  ;;  %1897 = vrot.lane.b32.xlu0 %v7133_v36, %s6127_s21 }
 0x5c1   :  { %v1803_v12 = vadd.f32 %v1733_v28, %v6559_v19  ;;  %v7141_v18 = vadd.f32 %v7113_v26, %v1833_v13 }
 0x5c2   :  { %v1737_v24 = vpop.f32.mrb[54].mxu1 }
 0x5c3   :  { %v1834_v17 = vmul.f32 %v7106_v42, %v1803_v12  ;;  %v1738_v41 = vadd.f32 %v7099_v10, %v1737_v24  ;;  %v1739_v3 = vpop.f32.mrb[55].mxu1  ;;  %1899 = vrot.lane.b32.xlu1 %v7141_v18, %s6127_s21 }
 0x5c5   :  { %v1804_v20 = vadd.f32 %v1738_v41, %v6567_v23  ;;  %v7149_v60 = vadd.f32 %v7113_v26, %v1834_v17 }
 0x5c6   :  { %v1742_v0 = vpop.f32.mrb[56].mxu1 }
 0x5c7   :  { %v1835_v19 = vmul.f32 %v7106_v42, %v1804_v20  ;;  %v1743_v2 = vadd.f32 %v7099_v10, %v1742_v0  ;;  %v1744_v38 = vpop.f32.mrb[57].mxu1  ;;  %1901 = vrot.lane.b32.xlu0 %v7149_v60, %s6127_s21 }
 0x5c9   :  { %v1805_v32 = vadd.f32 %v1743_v2, %v6571_v25  ;;  %v7157_v33 = vadd.f32 %v7113_v26, %v1835_v19 }
 0x5ca   :  { %v1747_v55 = vpop.f32.mrb[58].mxu1 }
 0x5cb   :  { %v1836_v23 = vmul.f32 %v7106_v42, %v1805_v32  ;;  %v1748_v49 = vadd.f32 %v7099_v10, %v1747_v55  ;;  %v1749_v14 = vpop.f32.mrb[59].mxu1  ;;  %1903 = vrot.lane.b32.xlu1 %v7157_v33, %s6127_s21 }
 0x5cd   :  { %v1806_v21 = vadd.f32 %v1748_v49, %v6579_v29  ;;  %v7165_v56 = vadd.f32 %v7113_v26, %v1836_v23 }
 0x5ce   :  { %v1752_v11 = vpop.f32.mrb[60].mxu1 }
 0x5cf   :  { %v1837_v25 = vmul.f32 %v7106_v42, %v1806_v21  ;;  %v1753_v9 = vadd.f32 %v7099_v10, %v1752_v11  ;;  %v1754_v30 = vpop.f32.mrb[61].mxu1  ;;  %1905 = vrot.lane.b32.xlu0 %v7165_v56, %s6127_s21 }
 0x5d1   :  { %v1807_v4 = vadd.f32 %v1753_v9, %v6583_v31  ;;  %v7173_v48 = vadd.f32 %v7113_v26, %v1837_v25 }
 0x5d2   :  { %v1757_v13 = vpop.f32.mrb[62].mxu1 }
 0x5d3   :  { %v1838_v29 = vmul.f32 %v7106_v42, %v1807_v4  ;;  %v1758_v28 = vadd.f32 %v7099_v10, %v1757_v13  ;;  %v1759_v46 = vpop.f32.mrb[63].mxu1  ;;  %1907 = vrot.lane.b32.xlu1 %v7173_v48, %s6127_s21 }
 0x5d5   :  { %v1808_v12 = vadd.f32 %v1758_v28, %v6591_v35  ;;  %v7181_v24 = vadd.f32 %v7113_v26, %v1838_v29 }
 0x5d6   :  { %v1762_v17 = vpop.f32.mrb[64].mxu1 }
 0x5d7   :  { %v1839_v31 = vmul.f32 %v7106_v42, %v1808_v12  ;;  %v1763_v41 = vadd.f32 %v7099_v10, %v1762_v17  ;;  %v1764_v3 = vpop.f32.mrb[65].mxu1  ;;  %1909 = vrot.lane.b32.xlu0 %v7181_v24, %s6127_s21 }
 0x5d9   :  { %v1809_v20 = vadd.f32 %v1763_v41, %v6595_v37  ;;  %v7189_v0 = vadd.f32 %v7113_v26, %v1839_v31 }
 0x5da   :  { %v1767_v19 = vpop.f32.mrb[66].mxu1 }
 0x5db   :  { %v1840_v35 = vmul.f32 %v7106_v42, %v1809_v20  ;;  %v1768_v2 = vadd.f32 %v7099_v10, %v1767_v19  ;;  %v1769_v38 = vpop.f32.mrb[67].mxu1  ;;  %1911 = vrot.lane.b32.xlu1 %v7189_v0, %s6127_s21 }
 0x5dd   :  { %v7196_v32 = vadd.f32 %v7113_v26, %v1840_v35  ;;  %v1810_v55 = vadd.f32 %v1768_v2, %v6603_v43  ;;  %v1673_v2 = vadd.f32 %v7099_v10, %v7083_v62 }
 0x5de   :  { %v1772_v23 = vpop.f32.mrb[68].mxu1 }
 0x5df   :  { %v1841_v37 = vmul.f32 %v7106_v42, %v1810_v55  ;;  %v1773_v49 = vadd.f32 %v7099_v10, %v1772_v23  ;;  %v1774_v14 = vpop.f32.mrb[69].mxu1  ;;  %1913 = vrot.lane.b32.xlu0 %v7196_v32, %s6127_s21  ;;  %v1791_v38 = vadd.f32 %v1673_v2, %v6489_v47  ;;  %v1678_v55 = vadd.f32 %v7099_v10, %v7085_v40 }
 0x5e1   :  { %v7204_v21 = vadd.f32 %v7113_v26, %v1841_v37  ;;  %v1811_v11 = vadd.f32 %v1773_v49, %v6607_v45  ;;  %v1792_v23 = vadd.f32 %v1678_v55, %v6499_v53  ;;  %v1683_v37 = vadd.f32 %v7099_v10, %v7087_v58 }
 0x5e2   :  { %v1777_v25 = vpop.f32.mrb[70].mxu1  ;;  %v1693_v58 = vadd.f32 %v7099_v10, %v7091_v16 }
 0x5e3   :  { %v1842_v9 = vmul.f32 %v7106_v42, %v1811_v11  ;;  %v1778_v30 = vadd.f32 %v7099_v10, %v1777_v25  ;;  %v1779_v43 = vpop.f32.mrb[71].mxu1  ;;  %1915 = vrot.lane.b32.xlu1 %v7204_v21, %s6127_s21  ;;  %v1823_v49 = vmul.f32 %v7106_v42, %v1792_v23  ;;  %v1793_v14 = vadd.f32 %v1683_v37, %v6492_v50 }
 0x5e4   :  { %v1688_v11 = vadd.f32 %v7099_v10, %v7089_v34  ;;  %v1795_v43 = vadd.f32 %v1693_v58, %v6511_v59 }
 0x5e5   :  { %v7212_v4 = vadd.f32 %v7113_v26, %v1842_v9  ;;  %v1812_v13 = vadd.f32 %v1778_v30, %v6615_v51  ;;  %v1824_v40 = vmul.f32 %v7106_v42, %v1793_v14  ;;  %v1854_v9 = vadd.f32 %v7113_v26, %v1823_v49 }
 0x5e6   :  { %v1782_v29 = vpop.f32.mrb[72].mxu1  ;;  %v1794_v53 = vadd.f32 %v1688_v11, %v6507_v57  ;;  %v1826_v16 = vmul.f32 %v7106_v42, %v1795_v43 }
 0x5e7   :  { %v1843_v28 = vmul.f32 %v7106_v42, %v1812_v13  ;;  %v1783_v46 = vadd.f32 %v7099_v10, %v1782_v29  ;;  %v1784_v45 = vpop.f32.mrb[73].mxu1  ;;  %1917 = vrot.lane.b32.xlu0 %v7212_v4, %s6127_s21  ;;  %v1698_v13 = vadd.f32 %v7099_v10, %v7093_v27  ;;  %v1855_v29 = vadd.f32 %v7113_v26, %v1824_v40 }
 0x5e8   :  { %v1825_v34 = vmul.f32 %v7106_v42, %v1794_v53  ;;  %v1703_v45 = vadd.f32 %v7099_v10, %v7095_v39 }
 0x5e9   :  { %v7220_v12 = vadd.f32 %v7113_v26, %v1843_v28  ;;  %v1813_v17 = vadd.f32 %v1783_v46, %v6619_v54  ;;  %v1796_v46 = vadd.f32 %v1698_v13, %v6519_v63  ;;  %v2360_v13 = vld [vmem:[#allocation7 + $0x20] sm:$0xff] }
 0x5ea   :  { %v1787_v31 = vpop.f32.mrb[74].mxu1 }
 0x5eb   :  { %v1844_v41 = vmul.f32 %v7106_v42, %v1813_v17  ;;  %v1788_v3 = vadd.f32 %v7099_v10, %v1787_v31  ;;  %v1789_v51 = vpop.f32.mrb[75].mxu1  ;;  %1919 = vrot.lane.b32.xlu1 %v7220_v12, %s6127_s21  ;;  %v1856_v17 = vadd.f32 %v7113_v26, %v1825_v34  ;;  %v1827_v27 = vmul.f32 %v7106_v42, %v1796_v46 }
 0x5ec   :  { %v1857_v51 = vadd.f32 %v7113_v26, %v1826_v16 }
 0x5ed   :  { %v7228_v20 = vadd.f32 %v7113_v26, %v1844_v41  ;;  %v1814_v19 = vadd.f32 %v1788_v3, %v6628_v61  ;;  %v1822_v61 = vmul.f32 %v7106_v42, %v1791_v38  ;;  %v1797_v41 = vadd.f32 %v1703_v45, %v6523_v1 }
 0x5ee   :  { %v1708_v3 = vadd.f32 %v7099_v10, %v7097_v52  ;;  %v1858_v2 = vadd.f32 %v7113_v26, %v1827_v27 }
 0x5ef   :  { %v1845_v35 = vmul.f32 %v7106_v42, %v1814_v19  ;;  %1921 = vrot.lane.b32.xlu0 %v7228_v20, %s6127_s21  ;;  %v1853_v62 = vadd.f32 %v7113_v26, %v1822_v61  ;;  %v1828_v39 = vmul.f32 %v7106_v42, %v1797_v41 }
 0x5f1   :  { %v7235_v54 = vadd.f32 %v7113_v26, %v1845_v35  ;;  %v1798_v35 = vadd.f32 %v1708_v3, %v6531_v5  ;;  %v1859_v52 = vadd.f32 %v7113_v26, %v1828_v39 }
 0x5f3   :  { %1923 = vrot.lane.b32.xlu1 %v7235_v54, %s6127_s21  ;;  %v1829_v1 = vmul.f32 %v7106_v42, %v1798_v35  ;;  %v2362_v35 = vld [vmem:[#allocation7 + $0x30] sm:$0xff] }
 0x5f5   :  { %v1860_v23 = vadd.f32 %v7113_v26, %v1829_v1 }
 0x629   :  { %v1894_v47 = vpop.permute.xlu0 %1893 }
 0x62a   :  { %v1941_v25 = vsel %vm525_vm0, %v1853_v62, %v1894_v47 }
 0x62b   :  { %4839 = vmatprep.mubr.msk.f32.mxu0 %vm565_vm1, %v1941_v25 }
 0x62d   :  { %v1896_v50 = vpop.permute.xlu1 %1895 }
 0x62e   :  { %v1942_v30 = vsel %vm525_vm0, %v1854_v9, %v1896_v50 }
 0x62f   :  { %4840 = vmatmul.mubr.msk.f32.vlgmr.msra.gmra.mrb[20].mxu0 %vm565_vm1, %v1942_v30 }
 0x631   :  { %v1898_v57 = vpop.permute.xlu0 %1897 }
 0x632   :  { %v1943_v28 = vsel %vm525_vm0, %v1855_v29, %v1898_v57  ;;  %v2361_v29 = vld [vmem:[#allocation7 + $0x28] sm:$0xff] }
 0x633   :  { %4842 = vmatprep.mubr.msk.f32.mxu0 %vm565_vm1, %v1943_v28  ;;  %v5225_v57 = vpack.c.bf16 %v2361_v29, %v2360_v13  ;;  %v7322_v28 = vld [vmem:[%s7832_s4 + $0x1] ss:$0 sm:$0xff] }
 0x635   :  { %v1900_v59 = vpop.permute.xlu1 %1899  ;;  %5226 = vmatprep.subr.bf16.mxu0 %v5225_v57 }
 0x636   :  { %v1944_v31 = vsel %vm525_vm0, %v1856_v17, %v1900_v59  ;;  %5228 = vmatpush3.bf16.msra.mxu0 %v5225_v57 }
 0x637   :  { %4843 = vmatmul.mubr.msk.f32.gmra.mrb[22].mxu0 %vm565_vm1, %v1944_v31 }
 0x639   :  { %v1902_v63 = vpop.permute.xlu0 %1901 }
 0x63a   :  { %v1945_v19 = vsel %vm525_vm0, %v1857_v51, %v1902_v63 }
 0x63b   :  { %4845 = vmatprep.mubr.msk.f32.mxu0 %vm565_vm1, %v1945_v19 }
 0x63d   :  { %v1904_v38 = vpop.permute.xlu1 %1903 }
 0x63e   :  { %v1946_v55 = vsel %vm525_vm0, %v1858_v2, %v1904_v38  ;;  %v2363_v2 = vld [vmem:[#allocation7 + $0x38] sm:$0xff] }
 0x63f   :  { %4846 = vmatmul.mubr.msk.f32.gmra.mrb[24].mxu0 %vm565_vm1, %v1946_v55 }
 0x641   :  { %v1906_v10 = vpop.permute.xlu0 %1905 }
 0x642   :  { %v1947_v61 = vsel %vm525_vm0, %v1859_v52, %v1906_v10  ;;  %v5229_v52 = vpack.c.bf16 %v2363_v2, %v2362_v35 }
 0x643   :  { %4848 = vmatprep.mubr.msk.f32.mxu0 %vm565_vm1, %v1947_v61 }
 0x644   :  { %5230 = vmatprep.subr.bf16.mxu0 %v5229_v52 }
 0x645   :  { %v1908_v37 = vpop.permute.xlu1 %1907  ;;  %5232 = vmatpush3.bf16.msra.mxu0 %v5229_v52 }
 0x646   :  { %v1948_v5 = vsel %vm525_vm0, %v1860_v23, %v1908_v37 }
 0x647   :  { %4849 = vmatmul.mubr.msk.f32.gmra.mrb[26].mxu0 %vm565_vm1, %v1948_v5 }
 0x649   :  { %v1910_v49 = vpop.permute.xlu0 %1909 }
 0x64a   :  { %v1949_v14 = vsel %vm525_vm0, %v7117_v7, %v1910_v49 }
 0x64b   :  { %4851 = vmatprep.mubr.msk.f32.mxu0 %vm565_vm1, %v1949_v14 }
 0x64d   :  { %v1912_v42 = vpop.permute.xlu1 %1911 }
 0x64e   :  { %v1950_v11 = vsel %vm525_vm0, %v7125_v15, %v1912_v42 }
 0x64f   :  { %4852 = vmatmul.mubr.msk.f32.gmra.mrb[28].mxu0 %vm565_vm1, %v1950_v11 }
 0x651   :  { %v1914_v62 = vpop.permute.xlu0 %1913 }
 0x652   :  { %v1951_v26 = vsel %vm525_vm0, %v7133_v36, %v1914_v62 }
 0x653   :  { %4854 = vmatprep.mubr.msk.f32.mxu0 %vm565_vm1, %v1951_v26 }
 0x655   :  { %v1916_v47 = vpop.permute.xlu1 %1915 }
 0x656   :  { %v1952_v25 = vsel %vm525_vm0, %v7141_v18, %v1916_v47 }
 0x657   :  { %4855 = vmatmul.mubr.msk.f32.gmra.mrb[30].mxu0 %vm565_vm1, %v1952_v25 }
 0x659   :  { %v1918_v40 = vpop.permute.xlu0 %1917 }
 0x65a   :  { %v1953_v53 = vsel %vm525_vm0, %v7149_v60, %v1918_v40 }
 0x65b   :  { %4857 = vmatprep.mubr.msk.f32.mxu0 %vm565_vm1, %v1953_v53 }
 0x65d   :  { %v1920_v58 = vpop.permute.xlu1 %1919 }
 0x65e   :  { %v1954_v9 = vsel %vm525_vm0, %v7157_v33, %v1920_v58 }
 0x65f   :  { %4858 = vmatmul.mubr.msk.f32.gmra.mrb[32].mxu0 %vm565_vm1, %v1954_v9 }
 0x661   :  { %v1922_v50 = vpop.permute.xlu0 %1921 }
 0x662   :  { %v1955_v30 = vsel %vm525_vm0, %v7165_v56, %v1922_v50 }
 0x663   :  { %4860 = vmatprep.mubr.msk.f32.mxu0 %vm565_vm1, %v1955_v30 }
 0x665   :  { %v1924_v34 = vpop.permute.xlu1 %1923 }
 0x666   :  { %v1956_v43 = vsel %vm525_vm0, %v7173_v48, %v1924_v34 }
 0x667   :  { %4861 = vmatmul.mubr.msk.f32.gmra.mrb[34].mxu0 %vm565_vm1, %v1956_v43 }
 0x702   :  { %v4841_v16 = vpop.f32.mrb[20].mxu0 }
 0x703   :  { %v7325_v46 = vadd.f32 %v4841_v16, %v7322_v28  ;;  %v2088_v45 = vpop.f32.mrb[21].mxu0 }
 0x704   :  { %v7328_v17 = vadd.f32 %v7322_v28, %v2088_v45 }
 0x705   :  { %v4365_v59 = vmul.f32 -1.442695, %v7325_v46 }
 0x706   :  { %v4364_v31 = vmul.f32 -1.442695, %v7328_v17 }
 0x707   :  { %5688 = vpow2.f32 %v4365_v59 }
 0x708   :  { %5690 = vpow2.f32 %v4364_v31 }
 0x70a   :  { %v4844_v27 = vpop.f32.mrb[22].mxu0 }
 0x70b   :  { %v7333_v41 = vadd.f32 %v4844_v27, %v7322_v28  ;;  %v2098_v3 = vpop.f32.mrb[23].mxu0 }
 0x70c   :  { %v7336_v51 = vadd.f32 %v7322_v28, %v2098_v3 }
 0x70d   :  { %v4367_v63 = vmul.f32 -1.442695, %v7333_v41 }
 0x70e   :  { %v4366_v19 = vmul.f32 -1.442695, %v7336_v51 }
 0x70f   :  { %5692 = vpow2.f32 %v4367_v63 }
 0x710   :  { %5694 = vpow2.f32 %v4366_v19 }
 0x711   :  { %v5689_v39 = vpop.eup %5688 }
 0x712   :  { %v5691_v38 = vpop.eup %5690  ;;  %v2232_v55 = vadd.f32 1.0, %v5689_v39  ;;  %v4847_v1 = vpop.f32.mrb[24].mxu0 }
 0x713   :  { %v2231_v10 = vadd.f32 1.0, %v5691_v38  ;;  %v7341_v61 = vadd.f32 %v4847_v1, %v7322_v28  ;;  %v2108_v23 = vpop.f32.mrb[25].mxu0 }
 0x714   :  { %5696 = vrcp.f32 %v2232_v55  ;;  %v7344_v37 = vadd.f32 %v7322_v28, %v2108_v23 }
 0x715   :  { %5698 = vrcp.f32 %v2231_v10  ;;  %v4369_v5 = vmul.f32 -1.442695, %v7341_v61 }
 0x716   :  { %v4368_v49 = vmul.f32 -1.442695, %v7344_v37 }
 0x717   :  { %5700 = vpow2.f32 %v4369_v5 }
 0x718   :  { %5702 = vpow2.f32 %v4368_v49 }
 0x719   :  { %v5693_v14 = vpop.eup %5692 }
 0x71a   :  { %v5695_v42 = vpop.eup %5694  ;;  %v2234_v11 = vadd.f32 1.0, %v5693_v14  ;;  %v4850_v62 = vpop.f32.mrb[26].mxu0 }
 0x71b   :  { %v2233_v26 = vadd.f32 1.0, %v5695_v42  ;;  %v7349_v47 = vadd.f32 %v4850_v62, %v7322_v28  ;;  %v2118_v25 = vpop.f32.mrb[27].mxu0 }
 0x71c   :  { %5704 = vrcp.f32 %v2234_v11  ;;  %v7352_v40 = vadd.f32 %v7322_v28, %v2118_v25 }
 0x71d   :  { %5706 = vrcp.f32 %v2233_v26  ;;  %v4371_v53 = vmul.f32 -1.442695, %v7349_v47 }
 0x71e   :  { %v5697_v58 = vpop.eup %5696  ;;  %v4370_v9 = vmul.f32 -1.442695, %v7352_v40 }
 0x71f   :  { %v5699_v50 = vpop.eup %5698  ;;  %5708 = vpow2.f32 %v4371_v53  ;;  %2297 = vrot.lane.b32.xlu1 %v5697_v58, %s6128_s30 }
 0x720   :  { %2295 = vrot.lane.b32.xlu0 %v5699_v50, %s6128_s30  ;;  %5710 = vpow2.f32 %v4370_v9 }
 0x721   :  { %v5701_v30 = vpop.eup %5700 }
 0x722   :  { %v2236_v34 = vadd.f32 1.0, %v5701_v30  ;;  %v4853_v43 = vpop.f32.mrb[28].mxu0  ;;  %v5703_v13 = vpop.eup %5702 }
 0x723   :  { %v7359_v29 = vadd.f32 %v4853_v43, %v7322_v28  ;;  %v2128_v57 = vpop.f32.mrb[29].mxu0  ;;  %v2235_v16 = vadd.f32 1.0, %v5703_v13 }
 0x724   :  { %5712 = vrcp.f32 %v2236_v34  ;;  %v7362_v45 = vadd.f32 %v7322_v28, %v2128_v57 }
 0x725   :  { %v4373_v59 = vmul.f32 -1.442695, %v7359_v29  ;;  %5714 = vrcp.f32 %v2235_v16 }
 0x726   :  { %v5705_v31 = vpop.eup %5704  ;;  %v4372_v27 = vmul.f32 -1.442695, %v7362_v45 }
 0x727   :  { %v5707_v3 = vpop.eup %5706  ;;  %5716 = vpow2.f32 %v4373_v59  ;;  %2301 = vrot.lane.b32.xlu1 %v5705_v31, %s6128_s30 }
 0x728   :  { %2299 = vrot.lane.b32.xlu0 %v5707_v3, %s6128_s30  ;;  %5718 = vpow2.f32 %v4372_v27 }
 0x729   :  { %v5709_v63 = vpop.eup %5708 }
 0x72a   :  { %v2238_v19 = vadd.f32 1.0, %v5709_v63  ;;  %v4856_v39 = vpop.f32.mrb[30].mxu0  ;;  %v5711_v35 = vpop.eup %5710 }
 0x72b   :  { %v7369_v2 = vadd.f32 %v4856_v39, %v7322_v28  ;;  %v2138_v38 = vpop.f32.mrb[31].mxu0  ;;  %v2237_v55 = vadd.f32 1.0, %v5711_v35 }
 0x72c   :  { %5720 = vrcp.f32 %v2238_v19  ;;  %v7372_v1 = vadd.f32 %v7322_v28, %v2138_v38 }
 0x72d   :  { %v4375_v52 = vmul.f32 -1.442695, %v7369_v2  ;;  %5722 = vrcp.f32 %v2237_v55 }
 0x72e   :  { %v5713_v10 = vpop.eup %5712  ;;  %v4374_v23 = vmul.f32 -1.442695, %v7372_v1 }
 0x72f   :  { %5724 = vpow2.f32 %v4375_v52  ;;  %2305 = vrot.lane.b32.xlu1 %v5713_v10, %s6128_s30  ;;  %v5715_v5 = vpop.eup %5714 }
 0x730   :  { %5726 = vpow2.f32 %v4374_v23  ;;  %2303 = vrot.lane.b32.xlu0 %v5715_v5, %s6128_s30 }
 0x731   :  { %v5717_v49 = vpop.eup %5716 }
 0x732   :  { %v2240_v14 = vadd.f32 1.0, %v5717_v49  ;;  %v4859_v42 = vpop.f32.mrb[32].mxu0  ;;  %v5719_v11 = vpop.eup %5718 }
 0x733   :  { %v7379_v62 = vadd.f32 %v4859_v42, %v7322_v28  ;;  %v2148_v26 = vpop.f32.mrb[33].mxu0  ;;  %v2239_v25 = vadd.f32 1.0, %v5719_v11 }
 0x734   :  { %5728 = vrcp.f32 %v2240_v14  ;;  %v7382_v53 = vadd.f32 %v7322_v28, %v2148_v26 }
 0x735   :  { %v4377_v58 = vmul.f32 -1.442695, %v7379_v62  ;;  %5730 = vrcp.f32 %v2239_v25 }
 0x736   :  { %v5721_v9 = vpop.eup %5720  ;;  %v4376_v50 = vmul.f32 -1.442695, %v7382_v53 }
 0x737   :  { %5732 = vpow2.f32 %v4377_v58  ;;  %2309 = vrot.lane.b32.xlu1 %v5721_v9, %s6128_s30  ;;  %v5723_v30 = vpop.eup %5722 }
 0x738   :  { %5734 = vpow2.f32 %v4376_v50  ;;  %2307 = vrot.lane.b32.xlu0 %v5723_v30, %s6128_s30 }
 0x739   :  { %v5725_v34 = vpop.eup %5724 }
 0x73a   :  { %v2242_v43 = vadd.f32 1.0, %v5725_v34  ;;  %v4862_v13 = vpop.f32.mrb[34].mxu0  ;;  %v5727_v57 = vpop.eup %5726 }
 0x73b   :  { %v7389_v16 = vadd.f32 %v4862_v13, %v7322_v28  ;;  %v2158_v59 = vpop.f32.mrb[35].mxu0  ;;  %v2241_v31 = vadd.f32 1.0, %v5727_v57 }
 0x73c   :  { %5736 = vrcp.f32 %v2242_v43  ;;  %v7392_v27 = vadd.f32 %v7322_v28, %v2158_v59 }
 0x73d   :  { %v4379_v3 = vmul.f32 -1.442695, %v7389_v16  ;;  %5738 = vrcp.f32 %v2241_v31 }
 0x73e   :  { %v5729_v63 = vpop.eup %5728  ;;  %v4378_v19 = vmul.f32 -1.442695, %v7392_v27 }
 0x73f   :  { %5740 = vpow2.f32 %v4379_v3  ;;  %2313 = vrot.lane.b32.xlu1 %v5729_v63, %s6128_s30  ;;  %v5731_v39 = vpop.eup %5730 }
 0x740   :  { %5742 = vpow2.f32 %v4378_v19  ;;  %2311 = vrot.lane.b32.xlu0 %v5731_v39, %s6128_s30 }
 0x741   :  { %v5733_v35 = vpop.eup %5732 }
 0x742   :  { %v2244_v38 = vadd.f32 1.0, %v5733_v35  ;;  %v5735_v55 = vpop.eup %5734 }
 0x743   :  { %v2243_v52 = vadd.f32 1.0, %v5735_v55 }
 0x744   :  { %5744 = vrcp.f32 %v2244_v38 }
 0x745   :  { %5746 = vrcp.f32 %v2243_v52 }
 0x746   :  { %v5737_v28 = vpop.eup %5736 }
 0x747   :  { %2317 = vrot.lane.b32.xlu1 %v5737_v28, %s6128_s30  ;;  %v5739_v10 = vpop.eup %5738 }
 0x748   :  { %2315 = vrot.lane.b32.xlu0 %v5739_v10, %s6128_s30 }
 0x749   :  { %v5741_v23 = vpop.eup %5740 }
 0x74a   :  { %v2246_v5 = vadd.f32 1.0, %v5741_v23  ;;  %v5743_v49 = vpop.eup %5742 }
 0x74b   :  { %v2245_v14 = vadd.f32 1.0, %v5743_v49 }
 0x74c   :  { %5748 = vrcp.f32 %v2246_v5 }
 0x74d   :  { %5750 = vrcp.f32 %v2245_v14 }
 0x74e   :  { %v5745_v42 = vpop.eup %5744  ;;  %5752 = vtanh.f32 %v7328_v17 }
 0x74f   :  { %2321 = vrot.lane.b32.xlu1 %v5745_v42, %s6128_s30  ;;  %v5747_v11 = vpop.eup %5746  ;;  %5754 = vtanh.f32 %v7325_v46 }
 0x750   :  { %2319 = vrot.lane.b32.xlu0 %v5747_v11, %s6128_s30  ;;  %5756 = vtanh.f32 %v7336_v51 }
 0x751   :  { %5758 = vtanh.f32 %v7333_v41 }
 0x752   :  { %5760 = vtanh.f32 %v7344_v37 }
 0x753   :  { %5762 = vtanh.f32 %v7341_v61 }
 0x754   :  { %5764 = vtanh.f32 %v7352_v40 }
 0x755   :  { %5766 = vtanh.f32 %v7349_v47 }
 0x756   :  { %v5749_v26 = vpop.eup %5748  ;;  %5768 = vtanh.f32 %v7362_v45 }
 0x757   :  { %2325 = vrot.lane.b32.xlu1 %v5749_v26, %s6128_s30  ;;  %v5751_v25 = vpop.eup %5750  ;;  %5770 = vtanh.f32 %v7359_v29 }
 0x758   :  { %2323 = vrot.lane.b32.xlu0 %v5751_v25, %s6128_s30  ;;  %v5753_v9 = vpop.eup %5752  ;;  %5772 = vtanh.f32 %v7372_v1 }
 0x759   :  { %v5755_v30 = vpop.eup %5754  ;;  %5774 = vtanh.f32 %v7369_v2 }
 0x75a   :  { %v5757_v17 = vpop.eup %5756  ;;  %5776 = vtanh.f32 %v7382_v53 }
 0x75b   :  { %v5759_v51 = vpop.eup %5758  ;;  %5778 = vtanh.f32 %v7379_v62 }
 0x75c   :  { %v5761_v31 = vpop.eup %5760  ;;  %5780 = vtanh.f32 %v7392_v27 }
 0x75d   :  { %v5763_v37 = vpop.eup %5762  ;;  %5782 = vtanh.f32 %v7389_v16 }
 0x75e   :  { %v5765_v39 = vpop.eup %5764 }
 0x75f   :  { %v5767_v40 = vpop.eup %5766 }
 0x760   :  { %v5769_v52 = vpop.eup %5768 }
 0x761   :  { %v5771_v45 = vpop.eup %5770 }
 0x762   :  { %v5773_v5 = vpop.eup %5772 }
 0x763   :  { %v5775_v1 = vpop.eup %5774 }
 0x764   :  { %v5777_v11 = vpop.eup %5776 }
 0x765   :  { %v5779_v53 = vpop.eup %5778 }
 0x791   :  { %v2298_v58 = vpop.permute.xlu1 %2297 }
 0x792   :  { %v2296_v50 = vpop.permute.xlu0 %2295  ;;  %v2344_v43 = vmul.f32 %v5755_v30, %v2298_v58 }
 0x793   :  { %v2343_v34 = vmul.f32 %v5753_v9, %v2296_v50  ;;  %v5781_v9 = vpop.eup %5780 }
 0x794   :  { %v5783_v30 = vpop.eup %5782 }
 0x795   :  { %4871 = vmatprep.mubr.msk.f32.mxu0 %vm525_vm0, %v2343_v34 }
 0x796   :  { %4872 = vmatmul.mubr.msk.f32.vlgmr.msra.gmra.mrb[36].mxu0 %vm525_vm0, %v2344_v43 }
 0x799   :  { %v2302_v13 = vpop.permute.xlu1 %2301 }
 0x79a   :  { %v2300_v46 = vpop.permute.xlu0 %2299  ;;  %v2346_v41 = vmul.f32 %v5759_v51, %v2302_v13 }
 0x79b   :  { %v2345_v57 = vmul.f32 %v5757_v17, %v2300_v46 }
 0x79d   :  { %4874 = vmatprep.mubr.msk.f32.mxu0 %vm525_vm0, %v2345_v57 }
 0x79e   :  { %4875 = vmatmul.mubr.msk.f32.gmra.mrb[38].mxu0 %vm525_vm0, %v2346_v41 }
 0x7a1   :  { %v2306_v59 = vpop.permute.xlu1 %2305 }
 0x7a2   :  { %v2304_v3 = vpop.permute.xlu0 %2303  ;;  %v2348_v19 = vmul.f32 %v5763_v37, %v2306_v59 }
 0x7a3   :  { %v2347_v63 = vmul.f32 %v5761_v31, %v2304_v3 }
 0x7a5   :  { %4877 = vmatprep.mubr.msk.f32.mxu0 %vm525_vm0, %v2347_v63 }
 0x7a6   :  { %4878 = vmatmul.mubr.msk.f32.gmra.mrb[40].mxu0 %vm525_vm0, %v2348_v19 }
 0x7a9   :  { %v2310_v61 = vpop.permute.xlu1 %2309 }
 0x7aa   :  { %v2308_v35 = vpop.permute.xlu0 %2307  ;;  %v2350_v47 = vmul.f32 %v5767_v40, %v2310_v61 }
 0x7ab   :  { %v2349_v38 = vmul.f32 %v5765_v39, %v2308_v35 }
 0x7ad   :  { %4880 = vmatprep.mubr.msk.f32.mxu0 %vm525_vm0, %v2349_v38  ;;  %v4318_v38 = vld [vmem:[#allocation9] ss:$0 sm:$0xff] }
 0x7ae   :  { %4881 = vmatmul.mubr.msk.f32.gmra.mrb[42].mxu0 %vm525_vm0, %v2350_v47  ;;  %v4396_v47 = vld [vmem:[#allocation9 + $0x1] ss:$0 sm:$0xff] }
 0x7b1   :  { %v2314_v55 = vpop.permute.xlu1 %2313 }
 0x7b2   :  { %v2312_v28 = vpop.permute.xlu0 %2311  ;;  %v2352_v29 = vmul.f32 %v5771_v45, %v2314_v55 }
 0x7b3   :  { %v2351_v10 = vmul.f32 %v5769_v52, %v2312_v28  ;;  %v1380_v52 = vadd.f32 %v6890_v22, %v4318_v38  ;;  %v1381_v22 = vadd.f32 %v4318_v38, %v6903_v44 }
 0x7b5   :  { %4883 = vmatprep.mubr.msk.f32.mxu0 %vm525_vm0, %v2351_v10  ;;  %v1379_v10 = vadd.f32 %v4318_v38, %v6892_v6 }
 0x7b6   :  { %4884 = vmatmul.mubr.msk.f32.gmra.mrb[44].mxu0 %vm525_vm0, %v2352_v29 }
 0x7b9   :  { %v2318_v23 = vpop.permute.xlu1 %2317 }
 0x7ba   :  { %v2316_v49 = vpop.permute.xlu0 %2315  ;;  %v2354_v2 = vmul.f32 %v5775_v1, %v2318_v23  ;;  %v2573_v1 = vld [vmem:[#allocation12] sm:$0xff] }
 0x7bb   :  { %v2353_v14 = vmul.f32 %v5773_v5, %v2316_v49 }
 0x7bd   :  { %4886 = vmatprep.mubr.msk.f32.mxu0 %vm525_vm0, %v2353_v14 }
 0x7be   :  { %4887 = vmatmul.mubr.msk.f32.gmra.mrb[46].mxu0 %vm525_vm0, %v2354_v2  ;;  %v1382_v2 = vadd.f32 %v6901_v8, %v4318_v38 }
 0x7c1   :  { %v2322_v42 = vpop.permute.xlu1 %2321 }
 0x7c2   :  { %v2320_v26 = vpop.permute.xlu0 %2319  ;;  %v2356_v62 = vmul.f32 %v5779_v53, %v2322_v42 }
 0x7c3   :  { %v2355_v25 = vmul.f32 %v5777_v11, %v2320_v26 }
 0x7c5   :  { %4889 = vmatprep.mubr.msk.f32.mxu0 %vm525_vm0, %v2355_v25 }
 0x7c6   :  { %4890 = vmatmul.mubr.msk.f32.gmra.mrb[48].mxu0 %vm525_vm0, %v2356_v62 }
 0x7c9   :  { %v2326_v58 = vpop.permute.xlu1 %2325 }
 0x7ca   :  { %v2324_v50 = vpop.permute.xlu0 %2323  ;;  %v2358_v43 = vmul.f32 %v5783_v30, %v2326_v58 }
 0x7cb   :  { %v2357_v34 = vmul.f32 %v5781_v9, %v2324_v50 }
 0x7cd   :  { %4892 = vmatprep.mubr.msk.f32.mxu0 %vm525_vm0, %v2357_v34 }
 0x7ce   :  { %4893 = vmatmul.mubr.msk.f32.gmra.mrb[50].mxu0 %vm525_vm0, %v2358_v43 }
 0x7cf   :  { %4927 = vmatprep.mubr.f32.mxu0 %v2573_v1  ;;  %v2578_v1 = vld [vmem:[#allocation12 + $0x28] sm:$0xff] }
 0x869   :  { %v4873_v16 = vpop.f32.mrb[36].mxu0 }
 0x86a   :  { %v2478_v27 = vpop.f32.mrb[37].mxu0 }
 0x86b   :  { %v5474_v13 = vpack.i.bf16 %v4873_v16, %v2478_v27 }
 0x86d   :  { %5475 = vrot.lane.b32.xlu0 %v5474_v13, %s6130_s26 }
 0x871   :  { %v4876_v17 = vpop.f32.mrb[38].mxu0 }
 0x872   :  { %v2488_v46 = vpop.f32.mrb[39].mxu0 }
 0x873   :  { %v5479_v51 = vpack.i.bf16 %v4876_v17, %v2488_v46 }
 0x875   :  { %5480 = vrot.lane.b32.xlu1 %v5479_v51, %s6130_s26 }
 0x879   :  { %v4879_v57 = vpop.f32.mrb[40].mxu0 }
 0x87a   :  { %v2498_v41 = vpop.f32.mrb[41].mxu0 }
 0x87b   :  { %v5484_v59 = vpack.i.bf16 %v4879_v57, %v2498_v41 }
 0x87d   :  { %5485 = vrot.lane.b32.xlu0 %v5484_v59, %s6130_s26 }
 0x881   :  { %v4882_v31 = vpop.f32.mrb[42].mxu0 }
 0x882   :  { %v2508_v3 = vpop.f32.mrb[43].mxu0 }
 0x883   :  { %v5489_v37 = vpack.i.bf16 %v4882_v31, %v2508_v3 }
 0x885   :  { %5490 = vrot.lane.b32.xlu1 %v5489_v37, %s6130_s26 }
 0x889   :  { %v4885_v63 = vpop.f32.mrb[44].mxu0 }
 0x88a   :  { %v2518_v19 = vpop.f32.mrb[45].mxu0 }
 0x88b   :  { %v5494_v61 = vpack.i.bf16 %v4885_v63, %v2518_v19 }
 0x88d   :  { %5495 = vrot.lane.b32.xlu0 %v5494_v61, %s6130_s26 }
 0x891   :  { %v4888_v39 = vpop.f32.mrb[46].mxu0 }
 0x892   :  { %v2528_v35 = vpop.f32.mrb[47].mxu0 }
 0x893   :  { %v5499_v40 = vpack.i.bf16 %v4888_v39, %v2528_v35 }
 0x895   :  { %5500 = vrot.lane.b32.xlu1 %v5499_v40, %s6130_s26 }
 0x899   :  { %v4891_v55 = vpop.f32.mrb[48].mxu0 }
 0x89a   :  { %v2566_v28 = vadd.f32 %v4891_v55, %v4396_v47  ;;  %v2538_v45 = vpop.f32.mrb[49].mxu0 }
 0x89b   :  { %v5504_v29 = vpack.i.bf16 %v4891_v55, %v2538_v45  ;;  %v2565_v23 = vadd.f32 %v4396_v47, %v2538_v45  ;;  %v2574_v45 = vld [vmem:[#allocation12 + $0x8] sm:$0xff] }
 0x89c   :  { %v7444_v5 = vadd.f32 %v2566_v28, %v1380_v52 }
 0x89d   :  { %v7446_v49 = vadd.f32 %v2565_v23, %v1379_v10  ;;  %5505 = vrot.lane.b32.xlu0 %v5504_v29, %s6130_s26  ;;  %v2575_v10 = vld [vmem:[#allocation12 + $0x10] sm:$0xff]  ;;  %v2576_v29 = vld [vmem:[#allocation12 + $0x18] sm:$0xff]  ;;  %v2577_v23 = vld [vmem:[#allocation12 + $0x20] sm:$0xff] }
 0x8a1   :  { %v4894_v14 = vpop.f32.mrb[50].mxu0 }
 0x8a2   :  { %v2568_v42 = vadd.f32 %v4894_v14, %v4396_v47  ;;  %v2548_v11 = vpop.f32.mrb[51].mxu0 }
 0x8a3   :  { %v5509_v26 = vpack.i.bf16 %v4894_v14, %v2548_v11  ;;  %v2567_v53 = vadd.f32 %v4396_v47, %v2548_v11  ;;  %v2579_v14 = vld [vmem:[#allocation12 + $0x30] sm:$0xff]  ;;  %v2582_v11 = vld [vmem:[#allocation12 + $0x48] sm:$0xff] }
 0x8a4   :  { %v7451_v6 = vadd.f32 %v2568_v42, %v1382_v2  ;;  %v2580_v2 = vld [vmem:[#allocation12 + $0x38] sm:$0xff]  ;;  %v2581_v42 = vld [vmem:[#allocation12 + $0x40] sm:$0xff] }
 0x8a5   :  { %v7453_v25 = vadd.f32 %v2567_v53, %v1381_v22  ;;  %5510 = vrot.lane.b32.xlu1 %v5509_v26, %s6130_s26  ;;  %v2583_v22 = vld [vmem:[#allocation12 + $0x50] sm:$0xff]  ;;  %v2584_v26 = vld [vmem:[#allocation12 + $0x58] sm:$0xff]  ;;  %v2585_v53 = vld [vmem:[#allocation12 + $0x60] sm:$0xff] }
 0x8df   :  { %v5476_v62 = vpop.permute.xlu0 %5475 }
 0x8e0   :  { %v5478_v58 = vunpack.i.h.bf16 %v5476_v62  ;;  %v5477_v9 = vunpack.i.l.bf16 %v5476_v62  ;;  %v2586_v62 = vld [vmem:[#allocation12 + $0x68] sm:$0xff] }
 0x8e2   :  { %v5233_v50 = vpack.c.bf16 %v5478_v58, %v5477_v9  ;;  %v2587_v58 = vld [vmem:[#allocation12 + $0x70] sm:$0xff]  ;;  %v2588_v9 = vld [vmem:[#allocation12 + $0x78] sm:$0xff] }
 0x8e4   :  { %5234 = vmatprep.subr.bf16.mxu0 %v5233_v50 }
 0x8e5   :  { %5236 = vmatpush3.bf16.msra.mxu0 %v5233_v50  ;;  %v2931_v50 = vld [vmem:[#allocation6 + $0x80] sm:$0xff] }
 0x8e7   :  { %v5481_v30 = vpop.permute.xlu1 %5480 }
 0x8e8   :  { %v5483_v8 = vunpack.i.h.bf16 %v5481_v30  ;;  %v5482_v34 = vunpack.i.l.bf16 %v5481_v30  ;;  %v2932_v30 = vld [vmem:[#allocation6 + $0x88] sm:$0xff] }
 0x8ea   :  { %v5237_v43 = vpack.c.bf16 %v5483_v8, %v5482_v34  ;;  %v2933_v8 = vld [vmem:[#allocation6 + $0x90] sm:$0xff]  ;;  %v5265_v34 = vpack.c.bf16 %v2932_v30, %v2931_v50 }
 0x8ec   :  { %5238 = vmatprep.subr.bf16.mxu0 %v5237_v43  ;;  %5266 = vmatprep.subr.bf16.mxu1 %v5265_v34 }
 0x8ed   :  { %5240 = vmatpush3.bf16.msra.mxu0 %v5237_v43  ;;  %v2934_v43 = vld [vmem:[#allocation6 + $0x98] sm:$0xff]  ;;  %5268 = vmatpush3.bf16.msra.mxu1 %v5265_v34 }
 0x8ef   :  { %v5486_v44 = vpop.permute.xlu0 %5485 }
 0x8f0   :  { %v5488_v16 = vunpack.i.h.bf16 %v5486_v44  ;;  %v5487_v27 = vunpack.i.l.bf16 %v5486_v44  ;;  %v5269_v44 = vpack.c.bf16 %v2934_v43, %v2933_v8 }
 0x8f2   :  { %v5241_v13 = vpack.c.bf16 %v5488_v16, %v5487_v27  ;;  %v2935_v16 = vld [vmem:[#allocation6 + $0xa0] sm:$0xff]  ;;  %v2936_v27 = vld [vmem:[#allocation6 + $0xa8] sm:$0xff]  ;;  %5270 = vmatprep.subr.bf16.mxu1 %v5269_v44 }
 0x8f3   :  { %5272 = vmatpush3.bf16.msra.mxu1 %v5269_v44 }
 0x8f4   :  { %5242 = vmatprep.subr.bf16.mxu0 %v5241_v13 }
 0x8f5   :  { %5244 = vmatpush3.bf16.msra.mxu0 %v5241_v13  ;;  %v5273_v13 = vpack.c.bf16 %v2936_v27, %v2935_v16 }
 0x8f7   :  { %v5491_v17 = vpop.permute.xlu1 %5490  ;;  %5274 = vmatprep.subr.bf16.mxu1 %v5273_v13 }
 0x8f8   :  { %v5493_v46 = vunpack.i.h.bf16 %v5491_v17  ;;  %v5492_v51 = vunpack.i.l.bf16 %v5491_v17  ;;  %v2937_v17 = vld [vmem:[#allocation6 + $0xb0] sm:$0xff]  ;;  %5276 = vmatpush3.bf16.msra.mxu1 %v5273_v13 }
 0x8fa   :  { %v5245_v57 = vpack.c.bf16 %v5493_v46, %v5492_v51  ;;  %v2938_v46 = vld [vmem:[#allocation6 + $0xb8] sm:$0xff] }
 0x8fb   :  { %v5277_v51 = vpack.c.bf16 %v2938_v46, %v2937_v17 }
 0x8fc   :  { %5246 = vmatprep.subr.bf16.mxu0 %v5245_v57 }
 0x8fd   :  { %5248 = vmatpush3.bf16.msra.mxu0 %v5245_v57  ;;  %5278 = vmatprep.subr.bf16.mxu1 %v5277_v51  ;;  %v7456_v57 = vld [vmem:[#allocation10 + $0x1] ss:$0 sm:$0xff] }
 0x8fe   :  { %5280 = vmatpush3.bf16.msra.mxu1 %v5277_v51 }
 0x8ff   :  { %v5496_v41 = vpop.permute.xlu0 %5495 }
 0x900   :  { %v5498_v59 = vunpack.i.h.bf16 %v5496_v41  ;;  %v5497_v31 = vunpack.i.l.bf16 %v5496_v41 }
 0x902   :  { %v5249_v3 = vpack.c.bf16 %v5498_v59, %v5497_v31 }
 0x904   :  { %5250 = vmatprep.subr.bf16.mxu0 %v5249_v3 }
 0x905   :  { %5252 = vmatpush3.bf16.msra.mxu0 %v5249_v3  ;;  %v7462_v3 = vld [vmem:[%s7840_s12 + $0x1] ss:$0 sm:$0xff] }
 0x907   :  { %v5501_v37 = vpop.permute.xlu1 %5500 }
 0x908   :  { %v5503_v63 = vunpack.i.h.bf16 %v5501_v37  ;;  %v5502_v19 = vunpack.i.l.bf16 %v5501_v37 }
 0x90a   :  { %v5253_v61 = vpack.c.bf16 %v5503_v63, %v5502_v19 }
 0x90c   :  { %5254 = vmatprep.subr.bf16.mxu0 %v5253_v61 }
 0x90d   :  { %5256 = vmatpush3.bf16.msra.mxu0 %v5253_v61 }
 0x90f   :  { %v5506_v39 = vpop.permute.xlu0 %5505 }
 0x910   :  { %v5508_v35 = vunpack.i.h.bf16 %v5506_v39  ;;  %v5507_v40 = vunpack.i.l.bf16 %v5506_v39  ;;  %v7470_v39 = vld [vmem:[%s7841_s13 + $0x1] ss:$0 sm:$0xff] }
 0x912   :  { %v5257_v38 = vpack.c.bf16 %v5508_v35, %v5507_v40 }
 0x914   :  { %5258 = vmatprep.subr.bf16.mxu0 %v5257_v38 }
 0x915   :  { %5260 = vmatpush3.bf16.msra.mxu0 %v5257_v38 }
 0x917   :  { %v5511_v47 = vpop.permute.xlu1 %5510 }
 0x918   :  { %v5513_v55 = vunpack.i.h.bf16 %v5511_v47  ;;  %v5512_v52 = vunpack.i.l.bf16 %v5511_v47 }
 0x91a   :  { %v5261_v28 = vpack.c.bf16 %v5513_v55, %v5512_v52 }
 0x91c   :  { %5262 = vmatprep.subr.bf16.mxu0 %v5261_v28 }
 0x91d   :  { %5264 = vmatpush3.bf16.msra.mxu0 %v5261_v28 }
 0x920   :  { %4928 = vmatmul.mubr.f32.vlgmr.msra.gmra.mrb[52].mxu0 %v2574_v45 }
 0x921   :  { %4930 = vmatprep.mubr.f32.mxu0 %v2575_v10 }
 0x924   :  { %4931 = vmatmul.mubr.f32.gmra.mrb[54].mxu0 %v2576_v29 }
 0x925   :  { %4933 = vmatprep.mubr.f32.mxu0 %v2577_v23 }
 0x928   :  { %4934 = vmatmul.mubr.f32.gmra.mrb[56].mxu0 %v2578_v1 }
 0x929   :  { %4936 = vmatprep.mubr.f32.mxu0 %v2579_v14 }
 0x92c   :  { %4937 = vmatmul.mubr.f32.gmra.mrb[58].mxu0 %v2580_v2 }
 0x92d   :  { %4939 = vmatprep.mubr.f32.mxu0 %v2581_v42 }
 0x930   :  { %4940 = vmatmul.mubr.f32.gmra.mrb[60].mxu0 %v2582_v11 }
 0x931   :  { %4942 = vmatprep.mubr.f32.mxu0 %v2583_v22 }
 0x934   :  { %4943 = vmatmul.mubr.f32.gmra.mrb[62].mxu0 %v2584_v26 }
 0x935   :  { %4945 = vmatprep.mubr.f32.mxu0 %v2585_v53 }
 0x938   :  { %4946 = vmatmul.mubr.f32.gmra.mrb[64].mxu0 %v2586_v62 }
 0x939   :  { %4948 = vmatprep.mubr.f32.mxu0 %v2587_v58 }
 0x93c   :  { %4949 = vmatmul.mubr.f32.gmra.mrb[66].mxu0 %v2588_v9 }
 0x9f3   :  { %v4929_v41 = vpop.f32.mrb[52].mxu0 }
 0x9f4   :  { %v2733_v59 = vadd.f32 %v4929_v41, %v7456_v57  ;;  %v2727_v31 = vpop.f32.mrb[53].mxu0 }
 0x9f5   :  { %v2728_v37 = vadd.f32 %v7456_v57, %v2727_v31 }
 0x9f6   :  { %v2807_v63 = vadd.f32 %v2733_v59, %v7125_v15 }
 0x9f7   :  { %v2806_v19 = vadd.f32 %v2728_v37, %v7117_v7  ;;  %v4932_v61 = vpop.f32.mrb[54].mxu0 }
 0x9f8   :  { %v2831_v35 = vmul.f32 %v7462_v3, %v2807_v63  ;;  %v2743_v40 = vadd.f32 %v4932_v61, %v7456_v57  ;;  %v2737_v38 = vpop.f32.mrb[55].mxu0 }
 0x9f9   :  { %v2830_v47 = vmul.f32 %v7462_v3, %v2806_v19  ;;  %v2738_v55 = vadd.f32 %v7456_v57, %v2737_v38 }
 0x9fa   :  { %v2809_v52 = vadd.f32 %v2743_v40, %v7141_v18  ;;  %v7478_v15 = vadd.f32 %v7470_v39, %v2831_v35 }
 0x9fb   :  { %v2808_v7 = vadd.f32 %v2738_v55, %v7133_v36  ;;  %v4935_v28 = vpop.f32.mrb[56].mxu0  ;;  %v7482_v45 = vadd.f32 %v7470_v39, %v2830_v47 }
 0x9fc   :  { %v2833_v10 = vmul.f32 %v7462_v3, %v2809_v52  ;;  %v2753_v29 = vadd.f32 %v4935_v28, %v7456_v57  ;;  %v2747_v23 = vpop.f32.mrb[57].mxu0 }
 0x9fd   :  { %v2832_v1 = vmul.f32 %v7462_v3, %v2808_v7  ;;  %v2748_v14 = vadd.f32 %v7456_v57, %v2747_v23 }
 0x9fe   :  { %v2811_v18 = vadd.f32 %v2753_v29, %v7157_v33  ;;  %v7490_v2 = vadd.f32 %v7470_v39, %v2833_v10 }
 0x9ff   :  { %v2810_v36 = vadd.f32 %v2748_v14, %v7149_v60  ;;  %v4938_v42 = vpop.f32.mrb[58].mxu0  ;;  %v7494_v11 = vadd.f32 %v7470_v39, %v2832_v1 }
 0xa00   :  { %v2835_v22 = vmul.f32 %v7462_v3, %v2811_v18  ;;  %v2763_v26 = vadd.f32 %v4938_v42, %v7456_v57  ;;  %v2757_v53 = vpop.f32.mrb[59].mxu0 }
 0xa01   :  { %v2834_v62 = vmul.f32 %v7462_v3, %v2810_v36  ;;  %v2758_v58 = vadd.f32 %v7456_v57, %v2757_v53 }
 0xa02   :  { %v7501_v33 = vadd.f32 %v7470_v39, %v2835_v22  ;;  %v2813_v9 = vadd.f32 %v2763_v26, %v7173_v48 }
 0xa03   :  { %v7505_v60 = vadd.f32 %v7470_v39, %v2834_v62  ;;  %v2812_v50 = vadd.f32 %v2758_v58, %v7165_v56  ;;  %v4941_v30 = vpop.f32.mrb[60].mxu0 }
 0xa04   :  { %v2837_v8 = vmul.f32 %v7462_v3, %v2813_v9  ;;  %v2773_v34 = vadd.f32 %v4941_v30, %v7456_v57  ;;  %2884 = vrot.lane.b32.xlu1 %v7501_v33, %s6127_s21  ;;  %v2767_v43 = vpop.f32.mrb[61].mxu0 }
 0xa05   :  { %v2836_v44 = vmul.f32 %v7462_v3, %v2812_v50  ;;  %v2768_v16 = vadd.f32 %v7456_v57, %v2767_v43  ;;  %2882 = vrot.lane.b32.xlu0 %v7505_v60, %s6127_s21 }
 0xa06   :  { %v7517_v48 = vadd.f32 %v7470_v39, %v2837_v8  ;;  %v2815_v56 = vadd.f32 %v2773_v34, %v7189_v0 }
 0xa07   :  { %v7521_v27 = vadd.f32 %v7470_v39, %v2836_v44  ;;  %v2814_v13 = vadd.f32 %v2768_v16, %v7181_v24  ;;  %v4944_v17 = vpop.f32.mrb[62].mxu0 }
 0xa08   :  { %v2839_v46 = vmul.f32 %v7462_v3, %v2815_v56  ;;  %v2783_v51 = vadd.f32 %v4944_v17, %v7456_v57  ;;  %2888 = vrot.lane.b32.xlu1 %v7517_v48, %s6127_s21  ;;  %v2777_v41 = vpop.f32.mrb[63].mxu0 }
 0xa09   :  { %v2838_v59 = vmul.f32 %v7462_v3, %v2814_v13  ;;  %v2778_v31 = vadd.f32 %v7456_v57, %v2777_v41  ;;  %2886 = vrot.lane.b32.xlu0 %v7521_v27, %s6127_s21  ;;  %v3254_v41 = vld [vmem:[#allocation7 + $0x48] sm:$0xff] }
 0xa0a   :  { %v7533_v0 = vadd.f32 %v7470_v39, %v2839_v46  ;;  %v2817_v24 = vadd.f32 %v2783_v51, %v7204_v21  ;;  %v3253_v51 = vld [vmem:[#allocation7 + $0x40] sm:$0xff] }
 0xa0b   :  { %v2862_v37 = vadd.f32 %v7470_v39, %v2838_v59  ;;  %v2816_v63 = vadd.f32 %v2778_v31, %v7196_v32  ;;  %v4947_v19 = vpop.f32.mrb[64].mxu0  ;;  %v3255_v59 = vld [vmem:[#allocation7 + $0x50] sm:$0xff]  ;;  %v5281_v31 = vpack.c.bf16 %v3254_v41, %v3253_v51 }
 0xa0c   :  { %v2841_v61 = vmul.f32 %v7462_v3, %v2817_v24  ;;  %v2793_v35 = vadd.f32 %v4947_v19, %v7456_v57  ;;  %2892 = vrot.lane.b32.xlu1 %v7533_v0, %s6127_s21  ;;  %v2787_v40 = vpop.f32.mrb[65].mxu0  ;;  %v3256_v24 = vld [vmem:[#allocation7 + $0x58] sm:$0xff] }
 0xa0d   :  { %v2840_v38 = vmul.f32 %v7462_v3, %v2816_v63  ;;  %v2788_v47 = vadd.f32 %v7456_v57, %v2787_v40  ;;  %2890 = vrot.lane.b32.xlu0 %v2862_v37, %s6127_s21  ;;  %5282 = vmatprep.subr.bf16.mxu0 %v5281_v31 }
 0xa0e   :  { %v2865_v21 = vadd.f32 %v7470_v39, %v2841_v61  ;;  %v2819_v55 = vadd.f32 %v2793_v35, %v7220_v12  ;;  %5284 = vmatpush3.bf16.msra.mxu0 %v5281_v31 }
 0xa0f   :  { %v2864_v32 = vadd.f32 %v7470_v39, %v2840_v38  ;;  %v2818_v52 = vadd.f32 %v2788_v47, %v7212_v4  ;;  %v4950_v7 = vpop.f32.mrb[66].mxu0 }
 0xa10   :  { %v2843_v28 = vmul.f32 %v7462_v3, %v2819_v55  ;;  %v2803_v10 = vadd.f32 %v4950_v7, %v7456_v57  ;;  %2896 = vrot.lane.b32.xlu1 %v2865_v21, %s6127_s21  ;;  %v2797_v29 = vpop.f32.mrb[67].mxu0 }
 0xa11   :  { %v2842_v23 = vmul.f32 %v7462_v3, %v2818_v52  ;;  %v2798_v1 = vadd.f32 %v7456_v57, %v2797_v29  ;;  %2894 = vrot.lane.b32.xlu0 %v2864_v32, %s6127_s21 }
 0xa12   :  { %v7556_v12 = vadd.f32 %v7470_v39, %v2843_v28  ;;  %v2821_v14 = vadd.f32 %v2803_v10, %v7235_v54 }
 0xa13   :  { %v7560_v4 = vadd.f32 %v7470_v39, %v2842_v23  ;;  %v2820_v18 = vadd.f32 %v2798_v1, %v7228_v20 }
 0xa14   :  { %v2845_v36 = vmul.f32 %v7462_v3, %v2821_v14  ;;  %2900 = vrot.lane.b32.xlu1 %v7556_v12, %s6127_s21 }
 0xa15   :  { %v2844_v42 = vmul.f32 %v7462_v3, %v2820_v18  ;;  %2898 = vrot.lane.b32.xlu0 %v7560_v4, %s6127_s21 }
 0xa16   :  { %v7570_v57 = vadd.f32 %v7470_v39, %v2845_v36 }
 0xa17   :  { %v7573_v54 = vadd.f32 %v7470_v39, %v2844_v42 }
 0xa18   :  { %2904 = vrot.lane.b32.xlu1 %v7570_v57, %s6127_s21 }
 0xa19   :  { %2902 = vrot.lane.b32.xlu0 %v7573_v54, %s6127_s21 }
 0xa76   :  { %v2885_v20 = vpop.permute.xlu1 %2884 }
 0xa77   :  { %v2883_v22 = vpop.permute.xlu0 %2882  ;;  %v2919_v26 = vsel %vm525_vm0, %v7478_v15, %v2885_v20 }
 0xa78   :  { %v2918_v3 = vsel %vm525_vm0, %v7482_v45, %v2883_v22 }
 0xa79   :  { %4967 = vmatprep.mubr.msk.f32.mxu1 %vm565_vm1, %v2918_v3 }
 0xa7a   :  { %v2889_v53 = vpop.permute.xlu1 %2888  ;;  %4968 = vmatmul.mubr.msk.f32.vlgmr.msra.gmra.mrb[76].mxu1 %vm565_vm1, %v2919_v26 }
 0xa7b   :  { %v2887_v39 = vpop.permute.xlu0 %2886  ;;  %v2921_v58 = vsel %vm525_vm0, %v7490_v2, %v2889_v53 }
 0xa7c   :  { %v2920_v62 = vsel %vm525_vm0, %v7494_v11, %v2887_v39 }
 0xa7d   :  { %4970 = vmatprep.mubr.msk.f32.mxu1 %vm565_vm1, %v2920_v62 }
 0xa7e   :  { %v2893_v9 = vpop.permute.xlu1 %2892  ;;  %4971 = vmatmul.mubr.msk.f32.gmra.mrb[78].mxu1 %vm565_vm1, %v2921_v58 }
 0xa7f   :  { %v2891_v45 = vpop.permute.xlu0 %2890  ;;  %v2923_v50 = vsel %vm525_vm0, %v7501_v33, %v2893_v9 }
 0xa80   :  { %v2922_v15 = vsel %vm525_vm0, %v7505_v60, %v2891_v45 }
 0xa81   :  { %4973 = vmatprep.mubr.msk.f32.mxu1 %vm565_vm1, %v2922_v15 }
 0xa82   :  { %v2897_v30 = vpop.permute.xlu1 %2896  ;;  %4974 = vmatmul.mubr.msk.f32.gmra.mrb[80].mxu1 %vm565_vm1, %v2923_v50 }
 0xa83   :  { %v2895_v11 = vpop.permute.xlu0 %2894  ;;  %v2925_v8 = vsel %vm525_vm0, %v7517_v48, %v2897_v30 }
 0xa84   :  { %v2924_v2 = vsel %vm525_vm0, %v7521_v27, %v2895_v11 }
 0xa85   :  { %4976 = vmatprep.mubr.msk.f32.mxu1 %vm565_vm1, %v2924_v2 }
 0xa86   :  { %v2901_v34 = vpop.permute.xlu1 %2900  ;;  %4977 = vmatmul.mubr.msk.f32.gmra.mrb[82].mxu1 %vm565_vm1, %v2925_v8 }
 0xa87   :  { %v2899_v43 = vpop.permute.xlu0 %2898  ;;  %v2927_v16 = vsel %vm525_vm0, %v7533_v0, %v2901_v34  ;;  %v5285_v0 = vpack.c.bf16 %v3256_v24, %v3255_v59 }
 0xa88   :  { %v2926_v44 = vsel %vm525_vm0, %v2862_v37, %v2899_v43  ;;  %v4403_v37 = vld [vmem:[%s7832_s4 + $0x2] ss:$0 sm:$0xff] }
 0xa89   :  { %4979 = vmatprep.mubr.msk.f32.mxu1 %vm565_vm1, %v2926_v44  ;;  %5286 = vmatprep.subr.bf16.mxu0 %v5285_v0 }
 0xa8a   :  { %v2905_v56 = vpop.permute.xlu1 %2904  ;;  %4980 = vmatmul.mubr.msk.f32.gmra.mrb[84].mxu1 %vm565_vm1, %v2927_v16  ;;  %5288 = vmatpush3.bf16.msra.mxu0 %v5285_v0 }
 0xa8b   :  { %v2903_v13 = vpop.permute.xlu0 %2902  ;;  %v2929_v46 = vsel %vm525_vm0, %v2865_v21, %v2905_v56 }
 0xa8c   :  { %v2928_v17 = vsel %vm525_vm0, %v2864_v32, %v2903_v13 }
 0xa8d   :  { %4982 = vmatprep.mubr.msk.f32.mxu1 %vm565_vm1, %v2928_v17 }
 0xa8e   :  { %4983 = vmatmul.mubr.msk.f32.gmra.mrb[86].mxu1 %vm565_vm1, %v2929_v46 }
 0xb4d   :  { %v4969_v63 = vpop.f32.mrb[76].mxu1 }
 0xb4e   :  { %v7615_v19 = vadd.f32 %v4969_v63, %v4403_v37  ;;  %v3049_v61 = vpop.f32.mrb[77].mxu1 }
 0xb4f   :  { %v7617_v35 = vadd.f32 %v4403_v37, %v3049_v61 }
 0xb50   :  { %v4417_v40 = vmul.f32 -1.442695, %v7615_v19 }
 0xb51   :  { %v4416_v38 = vmul.f32 -1.442695, %v7617_v35  ;;  %v4972_v47 = vpop.f32.mrb[78].mxu1 }
 0xb52   :  { %5784 = vpow2.f32 %v4417_v40  ;;  %v7621_v21 = vadd.f32 %v4972_v47, %v4403_v37  ;;  %v3059_v55 = vpop.f32.mrb[79].mxu1 }
 0xb53   :  { %5786 = vpow2.f32 %v4416_v38  ;;  %v7623_v32 = vadd.f32 %v4403_v37, %v3059_v55 }
 0xb54   :  { %v4419_v52 = vmul.f32 -1.442695, %v7621_v21 }
 0xb55   :  { %v4418_v7 = vmul.f32 -1.442695, %v7623_v32  ;;  %v4975_v28 = vpop.f32.mrb[80].mxu1 }
 0xb56   :  { %5788 = vpow2.f32 %v4419_v52  ;;  %v7627_v10 = vadd.f32 %v4975_v28, %v4403_v37  ;;  %v3069_v29 = vpop.f32.mrb[81].mxu1 }
 0xb57   :  { %5790 = vpow2.f32 %v4418_v7  ;;  %v7629_v23 = vadd.f32 %v4403_v37, %v3069_v29 }
 0xb58   :  { %v4421_v1 = vmul.f32 -1.442695, %v7627_v10 }
 0xb59   :  { %v4420_v14 = vmul.f32 -1.442695, %v7629_v23  ;;  %v4978_v18 = vpop.f32.mrb[82].mxu1 }
 0xb5a   :  { %5792 = vpow2.f32 %v4421_v1  ;;  %v7633_v36 = vadd.f32 %v4978_v18, %v4403_v37  ;;  %v3079_v42 = vpop.f32.mrb[83].mxu1 }
 0xb5b   :  { %5794 = vpow2.f32 %v4420_v14  ;;  %v7635_v20 = vadd.f32 %v4403_v37, %v3079_v42 }
 0xb5c   :  { %v5785_v22 = vpop.eup %5784  ;;  %v4423_v3 = vmul.f32 -1.442695, %v7633_v36 }
 0xb5d   :  { %v5787_v26 = vpop.eup %5786  ;;  %v3157_v53 = vadd.f32 1.0, %v5785_v22  ;;  %v4422_v39 = vmul.f32 -1.442695, %v7635_v20  ;;  %v4981_v62 = vpop.f32.mrb[84].mxu1 }
 0xb5e   :  { %v3156_v58 = vadd.f32 1.0, %v5787_v26  ;;  %5796 = vpow2.f32 %v4423_v3  ;;  %v7639_v9 = vadd.f32 %v4981_v62, %v4403_v37  ;;  %v3089_v45 = vpop.f32.mrb[85].mxu1 }
 0xb5f   :  { %5798 = vrcp.f32 %v3157_v53  ;;  %v7642_v2 = vadd.f32 %v4403_v37, %v3089_v45 }
 0xb60   :  { %v5789_v15 = vpop.eup %5788  ;;  %5800 = vrcp.f32 %v3156_v58  ;;  %v4425_v11 = vmul.f32 -1.442695, %v7639_v9 }
 0xb61   :  { %v5791_v50 = vpop.eup %5790  ;;  %v3159_v30 = vadd.f32 1.0, %v5789_v15  ;;  %5802 = vpow2.f32 %v4422_v39  ;;  %v4984_v8 = vpop.f32.mrb[86].mxu1  ;;  %v4424_v17 = vmul.f32 -1.442695, %v7642_v2 }
 0xb62   :  { %v3158_v34 = vadd.f32 1.0, %v5791_v50  ;;  %v3099_v43 = vpop.f32.mrb[87].mxu1  ;;  %v7644_v16 = vadd.f32 %v4984_v8, %v4403_v37 }
 0xb63   :  { %5804 = vrcp.f32 %v3159_v30  ;;  %v7647_v51 = vadd.f32 %v4403_v37, %v3099_v43 }
 0xb64   :  { %v5793_v44 = vpop.eup %5792  ;;  %5806 = vrcp.f32 %v3158_v34  ;;  %v4427_v59 = vmul.f32 -1.442695, %v7644_v16 }
 0xb65   :  { %v5795_v56 = vpop.eup %5794  ;;  %v3161_v13 = vadd.f32 1.0, %v5793_v44  ;;  %5808 = vpow2.f32 %v4425_v11  ;;  %v4426_v61 = vmul.f32 -1.442695, %v7647_v51 }
 0xb66   :  { %v3160_v46 = vadd.f32 1.0, %v5795_v56 }
 0xb67   :  { %5810 = vrcp.f32 %v3161_v13 }
 0xb68   :  { %v5797_v41 = vpop.eup %5796  ;;  %5812 = vrcp.f32 %v3160_v46 }
 0xb69   :  { %v5799_v31 = vpop.eup %5798  ;;  %v3163_v24 = vadd.f32 1.0, %v5797_v41  ;;  %5814 = vpow2.f32 %v4424_v17 }
 0xb6a   :  { %v5801_v0 = vpop.eup %5800  ;;  %3206 = vrot.lane.b32.xlu1 %v5799_v31, %s6128_s30 }
 0xb6b   :  { %v5803_v63 = vpop.eup %5802  ;;  %5816 = vrcp.f32 %v3163_v24  ;;  %3204 = vrot.lane.b32.xlu0 %v5801_v0, %s6128_s30 }
 0xb6c   :  { %v3162_v40 = vadd.f32 1.0, %v5803_v63  ;;  %5818 = vpow2.f32 %v4427_v59 }
 0xb6d   :  { %v5805_v37 = vpop.eup %5804 }
 0xb6e   :  { %v5807_v38 = vpop.eup %5806  ;;  %5820 = vrcp.f32 %v3162_v40  ;;  %3210 = vrot.lane.b32.xlu1 %v5805_v37, %s6128_s30 }
 0xb6f   :  { %v5809_v47 = vpop.eup %5808  ;;  %5822 = vpow2.f32 %v4426_v61  ;;  %3208 = vrot.lane.b32.xlu0 %v5807_v38, %s6128_s30 }
 0xb70   :  { %v3165_v55 = vadd.f32 1.0, %v5809_v47 }
 0xb71   :  { %v5811_v52 = vpop.eup %5810 }
 0xb72   :  { %v5813_v7 = vpop.eup %5812  ;;  %5824 = vrcp.f32 %v3165_v55  ;;  %3214 = vrot.lane.b32.xlu1 %v5811_v52, %s6128_s30 }
 0xb73   :  { %v5815_v28 = vpop.eup %5814  ;;  %3212 = vrot.lane.b32.xlu0 %v5813_v7, %s6128_s30 }
 0xb74   :  { %v3164_v29 = vadd.f32 1.0, %v5815_v28 }
 0xb75   :  { %v5817_v1 = vpop.eup %5816 }
 0xb76   :  { %v5819_v14 = vpop.eup %5818  ;;  %5826 = vrcp.f32 %v3164_v29  ;;  %3218 = vrot.lane.b32.xlu1 %v5817_v1, %s6128_s30 }
 0xb77   :  { %v3167_v18 = vadd.f32 1.0, %v5819_v14 }
 0xb78   :  { %v5821_v42 = vpop.eup %5820 }
 0xb79   :  { %v5823_v22 = vpop.eup %5822  ;;  %5828 = vrcp.f32 %v3167_v18  ;;  %3216 = vrot.lane.b32.xlu0 %v5821_v42, %s6128_s30 }
 0xb7a   :  { %v3166_v3 = vadd.f32 1.0, %v5823_v22 }
 0xb7c   :  { %v5825_v26 = vpop.eup %5824  ;;  %5830 = vrcp.f32 %v3166_v3 }
 0xb7d   :  { %3222 = vrot.lane.b32.xlu1 %v5825_v26, %s6128_s30  ;;  %5832 = vtanh.f32 %v7617_v35  ;;  %v4440_v26 = vld [vmem:[#allocation9 + $0x2] ss:$0 sm:$0xff] }
 0xb7e   :  { %5834 = vtanh.f32 %v7615_v19 }
 0xb7f   :  { %5836 = vtanh.f32 %v7623_v32 }
 0xb80   :  { %v5827_v53 = vpop.eup %5826  ;;  %5838 = vtanh.f32 %v7621_v21 }
 0xb81   :  { %3220 = vrot.lane.b32.xlu0 %v5827_v53, %s6128_s30  ;;  %5840 = vtanh.f32 %v7629_v23 }
 0xb82   :  { %5842 = vtanh.f32 %v7627_v10 }
 0xb83   :  { %v5829_v39 = vpop.eup %5828  ;;  %5844 = vtanh.f32 %v7635_v20 }
 0xb84   :  { %3226 = vrot.lane.b32.xlu1 %v5829_v39, %s6128_s30  ;;  %5846 = vtanh.f32 %v7633_v36 }
 0xb85   :  { %5848 = vtanh.f32 %v7642_v2 }
 0xb86   :  { %v5831_v62 = vpop.eup %5830  ;;  %5850 = vtanh.f32 %v7639_v9 }
 0xb87   :  { %3224 = vrot.lane.b32.xlu0 %v5831_v62, %s6128_s30  ;;  %v5833_v45 = vpop.eup %5832  ;;  %5852 = vtanh.f32 %v7647_v51 }
 0xb88   :  { %v5835_v50 = vpop.eup %5834  ;;  %5854 = vtanh.f32 %v7644_v16 }
 0xb89   :  { %v5837_v35 = vpop.eup %5836 }
 0xb8a   :  { %v5839_v21 = vpop.eup %5838 }
 0xb8b   :  { %v5841_v34 = vpop.eup %5840 }
 0xb8c   :  { %v5843_v44 = vpop.eup %5842 }
 0xb8d   :  { %v5845_v20 = vpop.eup %5844 }
 0xb8e   :  { %v5847_v46 = vpop.eup %5846 }
 0xb8f   :  { %v5849_v2 = vpop.eup %5848 }
 0xb90   :  { %v5851_v0 = vpop.eup %5850 }
 0xb91   :  { %v5853_v40 = vpop.eup %5852 }
 0xb92   :  { %v5855_v38 = vpop.eup %5854 }
 0xbdc   :  { %v3207_v58 = vpop.permute.xlu1 %3206 }
 0xbdd   :  { %v3205_v15 = vpop.permute.xlu0 %3204  ;;  %v3241_v11 = vmul.f32 %v5835_v50, %v3207_v58 }
 0xbde   :  { %v3240_v30 = vmul.f32 %v5833_v45, %v3205_v15  ;;  %v3434_v15 = vld [vmem:[#allocation13] sm:$0xff] }
 0xbdf   :  { %5035 = vmatprep.mubr.msk.f32.mxu1 %vm3502_vm2, %v3434_v15 }
 0xbe0   :  { %v3211_v8 = vpop.permute.xlu1 %3210  ;;  %4993 = vmatprep.mubr.msk.f32.mxu0 %vm525_vm0, %v3240_v30 }
 0xbe1   :  { %v3209_v19 = vpop.permute.xlu0 %3208  ;;  %4994 = vmatmul.mubr.msk.f32.vlgmr.msra.gmra.mrb[68].mxu0 %vm525_vm0, %v3241_v11  ;;  %v3243_v10 = vmul.f32 %v5839_v21, %v3211_v8 }
 0xbe2   :  { %v3242_v32 = vmul.f32 %v5837_v35, %v3209_v19 }
 0xbe4   :  { %v3215_v23 = vpop.permute.xlu1 %3214  ;;  %4996 = vmatprep.mubr.msk.f32.mxu0 %vm525_vm0, %v3242_v32 }
 0xbe5   :  { %v3213_v43 = vpop.permute.xlu0 %3212  ;;  %4997 = vmatmul.mubr.msk.f32.gmra.mrb[70].mxu0 %vm525_vm0, %v3243_v10  ;;  %v3245_v13 = vmul.f32 %v5843_v44, %v3215_v23 }
 0xbe6   :  { %v3244_v56 = vmul.f32 %v5841_v34, %v3213_v43 }
 0xbe8   :  { %4999 = vmatprep.mubr.msk.f32.mxu0 %vm525_vm0, %v3244_v56  ;;  %v3219_v36 = vpop.permute.xlu1 %3218 }
 0xbe9   :  { %5000 = vmatmul.mubr.msk.f32.gmra.mrb[72].mxu0 %vm525_vm0, %v3245_v13  ;;  %v3247_v59 = vmul.f32 %v5847_v46, %v3219_v36 }
 0xbeb   :  { %v3217_v17 = vpop.permute.xlu0 %3216 }
 0xbec   :  { %v3246_v41 = vmul.f32 %v5845_v20, %v3217_v17 }
 0xbee   :  { %5002 = vmatprep.mubr.msk.f32.mxu0 %vm525_vm0, %v3246_v41 }
 0xbef   :  { %5003 = vmatmul.mubr.msk.f32.gmra.mrb[74].mxu0 %vm525_vm0, %v3247_v59  ;;  %v3223_v31 = vpop.permute.xlu1 %3222 }
 0xbf0   :  { %v3249_v9 = vmul.f32 %v5851_v0, %v3223_v31 }
 0xbf3   :  { %v3221_v24 = vpop.permute.xlu0 %3220 }
 0xbf4   :  { %v3248_v63 = vmul.f32 %v5849_v2, %v3221_v24 }
 0xbf6   :  { %5005 = vmatprep.mubr.msk.f32.mxu0 %vm525_vm0, %v3248_v63  ;;  %v3227_v61 = vpop.permute.xlu1 %3226 }
 0xbf7   :  { %5006 = vmatmul.mubr.msk.f32.gmra.mrb[76].mxu0 %vm525_vm0, %v3249_v9  ;;  %v3251_v51 = vmul.f32 %v5855_v38, %v3227_v61  ;;  %v3436_v38 = vld [vmem:[#allocation13 + $0x10] sm:$0xff] }
 0xbf9   :  { %v3225_v37 = vpop.permute.xlu0 %3224 }
 0xbfa   :  { %v3250_v47 = vmul.f32 %v5853_v40, %v3225_v37  ;;  %v3435_v37 = vld [vmem:[#allocation13 + $0x8] sm:$0xff] }
 0xbfc   :  { %5008 = vmatprep.mubr.msk.f32.mxu0 %vm525_vm0, %v3250_v47  ;;  %v3437_v47 = vld [vmem:[#allocation13 + $0x18] sm:$0xff] }
 0xbfd   :  { %5009 = vmatmul.mubr.msk.f32.gmra.mrb[78].mxu0 %vm525_vm0, %v3251_v51  ;;  %v3438_v51 = vld [vmem:[#allocation13 + $0x20] sm:$0xff] }
 0xcb4   :  { %v4995_v16 = vpop.f32.mrb[68].mxu0 }
 0xcb5   :  { %v3359_v55 = vpop.f32.mrb[69].mxu0 }
 0xcb6   :  { %v5514_v52 = vpack.i.bf16 %v4995_v16, %v3359_v55  ;;  %v3439_v16 = vld [vmem:[#allocation13 + $0x28] sm:$0xff]  ;;  %v3440_v55 = vld [vmem:[#allocation13 + $0x30] sm:$0xff] }
 0xcb8   :  { %5515 = vrot.lane.b32.xlu0 %v5514_v52, %s6130_s26  ;;  %v4998_v7 = vpop.f32.mrb[70].mxu0  ;;  %v3441_v52 = vld [vmem:[#allocation13 + $0x38] sm:$0xff] }
 0xcb9   :  { %v3369_v28 = vpop.f32.mrb[71].mxu0 }
 0xcba   :  { %v5519_v29 = vpack.i.bf16 %v4998_v7, %v3369_v28  ;;  %v3442_v7 = vld [vmem:[#allocation13 + $0x40] sm:$0xff]  ;;  %v3443_v28 = vld [vmem:[#allocation13 + $0x48] sm:$0xff] }
 0xcbc   :  { %5520 = vrot.lane.b32.xlu1 %v5519_v29, %s6130_s26  ;;  %v5001_v1 = vpop.f32.mrb[72].mxu0  ;;  %v3444_v29 = vld [vmem:[#allocation13 + $0x50] sm:$0xff] }
 0xcbd   :  { %v3379_v14 = vpop.f32.mrb[73].mxu0 }
 0xcbe   :  { %v5524_v18 = vpack.i.bf16 %v5001_v1, %v3379_v14  ;;  %v3445_v1 = vld [vmem:[#allocation13 + $0x58] sm:$0xff] }
 0xcbf   :  { %v3721_v14 = vld [vmem:[#allocation6 + $0xc0] sm:$0xff] }
 0xcc0   :  { %5525 = vrot.lane.b32.xlu0 %v5524_v18, %s6130_s26  ;;  %v3722_v18 = vld [vmem:[#allocation6 + $0xc8] sm:$0xff] }
 0xcc2   :  { %v5004_v42 = vpop.f32.mrb[74].mxu0 }
 0xcc3   :  { %v3389_v22 = vpop.f32.mrb[75].mxu0 }
 0xcc4   :  { %v5529_v3 = vpack.i.bf16 %v5004_v42, %v3389_v22  ;;  %v3723_v42 = vld [vmem:[#allocation6 + $0xd0] sm:$0xff]  ;;  %v5313_v22 = vpack.c.bf16 %v3722_v18, %v3721_v14 }
 0xcc6   :  { %5530 = vrot.lane.b32.xlu1 %v5529_v3, %s6130_s26  ;;  %v3724_v3 = vld [vmem:[#allocation6 + $0xd8] sm:$0xff]  ;;  %5314 = vmatprep.subr.bf16.mxu0 %v5313_v22 }
 0xcc7   :  { %5316 = vmatpush3.bf16.msra.mxu0 %v5313_v22 }
 0xcca   :  { %v5007_v53 = vpop.f32.mrb[76].mxu0 }
 0xccb   :  { %v3427_v39 = vadd.f32 %v5007_v53, %v4440_v26  ;;  %v3399_v62 = vpop.f32.mrb[77].mxu0 }
 0xccc   :  { %v5534_v58 = vpack.i.bf16 %v5007_v53, %v3399_v62  ;;  %v3426_v45 = vadd.f32 %v4440_v26, %v3399_v62  ;;  %v3725_v53 = vld [vmem:[#allocation6 + $0xe0] sm:$0xff] }
 0xccd   :  { %v7692_v50 = vadd.f32 %v3427_v39, %v7444_v5  ;;  %v3726_v39 = vld [vmem:[#allocation6 + $0xe8] sm:$0xff] }
 0xcce   :  { %v7696_v30 = vadd.f32 %v3426_v45, %v7446_v49  ;;  %5535 = vrot.lane.b32.xlu0 %v5534_v58, %s6130_s26  ;;  %v5321_v62 = vpack.c.bf16 %v3726_v39, %v3725_v53  ;;  %v3727_v58 = vld [vmem:[#allocation6 + $0xf0] sm:$0xff]  ;;  %v3728_v45 = vld [vmem:[#allocation6 + $0xf8] sm:$0xff]  ;;  %v3883_v39 = vld [vmem:[#allocation7 + $0x60] sm:$0xff] }
 0xccf   :  { %v5325_v15 = vpack.c.bf16 %v3728_v45, %v3727_v58  ;;  %v4459_v45 = vld [vmem:[%s7832_s4 + $0x3] ss:$0 sm:$0xff] }
 0xcd0   :  { %v5010_v11 = vpop.f32.mrb[78].mxu0 }
 0xcd1   :  { %v3429_v8 = vadd.f32 %v5010_v11, %v4440_v26  ;;  %v3409_v35 = vpop.f32.mrb[79].mxu0 }
 0xcd2   :  { %v5539_v19 = vpack.i.bf16 %v5010_v11, %v3409_v35  ;;  %v3428_v21 = vadd.f32 %v4440_v26, %v3409_v35  ;;  %v5317_v26 = vpack.c.bf16 %v3724_v3, %v3723_v42  ;;  %v4441_v11 = vld [vmem:[#allocation10 + $0x2] ss:$0 sm:$0xff] }
 0xcd3   :  { %v7700_v32 = vadd.f32 %v3429_v8, %v7451_v6 }
 0xcd4   :  { %v7703_v10 = vadd.f32 %v3428_v21, %v7453_v25  ;;  %5540 = vrot.lane.b32.xlu1 %v5539_v19, %s6130_s26  ;;  %5318 = vmatprep.subr.bf16.mxu0 %v5317_v26  ;;  %v4455_v21 = vld [vmem:[%s7840_s12 + $0x2] ss:$0 sm:$0xff] }
 0xcd5   :  { %5320 = vmatpush3.bf16.msra.mxu0 %v5317_v26 }
 0xcd6   :  { %5322 = vmatprep.subr.bf16.mxu0 %v5321_v62 }
 0xcd9   :  { %5324 = vmatpush3.bf16.msra.mxu0 %v5321_v62  ;;  %v3884_v62 = vld [vmem:[#allocation7 + $0x68] sm:$0xff] }
 0xcda   :  { %5326 = vmatprep.subr.bf16.mxu0 %v5325_v15  ;;  %v5329_v58 = vpack.c.bf16 %v3884_v62, %v3883_v39  ;;  %v4124_v62 = vld [vmem:[%s7844_s16 + $0x20] sm:$0xff] }
 0xcdd   :  { %5328 = vmatpush3.bf16.msra.mxu0 %v5325_v15 }
 0xcde   :  { %5330 = vmatprep.subr.bf16.mxu0 %v5329_v58 }
 0xd2a   :  { %v5516_v5 = vpop.permute.xlu0 %5515 }
 0xd2b   :  { %v5518_v23 = vunpack.i.h.bf16 %v5516_v5  ;;  %v5517_v34 = vunpack.i.l.bf16 %v5516_v5 }
 0xd2d   :  { %v5289_v49 = vpack.c.bf16 %v5518_v23, %v5517_v34 }
 0xd2e   :  { %v5521_v43 = vpop.permute.xlu1 %5520 }
 0xd2f   :  { %v5523_v44 = vunpack.i.h.bf16 %v5521_v43  ;;  %v5522_v56 = vunpack.i.l.bf16 %v5521_v43  ;;  %5290 = vmatprep.subr.bf16.mxu1 %v5289_v49  ;;  %v4457_v43 = vld [vmem:[%s7841_s13 + $0x2] ss:$0 sm:$0xff] }
 0xd30   :  { %5292 = vmatpush3.bf16.msra.mxu1 %v5289_v49 }
 0xd31   :  { %v5293_v13 = vpack.c.bf16 %v5523_v44, %v5522_v56 }
 0xd32   :  { %v5526_v36 = vpop.permute.xlu0 %5525 }
 0xd33   :  { %v5528_v20 = vunpack.i.h.bf16 %v5526_v36  ;;  %v5527_v17 = vunpack.i.l.bf16 %v5526_v36  ;;  %5294 = vmatprep.subr.bf16.mxu1 %v5293_v13 }
 0xd34   :  { %5296 = vmatpush3.bf16.msra.mxu1 %v5293_v13 }
 0xd35   :  { %v5297_v6 = vpack.c.bf16 %v5528_v20, %v5527_v17 }
 0xd37   :  { %5298 = vmatprep.subr.bf16.mxu1 %v5297_v6 }
 0xd38   :  { %v5531_v25 = vpop.permute.xlu1 %5530  ;;  %5300 = vmatpush3.bf16.msra.mxu1 %v5297_v6 }
 0xd39   :  { %v5533_v46 = vunpack.i.h.bf16 %v5531_v25  ;;  %v5532_v41 = vunpack.i.l.bf16 %v5531_v25 }
 0xd3b   :  { %v5301_v59 = vpack.c.bf16 %v5533_v46, %v5532_v41 }
 0xd3d   :  { %5302 = vmatprep.subr.bf16.mxu1 %v5301_v59 }
 0xd3e   :  { %5304 = vmatpush3.bf16.msra.mxu1 %v5301_v59 }
 0xd40   :  { %v5536_v31 = vpop.permute.xlu0 %5535 }
 0xd41   :  { %v5538_v2 = vunpack.i.h.bf16 %v5536_v31  ;;  %v5537_v24 = vunpack.i.l.bf16 %v5536_v31 }
 0xd43   :  { %v5305_v0 = vpack.c.bf16 %v5538_v2, %v5537_v24 }
 0xd45   :  { %5306 = vmatprep.subr.bf16.mxu1 %v5305_v0 }
 0xd46   :  { %v5541_v63 = vpop.permute.xlu1 %5540  ;;  %5308 = vmatpush3.bf16.msra.mxu1 %v5305_v0 }
 0xd47   :  { %v5543_v9 = vunpack.i.h.bf16 %v5541_v63  ;;  %v5542_v61 = vunpack.i.l.bf16 %v5541_v63 }
 0xd49   :  { %v5309_v40 = vpack.c.bf16 %v5543_v9, %v5542_v61 }
 0xd4b   :  { %5310 = vmatprep.subr.bf16.mxu1 %v5309_v40 }
 0xd4c   :  { %5312 = vmatpush3.bf16.msra.mxu1 %v5309_v40 }
 0xd4f   :  { %5036 = vmatmul.mubr.msk.f32.vlgmr.msra.gmra.mrb[88].mxu1 %vm3502_vm2, %v3435_v37 }
 0xd50   :  { %5038 = vmatprep.mubr.msk.f32.mxu1 %vm3502_vm2, %v3436_v38 }
 0xd53   :  { %5039 = vmatmul.mubr.msk.f32.gmra.mrb[90].mxu1 %vm3502_vm2, %v3437_v47 }
 0xd54   :  { %5041 = vmatprep.mubr.msk.f32.mxu1 %vm3502_vm2, %v3438_v51 }
 0xd57   :  { %5042 = vmatmul.mubr.msk.f32.gmra.mrb[92].mxu1 %vm3502_vm2, %v3439_v16 }
 0xd58   :  { %5044 = vmatprep.mubr.msk.f32.mxu1 %vm3502_vm2, %v3440_v55 }
 0xd5b   :  { %5045 = vmatmul.mubr.msk.f32.gmra.mrb[94].mxu1 %vm3502_vm2, %v3441_v52 }
 0xd5c   :  { %5047 = vmatprep.mubr.msk.f32.mxu1 %vm3502_vm2, %v3442_v7 }
 0xd5f   :  { %5048 = vmatmul.mubr.msk.f32.gmra.mrb[96].mxu1 %vm3502_vm2, %v3443_v28 }
 0xd60   :  { %5050 = vmatprep.mubr.msk.f32.mxu1 %vm3502_vm2, %v3444_v29 }
 0xd63   :  { %5051 = vmatmul.mubr.msk.f32.gmra.mrb[98].mxu1 %vm3502_vm2, %v3445_v1 }
 0xe22   :  { %v5037_v8 = vpop.f32.mrb[88].mxu1 }
 0xe23   :  { %v3611_v35 = vadd.f32 %v5037_v8, %v4441_v11  ;;  %v3605_v19 = vpop.f32.mrb[89].mxu1 }
 0xe24   :  { %v3606_v5 = vadd.f32 %v4441_v11, %v3605_v19 }
 0xe25   :  { %v3661_v23 = vadd.f32 %v3611_v35, %v7501_v33 }
 0xe26   :  { %v3660_v34 = vadd.f32 %v3606_v5, %v7505_v60  ;;  %v5040_v49 = vpop.f32.mrb[90].mxu1 }
 0xe27   :  { %v3677_v44 = vmul.f32 %v4455_v21, %v3661_v23  ;;  %v3621_v56 = vadd.f32 %v5040_v49, %v4441_v11  ;;  %v3615_v13 = vpop.f32.mrb[91].mxu1 }
 0xe28   :  { %v3676_v36 = vmul.f32 %v4455_v21, %v3660_v34  ;;  %v3616_v20 = vadd.f32 %v4441_v11, %v3615_v13  ;;  %v3886_v13 = vld [vmem:[#allocation7 + $0x78] sm:$0xff] }
 0xe29   :  { %v3663_v17 = vadd.f32 %v3621_v56, %v7517_v48  ;;  %v3693_v6 = vadd.f32 %v4457_v43, %v3677_v44  ;;  %v3885_v56 = vld [vmem:[#allocation7 + $0x70] sm:$0xff] }
 0xe2a   :  { %v3662_v25 = vadd.f32 %v3616_v20, %v7521_v27  ;;  %v5043_v46 = vpop.f32.mrb[92].mxu1  ;;  %v3692_v41 = vadd.f32 %v4457_v43, %v3676_v36  ;;  %v5333_v36 = vpack.c.bf16 %v3886_v13, %v3885_v56  ;;  %v4472_v56 = vld [vmem:[#allocation9 + $0x3] ss:$0 sm:$0xff] }
 0xe2b   :  { %v3679_v33 = vmul.f32 %v4455_v21, %v3663_v17  ;;  %v3625_v59 = vpop.f32.mrb[93].mxu1 }
 0xe2c   :  { %v3678_v60 = vmul.f32 %v4455_v21, %v3662_v25 }
 0xe2d   :  { %v3695_v31 = vadd.f32 %v4457_v43, %v3679_v33 }
 0xe2e   :  { %v5046_v2 = vpop.f32.mrb[94].mxu1  ;;  %v3694_v24 = vadd.f32 %v4457_v43, %v3678_v60  ;;  %v4004_v60 = vld [vmem:[#allocation16] sm:$0xff] }
 0xe2f   :  { %v3633_v0 = vpop.f32.mrb[95].mxu1  ;;  %v4006_v2 = vld [vmem:[#allocation16 + $0x10] sm:$0xff] }
 0xe30   :  { %v4007_v0 = vld [vmem:[#allocation16 + $0x18] sm:$0xff] }
 0xe32   :  { %v5049_v63 = vpop.f32.mrb[96].mxu1 }
 0xe33   :  { %v3647_v9 = vadd.f32 %v5049_v63, %v4441_v11  ;;  %v3641_v61 = vpop.f32.mrb[97].mxu1  ;;  %v5341_v63 = vpack.c.bf16 %v4007_v0, %v4006_v2 }
 0xe34   :  { %v3642_v40 = vadd.f32 %v4441_v11, %v3641_v61  ;;  %v4009_v61 = vld [vmem:[#allocation16 + $0x28] sm:$0xff] }
 0xe35   :  { %v3665_v37 = vadd.f32 %v3647_v9, %v7556_v12  ;;  %v4008_v9 = vld [vmem:[#allocation16 + $0x20] sm:$0xff] }
 0xe36   :  { %v3664_v48 = vadd.f32 %v3642_v40, %v7560_v4  ;;  %v5052_v38 = vpop.f32.mrb[98].mxu1 }
 0xe37   :  { %v3681_v47 = vmul.f32 %v4455_v21, %v3665_v37  ;;  %v3657_v27 = vadd.f32 %v5052_v38, %v4441_v11  ;;  %v3651_v51 = vpop.f32.mrb[99].mxu1 }
 0xe38   :  { %v3680_v16 = vmul.f32 %v4455_v21, %v3664_v48  ;;  %v3652_v55 = vadd.f32 %v4441_v11, %v3651_v51  ;;  %v5345_v48 = vpack.c.bf16 %v4009_v61, %v4008_v9 }
 0xe39   :  { %v3697_v52 = vadd.f32 %v4457_v43, %v3681_v47  ;;  %v3667_v7 = vadd.f32 %v3657_v27, %v7570_v57 }
 0xe3a   :  { %v3696_v28 = vadd.f32 %v4457_v43, %v3680_v16  ;;  %v3666_v29 = vadd.f32 %v3652_v55, %v7573_v54 }
 0xe3b   :  { %v3683_v1 = vmul.f32 %v4455_v21, %v3667_v7  ;;  %3706 = vrot.lane.b32.xlu1 %v3697_v52, %s6127_s21 }
 0xe3c   :  { %v3682_v14 = vmul.f32 %v4455_v21, %v3666_v29  ;;  %3704 = vrot.lane.b32.xlu0 %v3696_v28, %s6127_s21 }
 0xe3d   :  { %v3699_v12 = vadd.f32 %v4457_v43, %v3683_v1 }
 0xe3e   :  { %v3698_v4 = vadd.f32 %v4457_v43, %v3682_v14 }
 0xe3f   :  { %3710 = vrot.lane.b32.xlu1 %v3699_v12, %s6127_s21 }
 0xe40   :  { %3708 = vrot.lane.b32.xlu0 %v3698_v4, %s6127_s21 }
 0xead   :  { %v3707_v18 = vpop.permute.xlu1 %3706 }
 0xeae   :  { %v3705_v42 = vpop.permute.xlu0 %3704  ;;  %v3717_v57 = vsel %vm525_vm0, %v3693_v6, %v3707_v18  ;;  %v4010_v18 = vld [vmem:[#allocation16 + $0x30] sm:$0xff] }
 0xeaf   :  { %v3716_v22 = vsel %vm525_vm0, %v3692_v41, %v3705_v42  ;;  %v4011_v42 = vld [vmem:[#allocation16 + $0x38] sm:$0xff] }
 0xeb0   :  { %5069 = vmatprep.mubr.msk.f32.mxu0 %vm565_vm1, %v3716_v22  ;;  %v5349_v22 = vpack.c.bf16 %v4011_v42, %v4010_v18 }
 0xeb1   :  { %v3711_v54 = vpop.permute.xlu1 %3710  ;;  %5070 = vmatmul.mubr.msk.f32.vlgmr.msra.gmra.mrb[80].mxu0 %vm565_vm1, %v3717_v57  ;;  %v4120_v57 = vld [vmem:[%s7844_s16] sm:$0xff] }
 0xeb2   :  { %v3709_v3 = vpop.permute.xlu0 %3708  ;;  %v3719_v53 = vsel %vm525_vm0, %v3695_v31, %v3711_v54  ;;  %5332 = vmatpush3.bf16.msra.mxu0 %v5329_v58  ;;  %v4005_v31 = vld [vmem:[#allocation16 + $0x8] sm:$0xff]  ;;  %v4121_v54 = vld [vmem:[%s7844_s16 + $0x8] sm:$0xff] }
 0xeb3   :  { %v3718_v26 = vsel %vm525_vm0, %v3694_v24, %v3709_v3  ;;  %5334 = vmatprep.subr.bf16.mxu0 %v5333_v36  ;;  %v5337_v24 = vpack.c.bf16 %v4005_v31, %v4004_v60  ;;  %v4122_v3 = vld [vmem:[%s7844_s16 + $0x10] sm:$0xff]  ;;  %v4125_v58 = vld [vmem:[%s7844_s16 + $0x28] sm:$0xff] }
 0xeb4   :  { %5072 = vmatprep.mubr.msk.f32.mxu0 %vm565_vm1, %v3718_v26  ;;  %v5353_v26 = vpack.c.bf16 %v4121_v54, %v4120_v57 }
 0xeb5   :  { %5073 = vmatmul.mubr.msk.f32.gmra.mrb[82].mxu0 %vm565_vm1, %v3719_v53  ;;  %5338 = vmatprep.subr.bf16.mxu1 %v5337_v24  ;;  %v4123_v53 = vld [vmem:[%s7844_s16 + $0x18] sm:$0xff] }
 0xeb6   :  { %5336 = vmatpush3.bf16.msra.mxu0 %v5333_v36  ;;  %5340 = vmatpush3.bf16.msra.mxu1 %v5337_v24  ;;  %v5357_v39 = vpack.c.bf16 %v4123_v53, %v4122_v3 }
 0xeb7   :  { %5342 = vmatprep.subr.bf16.mxu1 %v5341_v63  ;;  %5354 = vmatprep.subr.bf16.mxu0 %v5353_v26 }
 0xeba   :  { %5344 = vmatpush3.bf16.msra.mxu1 %v5341_v63 }
 0xebb   :  { %5346 = vmatprep.subr.bf16.mxu1 %v5345_v48 }
 0xebe   :  { %5348 = vmatpush3.bf16.msra.mxu1 %v5345_v48 }
 0xebf   :  { %5350 = vmatprep.subr.bf16.mxu1 %v5349_v22 }
 0xec2   :  { %5352 = vmatpush3.bf16.msra.mxu1 %v5349_v22 }
 0xf84   :  { %v5071_v15 = vpop.f32.mrb[80].mxu0 }
 0xf85   :  { %v3821_v11 = vadd.f32 %v5071_v15, %v4459_v45  ;;  %v3815_v8 = vpop.f32.mrb[81].mxu0  ;;  %v4126_v15 = vld [vmem:[%s7844_s16 + $0x30] sm:$0xff] }
 0xf86   :  { %v3816_v35 = vadd.f32 %v4459_v45, %v3815_v8 }
 0xf87   :  { %v4465_v19 = vmul.f32 -1.442695, %v3821_v11 }
 0xf88   :  { %v4464_v21 = vmul.f32 -1.442695, %v3816_v35  ;;  %v5074_v5 = vpop.f32.mrb[82].mxu0 }
 0xf89   :  { %5856 = vpow2.f32 %v4465_v19  ;;  %v3831_v23 = vadd.f32 %v5074_v5, %v4459_v45  ;;  %v3825_v34 = vpop.f32.mrb[83].mxu0  ;;  %v4129_v19 = vld [vmem:[%s7844_s16 + $0x48] sm:$0xff]  ;;  %v4130_v5 = vld [vmem:[%s7844_s16 + $0x50] sm:$0xff] }
 0xf8a   :  { %5858 = vpow2.f32 %v4464_v21  ;;  %v3826_v49 = vadd.f32 %v4459_v45, %v3825_v34  ;;  %v5361_v45 = vpack.c.bf16 %v4125_v58, %v4124_v62 }
 0xf8b   :  { %v4467_v43 = vmul.f32 -1.442695, %v3831_v23 }
 0xf8c   :  { %v4466_v44 = vmul.f32 -1.442695, %v3826_v49 }
 0xf8d   :  { %5860 = vpow2.f32 %v4467_v43  ;;  %v4133_v43 = vld [vmem:[%s7844_s16 + $0x68] sm:$0xff] }
 0xf8e   :  { %5862 = vpow2.f32 %v4466_v44 }
 0xf93   :  { %v5857_v20 = vpop.eup %5856 }
 0xf94   :  { %v5859_v17 = vpop.eup %5858  ;;  %v3851_v6 = vadd.f32 1.0, %v5857_v20 }
 0xf95   :  { %v3850_v25 = vadd.f32 1.0, %v5859_v17 }
 0xf96   :  { %5864 = vrcp.f32 %v3851_v6 }
 0xf97   :  { %v5861_v46 = vpop.eup %5860  ;;  %5866 = vrcp.f32 %v3850_v25 }
 0xf98   :  { %v5863_v41 = vpop.eup %5862  ;;  %v3853_v33 = vadd.f32 1.0, %v5861_v46 }
 0xf99   :  { %v3852_v59 = vadd.f32 1.0, %v5863_v41 }
 0xf9a   :  { %5868 = vrcp.f32 %v3853_v33 }
 0xf9b   :  { %5870 = vrcp.f32 %v3852_v59 }
 0xf9c   :  { %5872 = vtanh.f32 %v3816_v35  ;;  %v4128_v35 = vld [vmem:[%s7844_s16 + $0x40] sm:$0xff] }
 0xf9d   :  { %5874 = vtanh.f32 %v3821_v11  ;;  %v4127_v11 = vld [vmem:[%s7844_s16 + $0x38] sm:$0xff]  ;;  %v5369_v21 = vpack.c.bf16 %v4129_v19, %v4128_v35 }
 0xf9e   :  { %5876 = vtanh.f32 %v3826_v49  ;;  %v5365_v8 = vpack.c.bf16 %v4127_v11, %v4126_v15  ;;  %v4132_v49 = vld [vmem:[%s7844_s16 + $0x60] sm:$0xff] }
 0xf9f   :  { %5878 = vtanh.f32 %v3831_v23  ;;  %v4131_v23 = vld [vmem:[%s7844_s16 + $0x58] sm:$0xff]  ;;  %v5377_v44 = vpack.c.bf16 %v4133_v43, %v4132_v49 }
 0xfa0   :  { %v5865_v40 = vpop.eup %5864  ;;  %v5373_v34 = vpack.c.bf16 %v4131_v23, %v4130_v5 }
 0xfa1   :  { %v5867_v37 = vpop.eup %5866  ;;  %3868 = vrot.lane.b32.xlu1 %v5865_v40, %s6128_s30 }
 0xfa2   :  { %3866 = vrot.lane.b32.xlu0 %v5867_v37, %s6128_s30 }
 0xfa4   :  { %v5869_v38 = vpop.eup %5868 }
 0xfa5   :  { %v5871_v47 = vpop.eup %5870  ;;  %3872 = vrot.lane.b32.xlu1 %v5869_v38, %s6128_s30 }
 0xfa6   :  { %3870 = vrot.lane.b32.xlu0 %v5871_v47, %s6128_s30  ;;  %v5873_v51 = vpop.eup %5872 }
 0xfa7   :  { %v5875_v55 = vpop.eup %5874 }
 0xfa8   :  { %v5877_v29 = vpop.eup %5876 }
 0xfa9   :  { %v5879_v14 = vpop.eup %5878 }
0x1013   :  { %v3869_v27 = vpop.permute.xlu1 %3868 }
0x1014   :  { %v3867_v16 = vpop.permute.xlu0 %3866  ;;  %v3879_v7 = vmul.f32 %v5875_v55, %v3869_v27 }
0x1015   :  { %v3878_v52 = vmul.f32 %v5873_v51, %v3867_v16 }
0x1017   :  { %v3873_v28 = vpop.permute.xlu1 %3872  ;;  %5083 = vmatprep.mubr.msk.f32.mxu0 %vm525_vm0, %v3878_v52 }
0x1018   :  { %v3871_v1 = vpop.permute.xlu0 %3870  ;;  %5084 = vmatmul.mubr.msk.f32.vlgmr.msra.gmra.mrb[84].mxu0 %vm525_vm0, %v3879_v7  ;;  %v3881_v4 = vmul.f32 %v5879_v14, %v3873_v28  ;;  %v4478_v7 = vld [vmem:[%s7845_s17] ss:$0 sm:$0xff] }
0x1019   :  { %v3880_v12 = vmul.f32 %v5877_v29, %v3871_v1  ;;  %5356 = vmatpush3.bf16.msra.mxu0 %v5353_v26 }
0x101a   :  { %5358 = vmatprep.subr.bf16.mxu0 %v5357_v39 }
0x101b   :  { %5086 = vmatprep.mubr.msk.f32.mxu0 %vm525_vm0, %v3880_v12 }
0x101c   :  { %5087 = vmatmul.mubr.msk.f32.gmra.mrb[86].mxu0 %vm525_vm0, %v3881_v4 }
0x101d   :  { %5360 = vmatpush3.bf16.msra.mxu0 %v5357_v39 }
0x101e   :  { %5362 = vmatprep.subr.bf16.mxu0 %v5361_v45 }
0x1021   :  { %5364 = vmatpush3.bf16.msra.mxu0 %v5361_v45 }
0x1022   :  { %5366 = vmatprep.subr.bf16.mxu0 %v5365_v8 }
0x1025   :  { %5368 = vmatpush3.bf16.msra.mxu0 %v5365_v8 }
0x1026   :  { %5370 = vmatprep.subr.bf16.mxu0 %v5369_v21 }
0x1029   :  { %5372 = vmatpush3.bf16.msra.mxu0 %v5369_v21 }
0x102a   :  { %5374 = vmatprep.subr.bf16.mxu0 %v5373_v34 }
0x102d   :  { %5376 = vmatpush3.bf16.msra.mxu0 %v5373_v34 }
0x102e   :  { %5378 = vmatprep.subr.bf16.mxu0 %v5377_v44 }
0x1031   :  { %5380 = vmatpush3.bf16.msra.mxu0 %v5377_v44 }
0x10eb   :  { %v5085_v13 = vpop.f32.mrb[84].mxu0 }
0x10ec   :  { %v3993_v36 = vadd.f32 %v5085_v13, %v4472_v56  ;;  %v3965_v20 = vpop.f32.mrb[85].mxu0 }
0x10ed   :  { %v3992_v17 = vadd.f32 %v4472_v56, %v3965_v20 }
0x10ee   :  { %v3997_v6 = vadd.f32 %v3993_v36, %v7692_v50  ;;  %v4134_v50 = vld [vmem:[%s7844_s16 + $0x70] sm:$0xff] }
0x10ef   :  { %v3996_v25 = vadd.f32 %v3992_v17, %v7696_v30  ;;  %v5088_v46 = vpop.f32.mrb[86].mxu0  ;;  %v4135_v30 = vld [vmem:[%s7844_s16 + $0x78] sm:$0xff] }
0x10f0   :  { %v3995_v41 = vadd.f32 %v5088_v46, %v4472_v56  ;;  %v3975_v33 = vpop.f32.mrb[87].mxu0  ;;  %v4001_v31 = vmax.f32 %v3997_v6, 0.0 }
0x10f1   :  { %v4000_v59 = vmax.f32 %v3996_v25, 0.0  ;;  %v3994_v60 = vadd.f32 %v4472_v56, %v3975_v33 }
0x10f2   :  { %v3999_v2 = vadd.f32 %v3995_v41, %v7700_v32  ;;  %v5381_v32 = vpack.c.bf16 %v4135_v30, %v4134_v50 }
0x10f3   :  { %v3998_v24 = vadd.f32 %v3994_v60, %v7703_v10  ;;  %5105 = vmatprep.mubr.msk.f32.mxu1 %vm565_vm1, %v4000_v59  ;;  %v4473_v10 = vld [vmem:[%s7843_s15] ss:$0 sm:$0xff] }
0x10f4   :  { %5106 = vmatmul.mubr.msk.f32.vlgmr.msra.gmra.mrb[100].mxu1 %vm565_vm1, %v4001_v31  ;;  %v4003_v63 = vmax.f32 %v3999_v2, 0.0  ;;  %5382 = vmatprep.subr.bf16.mxu0 %v5381_v32 }
0x10f5   :  { %v4002_v0 = vmax.f32 %v3998_v24, 0.0  ;;  %5384 = vmatpush3.bf16.msra.mxu0 %v5381_v32 }
0x10f7   :  { %5108 = vmatprep.mubr.msk.f32.mxu1 %vm565_vm1, %v4002_v0 }
0x10f8   :  { %5109 = vmatmul.mubr.msk.f32.gmra.mrb[102].mxu1 %vm565_vm1, %v4003_v63 }
0x11c7   :  { %v5107_v9 = vpop.f32.mrb[100].mxu1 }
0x11c8   :  { %v4103_v61 = vadd.f32 %v5107_v9, %v4473_v10  ;;  %v4097_v40 = vpop.f32.mrb[101].mxu1 }
0x11c9   :  { %v4098_v37 = vadd.f32 %v4473_v10, %v4097_v40 }
0x11ca   :  { %v4117_v47 = vmax.f32 %v4103_v61, 0.0 }
0x11cb   :  { %v4116_v48 = vmax.f32 %v4098_v37, 0.0  ;;  %v5110_v38 = vpop.f32.mrb[102].mxu1 }
0x11cc   :  { %v4113_v27 = vadd.f32 %v5110_v38, %v4473_v10  ;;  %v4107_v51 = vpop.f32.mrb[103].mxu1 }
0x11cd   :  { %v4108_v16 = vadd.f32 %v4473_v10, %v4107_v51  ;;  %5143 = vmatprep.mubr.f32.mxu0 %v4116_v48 }
0x11ce   :  { %5144 = vmatmul.mubr.f32.vlgmr.msra.gmra.mrb[88].mxu0 %v4117_v47  ;;  %v4119_v52 = vmax.f32 %v4113_v27, 0.0 }
0x11cf   :  { %v4118_v55 = vmax.f32 %v4108_v16, 0.0 }
0x11d1   :  { %5146 = vmatprep.mubr.f32.mxu0 %v4118_v55 }
0x11d2   :  { %5147 = vmatmul.mubr.f32.gmra.mrb[90].mxu0 %v4119_v52 }
0x12a1   :  { %v5145_v28 = vpop.f32.mrb[88].mxu0 }
0x12a2   :  { %v4215_v29 = vadd.f32 %v5145_v28, %v4478_v7  ;;  %v4209_v1 = vpop.f32.mrb[89].mxu0 }
0x12a3   :  { %v4210_v14 = vadd.f32 %v4478_v7, %v4209_v1 }
0x12a4   :  { %4230 = vst.msk [vmem:[%s7860_s18 + $0x8] sm:$0xff] %vm4228_vm3, %v4215_v29 }
0x12a5   :  { %4229 = vst.msk [vmem:[%s7860_s18] sm:$0xff] %vm4228_vm3, %v4210_v14  ;;  %v5148_v12 = vpop.f32.mrb[90].mxu0 }
0x12a6   :  { %v4225_v4 = vadd.f32 %v5148_v12, %v4478_v7  ;;  %v4219_v18 = vpop.f32.mrb[91].mxu0 }
0x12a7   :  { %v4220_v42 = vadd.f32 %v4478_v7, %v4219_v18 }
0x12a8   :  { %4232 = vst.msk [vmem:[%s7860_s18 + $0x18] sm:$0xff] %vm4228_vm3, %v4225_v4 }
0x12a9   :  { %4231 = vst.msk [vmem:[%s7860_s18 + $0x10] sm:$0xff] %vm4228_vm3, %v4220_v42 }
0x12aa   :  { %4237 = vsyncpa [#allocation3], 1 }
0x12ab   :  { %4238 = vsyncpa [#allocation5], 1 }
0x12ac   :  { %4239 = vsyncpa [#allocation8], 1 }
0x12ad   :  { %4240 = vsyncpa [#allocation11], 1 }
0x12ae   :  { %4241 = vsyncpa [#allocation14], 1 }
0x12af   :  { %4242 = vsyncpa [#allocation17], 1 }

</bundles_post_ra>
